<compile_context>
chip_gen: v7x
topology: tpu7x:2x2x1
jax: 0.10.0
libtpu: 0.0.40
codegen_flags: <defaults>
</compile_context>

<pallas_src>
import math
import functools

import jax
import jax.numpy as jnp
from jax.experimental import pallas as pl
from jax.experimental.pallas import tpu as pltpu


def _round_up(a, b):
    return ((a + b - 1) // b) * b


def _vmem_capacity_bytes():
    """Physical VMEM for the current generation (128 MiB v5e/v6e, 64 MiB v7x)."""
    try:
        cap = int(getattr(pltpu.get_tpu_info(), "vmem_capacity_bytes", 0))
        if cap > 0:
            return cap
    except Exception:
        # Capability query only; kernel compile/execute errors are never swallowed.
        pass
    return 64 << 20  # conservative default = smallest generation


# ---------------------------------------------------------------------------
# Kernel
# ---------------------------------------------------------------------------
def boosting_moe_kernel(x_ref, w1t_ref, b1_ref, w2t_ref, b2_ref,
                        wqt_ref, bq_ref, wk_ref, bk_ref, wvt_ref, bv_ref,
                        gamma_ref, beta_ref, o_ref,
                        *, n_experts_used, alpha, hidden_units, eps, approx_recip):
    f32 = jnp.float32
    wdt = wqt_ref.dtype                       # matmul operand dtype (bf16 or f32)
    x = x_ref[...].astype(f32)                # (TM, Hp); padded lanes are zero
    tm, hp = x.shape

    # q projection of the raw input (MXU, f32 accumulation)
    q = jnp.dot(x.astype(wdt), wqt_ref[...], preferred_element_type=f32) + bq_ref[...]

    # K projection folded into the query:
    #   score_i = q . k_i = q . (e_i @ Wk^T + bk) = (q @ Wk) . e_i + q . bk
    qk = jnp.dot(q.astype(wdt), wk_ref[...], preferred_element_type=f32)      # (TM, Hp)
    qbk = jnp.sum(q * bk_ref[...], axis=-1, keepdims=True)                    # (TM, 1)

    scale = 1.0 / math.sqrt(hidden_units)

    # Online-softmax state: running max / denom / fused accumulator.
    boost = x
    m = jnp.full((tm, 1), -jnp.inf, f32)
    denom = jnp.zeros((tm, 1), f32)
    fused = jnp.zeros_like(x)

    # statically-unrolled boosting loop over the experts used so far (small)
    for idx in range(n_experts_used):
        h = jnp.dot(boost.astype(wdt), w1t_ref[idx], preferred_element_type=f32)
        h = jnp.maximum(h + b1_ref[idx], 0.0)                                  # ReLU
        e = jnp.dot(h.astype(wdt), w2t_ref[idx], preferred_element_type=f32)
        e = e + b2_ref[idx]
        boost = boost + alpha * e

        # only the V projection needs an MXU matmul per expert now
        v = jnp.dot(e.astype(wdt), wvt_ref[...], preferred_element_type=f32) + bv_ref[...]
        s = (jnp.sum(qk * e, axis=-1, keepdims=True) + qbk) * scale            # (TM, 1)

        m_new = jnp.maximum(m, s)
        corr = jnp.exp(m - m_new)
        p = jnp.exp(s - m_new)
        denom = denom * corr + p
        fused = fused * corr + p * v
        m = m_new

    if approx_recip:
        fused = fused * pl.reciprocal(denom, approx=True)   # EUP slot, ~free
    else:
        fused = fused / denom                                # exact path (f32 check)

    # residual + LayerNorm over the *real* hidden axis. Padded lanes of y are
    # exactly zero, so the full-width mean / H is correct; the variance is
    # two-pass and masked to the real lanes (avoids E[y^2]-mean^2 cancellation).
    y = x + fused
    inv_h = 1.0 / hidden_units
    mean = jnp.sum(y, axis=-1, keepdims=True) * inv_h
    d = y - mean
    lane = jax.lax.broadcasted_iota(jnp.int32, (1, hp), 1)
    dm = jnp.where(lane < hidden_units, d, 0.0)
    var = jnp.sum(dm * dm, axis=-1, keepdims=True) * inv_h
    out = d * jax.lax.rsqrt(var + eps) * gamma_ref[...] + beta_ref[...]
    o_ref[...] = out.astype(o_ref.dtype)


# ---------------------------------------------------------------------------
# One-time weight preparation (hoisted out of the per-forward path)
# ---------------------------------------------------------------------------
def prepare_boosting_moe_params(params, *, current_expert_idx, alpha=0.5,
                                eps=1e-5, weight_dtype=jnp.bfloat16):
    """Transpose, zero-pad (H->Hp, De->Dep multiples of 128) and cast matmul
    weights to `weight_dtype`. Call once; reuse every forward."""
    H = params["wq"].shape[0]
    De = params["w1"].shape[1]
    n_used = current_expert_idx + 1
    Hp = _round_up(H, 128)
    Dep = _round_up(De, 128)

    def pad_to(a, shape):
        return jnp.pad(a, [(0, t - s) for s, t in zip(a.shape, shape)])

    w1t = pad_to(jnp.transpose(params["w1"][:n_used], (0, 2, 1)), (n_used, Hp, Dep))
    b1 = pad_to(params["b1"][:n_used], (n_used, 1, Dep))
    w2t = pad_to(jnp.transpose(params["w2"][:n_used], (0, 2, 1)), (n_used, Dep, Hp))
    b2 = pad_to(params["b2"][:n_used], (n_used, 1, Hp))
    wqt = pad_to(params["wq"].T, (Hp, Hp))
    bq = pad_to(params["bq"], (1, Hp))
    wk = pad_to(params["wk"], (Hp, Hp))          # NOT transposed: used as q @ Wk
    bk = pad_to(params["bk"], (1, Hp))
    wvt = pad_to(params["wv"].T, (Hp, Hp))
    bv = pad_to(params["bv"], (1, Hp))
    gamma = pad_to(params["gamma"], (1, Hp))
    beta = pad_to(params["beta"], (1, Hp))

    wdt = jnp.dtype(weight_dtype)
    return {
        "n_used": n_used, "alpha": float(alpha), "eps": float(eps),
        "h": H, "hp": Hp, "dep": Dep,
        "approx_recip": bool(wdt != jnp.dtype(jnp.float32)),
        # MXU operands in the (possibly reduced) weight dtype
        "w1t": w1t.astype(wdt), "w2t": w2t.astype(wdt),
        "wqt": wqt.astype(wdt), "wk": wk.astype(wdt), "wvt": wvt.astype(wdt),
        # biases / LayerNorm params stay f32 (all VPU work stays f32)
        "b1": b1.astype(jnp.float32), "b2": b2.astype(jnp.float32),
        "bq": bq.astype(jnp.float32), "bk": bk.astype(jnp.float32),
        "bv": bv.astype(jnp.float32),
        "gamma": gamma.astype(jnp.float32), "beta": beta.astype(jnp.float32),
    }


# ---------------------------------------------------------------------------
# Forward wrapper
# ---------------------------------------------------------------------------
def boosting_moe_forward(x, prepared, *, block_m=512):
    """x: (B, S, H) f32. `prepared` comes from prepare_boosting_moe_params.
    block_m is the token tile (kept a multiple of 128; sweep 256-1024 on the
    128 MiB generations)."""
    B, S, H = x.shape
    assert H == prepared["h"]
    N = B * S
    Hp, Dep, n_used = prepared["hp"], prepared["dep"], prepared["n_used"]

    # token tile: multiple of 128, clamped so the grid has >=2 steps when N
    # allows it (megacore sharding on v7x).
    half = _round_up(max((N + 1) // 2, 1), 128)
    bm = max(128, min(_round_up(block_m, 128), half))
    Np = _round_up(N, bm)
    grid = (Np // bm,)

    x2 = jnp.pad(x.reshape(N, H), ((0, Np - N), (0, Hp - H)))

    weights = (prepared["w1t"], prepared["b1"], prepared["w2t"], prepared["b2"],
               prepared["wqt"], prepared["bq"], prepared["wk"], prepared["bk"],
               prepared["wvt"], prepared["bv"], prepared["gamma"], prepared["beta"])

    # --- generation-aware VMEM budget: 80% of physical, never below default ---
    vmem_cap = _vmem_capacity_bytes()                 # 128 MiB v5e/v6e, 64 MiB v7x
    weight_bytes = sum(int(w.size) * w.dtype.itemsize for w in weights)
    io_bytes = 2 * 2 * bm * Hp * x2.dtype.itemsize    # double-buffered x/out tiles
    live_bytes = bm * (9 * Hp + Dep) * 4              # f32 temporaries per row
    need = 2 * weight_bytes + io_bytes + live_bytes + (4 << 20)
    budget = int(vmem_cap * 4 // 5)                   # ~20% headroom for Mosaic scratch
    vmem_limit = int(min(max(need, 32 << 20), budget))
    # TODO(synk): if 2*weight_bytes alone ever exceeds `budget` (very large Hp/Dep
    # or many experts), stream w1t/w2t per expert via memory_space=pl.ANY + manual
    # make_async_copy double-buffering instead of keeping every expert resident.

    # advisory cost estimate so XLA schedules the surrounding pad/reshape well
    flops = Np * (n_used * (4 * Hp * Dep + 2 * Hp * Hp) + 4 * Hp * Hp)
    cost = pl.CostEstimate(
        flops=int(flops),
        transcendentals=int(Np * (2 * n_used + 2)),
        bytes_accessed=int(2 * Np * Hp * x2.dtype.itemsize + weight_bytes))

    kernel = functools.partial(
        boosting_moe_kernel,
        n_experts_used=n_used, alpha=prepared["alpha"],
        hidden_units=H, eps=prepared["eps"],
        approx_recip=prepared["approx_recip"])

    out = pl.pallas_call(
        kernel,
        out_shape=jax.ShapeDtypeStruct((Np, Hp), x.dtype),
        grid=grid,
        in_specs=[pl.BlockSpec((bm, Hp), lambda i: (i, 0))]
                 + [pl.BlockSpec(w.shape, lambda i, _nd=w.ndim: (0,) * _nd)
                    for w in weights],
        out_specs=pl.BlockSpec((bm, Hp), lambda i: (i, 0)),
        compiler_params=pltpu.CompilerParams(
            dimension_semantics=("parallel",),
            vmem_limit_bytes=vmem_limit),
        cost_estimate=cost,
    )(x2, *weights)

    # TODO(synk): if this layer is stacked, keep activations in the padded
    # (Np, Hp) layout between calls to avoid the extra pad/slice HBM passes.
    return out[:N, :H].reshape(B, S, H)


# ---------------------------------------------------------------------------
# Pure-JAX reference (mirrors the PyTorch forward; dropout = identity)
# ---------------------------------------------------------------------------
def reference_forward(x, params, *, current_expert_idx, alpha=0.5, eps=1e-5):
    H = x.shape[-1]
    boost = x
    outs = []
    for idx in range(current_expert_idx + 1):
        h = jax.nn.relu(boost @ params["w1"][idx].T + params["b1"][idx, 0])
        e = h @ params["w2"][idx].T + params["b2"][idx, 0]
        boost = boost + alpha * e
        outs.append(e)
    stacked = jnp.stack(outs, axis=2)                          # (B,S,n,H)
    q = (x @ params["wq"].T + params["bq"][0])[..., None, :]   # (B,S,1,H)
    k = stacked @ params["wk"].T + params["bk"][0]
    v = stacked @ params["wv"].T + params["bv"][0]
    scores = jnp.einsum("bsoh,bsnh->bson", q, k) / math.sqrt(H)
    w = jax.nn.softmax(scores, axis=-1)
    fused = jnp.einsum("bson,bsnh->bsoh", w, v)[:, :, 0, :]
    y = x + fused
    mean = y.mean(-1, keepdims=True)
    var = ((y - mean) ** 2).mean(-1, keepdims=True)
    return (y - mean) / jnp.sqrt(var + eps) * params["gamma"][0] + params["beta"][0]


def init_params(key, hidden_units, num_experts, expert_hidden_dim):
    ks = jax.random.split(key, 10)

    def linear_w(k, fan_in, shape):
        bound = 1.0 / math.sqrt(fan_in)
        return jax.random.uniform(k, shape, jnp.float32, -bound, bound)

    H, E, De = hidden_units, num_experts, expert_hidden_dim
    return {
        "w1": linear_w(ks[0], H, (E, De, H)),
        "b1": linear_w(ks[1], H, (E, 1, De)),
        "w2": linear_w(ks[2], De, (E, H, De)),
        "b2": linear_w(ks[3], De, (E, 1, H)),
        "wq": linear_w(ks[4], H, (H, H)),
        "bq": linear_w(ks[5], H, (1, H)),
        "wk": linear_w(ks[6], H, (H, H)),
        "bk": linear_w(ks[7], H, (1, H)),
        "wv": linear_w(ks[8], H, (H, H)),
        "bv": linear_w(ks[9], H, (1, H)),
        "gamma": jnp.ones((1, H), jnp.float32),
        "beta": jnp.zeros((1, H), jnp.float32),
    }


if __name__ == "__main__":
    B, S, H = 2, 8, 32
    num_experts, expert_hidden_dim = 4, 64
    current_expert_idx = 2   # use experts 0..2

    key = jax.random.PRNGKey(0)
    kx, kp = jax.random.split(key)
    x = jax.random.normal(kx, (B, S, H), jnp.float32)
    params = init_params(kp, H, num_experts, expert_hidden_dim)

    ref = reference_forward(x, params, current_expert_idx=current_expert_idx)

    # 1) exact-semantics check: f32 weights, exact reciprocal, tight tolerance
    prep_f32 = prepare_boosting_moe_params(
        params, current_expert_idx=current_expert_idx, weight_dtype=jnp.float32)
    out_f32 = jax.block_until_ready(boosting_moe_forward(x, prep_f32))
    assert out_f32.shape == (B, S, H)
    assert jnp.allclose(out_f32, ref, atol=1e-4, rtol=1e-4), "f32 kernel mismatch vs reference"

    # 2) default perf path: bf16 matmul operands, f32 accumulation / softmax / LN
    prep_bf16 = prepare_boosting_moe_params(
        params, current_expert_idx=current_expert_idx, weight_dtype=jnp.bfloat16)
    out_bf16 = jax.block_until_ready(boosting_moe_forward(x, prep_bf16))
    assert out_bf16.shape == (B, S, H)
    assert jnp.allclose(out_bf16, ref, atol=5e-2, rtol=5e-2), "bf16 kernel drifted too far"

    print("KERNEL_OK")
</pallas_src>

<mosaic_0001>
module attributes {stable_mosaic.version = 11 : i64} {
  func.func @boosting_moe_kernel(%arg0: i32, %arg1: memref<128x128xf32, #tpu.memory_space<vmem>>, %arg2: memref<3x128x128xf32, #tpu.memory_space<vmem>>, %arg3: memref<3x1x128xf32, #tpu.memory_space<vmem>>, %arg4: memref<3x128x128xf32, #tpu.memory_space<vmem>>, %arg5: memref<3x1x128xf32, #tpu.memory_space<vmem>>, %arg6: memref<128x128xf32, #tpu.memory_space<vmem>>, %arg7: memref<1x128xf32, #tpu.memory_space<vmem>>, %arg8: memref<128x128xf32, #tpu.memory_space<vmem>>, %arg9: memref<1x128xf32, #tpu.memory_space<vmem>>, %arg10: memref<128x128xf32, #tpu.memory_space<vmem>>, %arg11: memref<1x128xf32, #tpu.memory_space<vmem>>, %arg12: memref<1x128xf32, #tpu.memory_space<vmem>>, %arg13: memref<1x128xf32, #tpu.memory_space<vmem>>, %arg14: memref<128x128xf32, #tpu.memory_space<vmem>>) attributes {dimension_semantics = [#tpu.dimension_semantics<parallel>], iteration_bounds = array<i64: 1>, scalar_prefetch = 0 : i64, scratch_operands = 0 : i64, tpu.core_type = #tpu.core_type<tc>, window_params = [{transform_indices = @transform_0, window_bounds = array<i64: 128, 128>}, {pipeline_mode = #tpu.pipeline_mode<synchronous>, transform_indices = @transform_1, window_bounds = array<i64: 3, 128, 128>}, {pipeline_mode = #tpu.pipeline_mode<synchronous>, transform_indices = @transform_2, window_bounds = array<i64: 3, 1, 128>}, {pipeline_mode = #tpu.pipeline_mode<synchronous>, transform_indices = @transform_3, window_bounds = array<i64: 3, 128, 128>}, {pipeline_mode = #tpu.pipeline_mode<synchronous>, transform_indices = @transform_4, window_bounds = array<i64: 3, 1, 128>}, {pipeline_mode = #tpu.pipeline_mode<synchronous>, transform_indices = @transform_5, window_bounds = array<i64: 128, 128>}, {pipeline_mode = #tpu.pipeline_mode<synchronous>, transform_indices = @transform_6, window_bounds = array<i64: 1, 128>}, {pipeline_mode = #tpu.pipeline_mode<synchronous>, transform_indices = @transform_7, window_bounds = array<i64: 128, 128>}, {pipeline_mode = #tpu.pipeline_mode<synchronous>, transform_indices = @transform_8, window_bounds = array<i64: 1, 128>}, {pipeline_mode = #tpu.pipeline_mode<synchronous>, transform_indices = @transform_9, window_bounds = array<i64: 128, 128>}, {pipeline_mode = #tpu.pipeline_mode<synchronous>, transform_indices = @transform_10, window_bounds = array<i64: 1, 128>}, {pipeline_mode = #tpu.pipeline_mode<synchronous>, transform_indices = @transform_11, window_bounds = array<i64: 1, 128>}, {pipeline_mode = #tpu.pipeline_mode<synchronous>, transform_indices = @transform_12, window_bounds = array<i64: 1, 128>}, {transform_indices = @transform_13, window_bounds = array<i64: 128, 128>}]} {
    %c0 = arith.constant 0 : index
    %c0_0 = arith.constant 0 : index
    %0 = vector.load %arg1[%c0, %c0_0] : memref<128x128xf32, #tpu.memory_space<vmem>>, vector<128x128xf32>
    %c0_1 = arith.constant 0 : index
    %c0_2 = arith.constant 0 : index
    %1 = vector.load %arg6[%c0_1, %c0_2] : memref<128x128xf32, #tpu.memory_space<vmem>>, vector<128x128xf32>
    %cst = arith.constant dense<0.000000e+00> : vector<128x128xf32>
    %2 = tpu.matmul %0, %1, %cst {dimension_numbers = #tpu.dot_dimension_numbers<[1], [0], [0], [1], [0, 0, 1, 1], [], []>} : vector<128x128xf32>, vector<128x128xf32>, vector<128x128xf32> -> vector<128x128xf32>
    %c0_3 = arith.constant 0 : index
    %c0_4 = arith.constant 0 : index
    %3 = vector.load %arg7[%c0_3, %c0_4] : memref<1x128xf32, #tpu.memory_space<vmem>>, vector<1x128xf32>
    %4 = vector.broadcast %3 : vector<1x128xf32> to vector<128x128xf32>
    %5 = arith.addf %2, %4 : vector<128x128xf32>
    %c0_5 = arith.constant 0 : index
    %c0_6 = arith.constant 0 : index
    %6 = vector.load %arg8[%c0_5, %c0_6] : memref<128x128xf32, #tpu.memory_space<vmem>>, vector<128x128xf32>
    %cst_7 = arith.constant dense<0.000000e+00> : vector<128x128xf32>
    %7 = tpu.matmul %5, %6, %cst_7 {dimension_numbers = #tpu.dot_dimension_numbers<[1], [0], [0], [1], [0, 0, 1, 1], [], []>} : vector<128x128xf32>, vector<128x128xf32>, vector<128x128xf32> -> vector<128x128xf32>
    %c0_8 = arith.constant 0 : index
    %c0_9 = arith.constant 0 : index
    %8 = vector.load %arg9[%c0_8, %c0_9] : memref<1x128xf32, #tpu.memory_space<vmem>>, vector<1x128xf32>
    %9 = vector.broadcast %8 : vector<1x128xf32> to vector<128x128xf32>
    %10 = arith.mulf %5, %9 : vector<128x128xf32>
    %cst_10 = arith.constant dense<0.000000e+00> : vector<128xf32>
    %11 = vector.multi_reduction <add>, %10, %cst_10 [1] : vector<128x128xf32> to vector<128xf32>
    %12 = vector.shape_cast %11 : vector<128xf32> to vector<128x1xf32>
    %cst_11 = arith.constant 0xFF800000 : f32
    %13 = vector.broadcast %cst_11 : f32 to vector<128x1xf32>
    %cst_12 = arith.constant 0.000000e+00 : f32
    %14 = vector.broadcast %cst_12 : f32 to vector<128x1xf32>
    %cst_13 = arith.constant 0.000000e+00 : f32
    %15 = vector.broadcast %cst_13 : f32 to vector<128x128xf32>
    %c0_14 = arith.constant 0 : index
    %c0_15 = arith.constant 0 : index
    %c0_16 = arith.constant 0 : index
    %16 = vector.load %arg2[%c0_14, %c0_15, %c0_16] : memref<3x128x128xf32, #tpu.memory_space<vmem>>, vector<1x128x128xf32>
    %17 = vector.shape_cast %16 : vector<1x128x128xf32> to vector<128x128xf32>
    %cst_17 = arith.constant dense<0.000000e+00> : vector<128x128xf32>
    %18 = tpu.matmul %0, %17, %cst_17 {dimension_numbers = #tpu.dot_dimension_numbers<[1], [0], [0], [1], [0, 0, 1, 1], [], []>} : vector<128x128xf32>, vector<128x128xf32>, vector<128x128xf32> -> vector<128x128xf32>
    %c0_18 = arith.constant 0 : index
    %c0_19 = arith.constant 0 : index
    %c0_20 = arith.constant 0 : index
    %19 = vector.load %arg3[%c0_18, %c0_19, %c0_20] : memref<3x1x128xf32, #tpu.memory_space<vmem>>, vector<1x1x128xf32>
    %20 = vector.shape_cast %19 : vector<1x1x128xf32> to vector<1x128xf32>
    %21 = vector.broadcast %20 : vector<1x128xf32> to vector<128x128xf32>
    %22 = arith.addf %18, %21 : vector<128x128xf32>
    %cst_21 = arith.constant 0.000000e+00 : f32
    %23 = vector.broadcast %cst_21 : f32 to vector<128x128xf32>
    %24 = arith.maximumf %22, %23 : vector<128x128xf32>
    %c0_22 = arith.constant 0 : index
    %c0_23 = arith.constant 0 : index
    %c0_24 = arith.constant 0 : index
    %25 = vector.load %arg4[%c0_22, %c0_23, %c0_24] : memref<3x128x128xf32, #tpu.memory_space<vmem>>, vector<1x128x128xf32>
    %26 = vector.shape_cast %25 : vector<1x128x128xf32> to vector<128x128xf32>
    %cst_25 = arith.constant dense<0.000000e+00> : vector<128x128xf32>
    %27 = tpu.matmul %24, %26, %cst_25 {dimension_numbers = #tpu.dot_dimension_numbers<[1], [0], [0], [1], [0, 0, 1, 1], [], []>} : vector<128x128xf32>, vector<128x128xf32>, vector<128x128xf32> -> vector<128x128xf32>
    %c0_26 = arith.constant 0 : index
    %c0_27 = arith.constant 0 : index
    %c0_28 = arith.constant 0 : index
    %28 = vector.load %arg5[%c0_26, %c0_27, %c0_28] : memref<3x1x128xf32, #tpu.memory_space<vmem>>, vector<1x1x128xf32>
    %29 = vector.shape_cast %28 : vector<1x1x128xf32> to vector<1x128xf32>
    %30 = vector.broadcast %29 : vector<1x128xf32> to vector<128x128xf32>
    %31 = arith.addf %27, %30 : vector<128x128xf32>
    %cst_29 = arith.constant 5.000000e-01 : f32
    %32 = vector.broadcast %cst_29 : f32 to vector<128x128xf32>
    %33 = arith.mulf %32, %31 : vector<128x128xf32>
    %34 = arith.addf %0, %33 : vector<128x128xf32>
    %c0_30 = arith.constant 0 : index
    %c0_31 = arith.constant 0 : index
    %35 = vector.load %arg10[%c0_30, %c0_31] : memref<128x128xf32, #tpu.memory_space<vmem>>, vector<128x128xf32>
    %cst_32 = arith.constant dense<0.000000e+00> : vector<128x128xf32>
    %36 = tpu.matmul %31, %35, %cst_32 {dimension_numbers = #tpu.dot_dimension_numbers<[1], [0], [0], [1], [0, 0, 1, 1], [], []>} : vector<128x128xf32>, vector<128x128xf32>, vector<128x128xf32> -> vector<128x128xf32>
    %c0_33 = arith.constant 0 : index
    %c0_34 = arith.constant 0 : index
    %37 = vector.load %arg11[%c0_33, %c0_34] : memref<1x128xf32, #tpu.memory_space<vmem>>, vector<1x128xf32>
    %38 = vector.broadcast %37 : vector<1x128xf32> to vector<128x128xf32>
    %39 = arith.addf %36, %38 : vector<128x128xf32>
    %40 = arith.mulf %7, %31 : vector<128x128xf32>
    %cst_35 = arith.constant dense<0.000000e+00> : vector<128xf32>
    %41 = vector.multi_reduction <add>, %40, %cst_35 [1] : vector<128x128xf32> to vector<128xf32>
    %42 = vector.shape_cast %41 : vector<128xf32> to vector<128x1xf32>
    %43 = arith.addf %42, %12 : vector<128x1xf32>
    %cst_36 = arith.constant 0.176776692 : f32
    %44 = vector.broadcast %cst_36 : f32 to vector<128x1xf32>
    %45 = arith.mulf %43, %44 : vector<128x1xf32>
    %46 = arith.maximumf %13, %45 : vector<128x1xf32>
    %47 = arith.subf %13, %46 : vector<128x1xf32>
    %48 = math.exp %47 : vector<128x1xf32>
    %49 = arith.subf %45, %46 : vector<128x1xf32>
    %50 = math.exp %49 : vector<128x1xf32>
    %51 = arith.mulf %14, %48 : vector<128x1xf32>
    %52 = arith.addf %51, %50 : vector<128x1xf32>
    %53 = vector.broadcast %48 : vector<128x1xf32> to vector<128x128xf32>
    %54 = arith.mulf %15, %53 : vector<128x128xf32>
    %55 = vector.broadcast %50 : vector<128x1xf32> to vector<128x128xf32>
    %56 = arith.mulf %55, %39 : vector<128x128xf32>
    %57 = arith.addf %54, %56 : vector<128x128xf32>
    %c1 = arith.constant 1 : index
    %c0_37 = arith.constant 0 : index
    %c0_38 = arith.constant 0 : index
    %58 = vector.load %arg2[%c1, %c0_37, %c0_38] : memref<3x128x128xf32, #tpu.memory_space<vmem>>, vector<1x128x128xf32>
    %59 = vector.shape_cast %58 : vector<1x128x128xf32> to vector<128x128xf32>
    %cst_39 = arith.constant dense<0.000000e+00> : vector<128x128xf32>
    %60 = tpu.matmul %34, %59, %cst_39 {dimension_numbers = #tpu.dot_dimension_numbers<[1], [0], [0], [1], [0, 0, 1, 1], [], []>} : vector<128x128xf32>, vector<128x128xf32>, vector<128x128xf32> -> vector<128x128xf32>
    %c1_40 = arith.constant 1 : index
    %c0_41 = arith.constant 0 : index
    %c0_42 = arith.constant 0 : index
    %61 = vector.load %arg3[%c1_40, %c0_41, %c0_42] : memref<3x1x128xf32, #tpu.memory_space<vmem>>, vector<1x1x128xf32>
    %62 = vector.shape_cast %61 : vector<1x1x128xf32> to vector<1x128xf32>
    %63 = vector.broadcast %62 : vector<1x128xf32> to vector<128x128xf32>
    %64 = arith.addf %60, %63 : vector<128x128xf32>
    %cst_43 = arith.constant 0.000000e+00 : f32
    %65 = vector.broadcast %cst_43 : f32 to vector<128x128xf32>
    %66 = arith.maximumf %64, %65 : vector<128x128xf32>
    %c1_44 = arith.constant 1 : index
    %c0_45 = arith.constant 0 : index
    %c0_46 = arith.constant 0 : index
    %67 = vector.load %arg4[%c1_44, %c0_45, %c0_46] : memref<3x128x128xf32, #tpu.memory_space<vmem>>, vector<1x128x128xf32>
    %68 = vector.shape_cast %67 : vector<1x128x128xf32> to vector<128x128xf32>
    %cst_47 = arith.constant dense<0.000000e+00> : vector<128x128xf32>
    %69 = tpu.matmul %66, %68, %cst_47 {dimension_numbers = #tpu.dot_dimension_numbers<[1], [0], [0], [1], [0, 0, 1, 1], [], []>} : vector<128x128xf32>, vector<128x128xf32>, vector<128x128xf32> -> vector<128x128xf32>
    %c1_48 = arith.constant 1 : index
    %c0_49 = arith.constant 0 : index
    %c0_50 = arith.constant 0 : index
    %70 = vector.load %arg5[%c1_48, %c0_49, %c0_50] : memref<3x1x128xf32, #tpu.memory_space<vmem>>, vector<1x1x128xf32>
    %71 = vector.shape_cast %70 : vector<1x1x128xf32> to vector<1x128xf32>
    %72 = vector.broadcast %71 : vector<1x128xf32> to vector<128x128xf32>
    %73 = arith.addf %69, %72 : vector<128x128xf32>
    %cst_51 = arith.constant 5.000000e-01 : f32
    %74 = vector.broadcast %cst_51 : f32 to vector<128x128xf32>
    %75 = arith.mulf %74, %73 : vector<128x128xf32>
    %76 = arith.addf %34, %75 : vector<128x128xf32>
    %c0_52 = arith.constant 0 : index
    %c0_53 = arith.constant 0 : index
    %77 = vector.load %arg10[%c0_52, %c0_53] : memref<128x128xf32, #tpu.memory_space<vmem>>, vector<128x128xf32>
    %cst_54 = arith.constant dense<0.000000e+00> : vector<128x128xf32>
    %78 = tpu.matmul %73, %77, %cst_54 {dimension_numbers = #tpu.dot_dimension_numbers<[1], [0], [0], [1], [0, 0, 1, 1], [], []>} : vector<128x128xf32>, vector<128x128xf32>, vector<128x128xf32> -> vector<128x128xf32>
    %c0_55 = arith.constant 0 : index
    %c0_56 = arith.constant 0 : index
    %79 = vector.load %arg11[%c0_55, %c0_56] : memref<1x128xf32, #tpu.memory_space<vmem>>, vector<1x128xf32>
    %80 = vector.broadcast %79 : vector<1x128xf32> to vector<128x128xf32>
    %81 = arith.addf %78, %80 : vector<128x128xf32>
    %82 = arith.mulf %7, %73 : vector<128x128xf32>
    %cst_57 = arith.constant dense<0.000000e+00> : vector<128xf32>
    %83 = vector.multi_reduction <add>, %82, %cst_57 [1] : vector<128x128xf32> to vector<128xf32>
    %84 = vector.shape_cast %83 : vector<128xf32> to vector<128x1xf32>
    %85 = arith.addf %84, %12 : vector<128x1xf32>
    %cst_58 = arith.constant 0.176776692 : f32
    %86 = vector.broadcast %cst_58 : f32 to vector<128x1xf32>
    %87 = arith.mulf %85, %86 : vector<128x1xf32>
    %88 = arith.maximumf %46, %87 : vector<128x1xf32>
    %89 = arith.subf %46, %88 : vector<128x1xf32>
    %90 = math.exp %89 : vector<128x1xf32>
    %91 = arith.subf %87, %88 : vector<128x1xf32>
    %92 = math.exp %91 : vector<128x1xf32>
    %93 = arith.mulf %52, %90 : vector<128x1xf32>
    %94 = arith.addf %93, %92 : vector<128x1xf32>
    %95 = vector.broadcast %90 : vector<128x1xf32> to vector<128x128xf32>
    %96 = arith.mulf %57, %95 : vector<128x128xf32>
    %97 = vector.broadcast %92 : vector<128x1xf32> to vector<128x128xf32>
    %98 = arith.mulf %97, %81 : vector<128x128xf32>
    %99 = arith.addf %96, %98 : vector<128x128xf32>
    %c2 = arith.constant 2 : index
    %c0_59 = arith.constant 0 : index
    %c0_60 = arith.constant 0 : index
    %100 = vector.load %arg2[%c2, %c0_59, %c0_60] : memref<3x128x128xf32, #tpu.memory_space<vmem>>, vector<1x128x128xf32>
    %101 = vector.shape_cast %100 : vector<1x128x128xf32> to vector<128x128xf32>
    %cst_61 = arith.constant dense<0.000000e+00> : vector<128x128xf32>
    %102 = tpu.matmul %76, %101, %cst_61 {dimension_numbers = #tpu.dot_dimension_numbers<[1], [0], [0], [1], [0, 0, 1, 1], [], []>} : vector<128x128xf32>, vector<128x128xf32>, vector<128x128xf32> -> vector<128x128xf32>
    %c2_62 = arith.constant 2 : index
    %c0_63 = arith.constant 0 : index
    %c0_64 = arith.constant 0 : index
    %103 = vector.load %arg3[%c2_62, %c0_63, %c0_64] : memref<3x1x128xf32, #tpu.memory_space<vmem>>, vector<1x1x128xf32>
    %104 = vector.shape_cast %103 : vector<1x1x128xf32> to vector<1x128xf32>
    %105 = vector.broadcast %104 : vector<1x128xf32> to vector<128x128xf32>
    %106 = arith.addf %102, %105 : vector<128x128xf32>
    %cst_65 = arith.constant 0.000000e+00 : f32
    %107 = vector.broadcast %cst_65 : f32 to vector<128x128xf32>
    %108 = arith.maximumf %106, %107 : vector<128x128xf32>
    %c2_66 = arith.constant 2 : index
    %c0_67 = arith.constant 0 : index
    %c0_68 = arith.constant 0 : index
    %109 = vector.load %arg4[%c2_66, %c0_67, %c0_68] : memref<3x128x128xf32, #tpu.memory_space<vmem>>, vector<1x128x128xf32>
    %110 = vector.shape_cast %109 : vector<1x128x128xf32> to vector<128x128xf32>
    %cst_69 = arith.constant dense<0.000000e+00> : vector<128x128xf32>
    %111 = tpu.matmul %108, %110, %cst_69 {dimension_numbers = #tpu.dot_dimension_numbers<[1], [0], [0], [1], [0, 0, 1, 1], [], []>} : vector<128x128xf32>, vector<128x128xf32>, vector<128x128xf32> -> vector<128x128xf32>
    %c2_70 = arith.constant 2 : index
    %c0_71 = arith.constant 0 : index
    %c0_72 = arith.constant 0 : index
    %112 = vector.load %arg5[%c2_70, %c0_71, %c0_72] : memref<3x1x128xf32, #tpu.memory_space<vmem>>, vector<1x1x128xf32>
    %113 = vector.shape_cast %112 : vector<1x1x128xf32> to vector<1x128xf32>
    %114 = vector.broadcast %113 : vector<1x128xf32> to vector<128x128xf32>
    %115 = arith.addf %111, %114 : vector<128x128xf32>
    %c0_73 = arith.constant 0 : index
    %c0_74 = arith.constant 0 : index
    %116 = vector.load %arg10[%c0_73, %c0_74] : memref<128x128xf32, #tpu.memory_space<vmem>>, vector<128x128xf32>
    %cst_75 = arith.constant dense<0.000000e+00> : vector<128x128xf32>
    %117 = tpu.matmul %115, %116, %cst_75 {dimension_numbers = #tpu.dot_dimension_numbers<[1], [0], [0], [1], [0, 0, 1, 1], [], []>} : vector<128x128xf32>, vector<128x128xf32>, vector<128x128xf32> -> vector<128x128xf32>
    %c0_76 = arith.constant 0 : index
    %c0_77 = arith.constant 0 : index
    %118 = vector.load %arg11[%c0_76, %c0_77] : memref<1x128xf32, #tpu.memory_space<vmem>>, vector<1x128xf32>
    %119 = vector.broadcast %118 : vector<1x128xf32> to vector<128x128xf32>
    %120 = arith.addf %117, %119 : vector<128x128xf32>
    %121 = arith.mulf %7, %115 : vector<128x128xf32>
    %cst_78 = arith.constant dense<0.000000e+00> : vector<128xf32>
    %122 = vector.multi_reduction <add>, %121, %cst_78 [1] : vector<128x128xf32> to vector<128xf32>
    %123 = vector.shape_cast %122 : vector<128xf32> to vector<128x1xf32>
    %124 = arith.addf %123, %12 : vector<128x1xf32>
    %cst_79 = arith.constant 0.176776692 : f32
    %125 = vector.broadcast %cst_79 : f32 to vector<128x1xf32>
    %126 = arith.mulf %124, %125 : vector<128x1xf32>
    %127 = arith.maximumf %88, %126 : vector<128x1xf32>
    %128 = arith.subf %88, %127 : vector<128x1xf32>
    %129 = math.exp %128 : vector<128x1xf32>
    %130 = arith.subf %126, %127 : vector<128x1xf32>
    %131 = math.exp %130 : vector<128x1xf32>
    %132 = arith.mulf %94, %129 : vector<128x1xf32>
    %133 = arith.addf %132, %131 : vector<128x1xf32>
    %134 = vector.broadcast %129 : vector<128x1xf32> to vector<128x128xf32>
    %135 = arith.mulf %99, %134 : vector<128x128xf32>
    %136 = vector.broadcast %131 : vector<128x1xf32> to vector<128x128xf32>
    %137 = arith.mulf %136, %120 : vector<128x128xf32>
    %138 = arith.addf %135, %137 : vector<128x128xf32>
    %139 = vector.broadcast %133 : vector<128x1xf32> to vector<128x128xf32>
    %140 = arith.divf %138, %139 : vector<128x128xf32>
    %141 = arith.addf %0, %140 : vector<128x128xf32>
    %cst_80 = arith.constant dense<0.000000e+00> : vector<128xf32>
    %142 = vector.multi_reduction <add>, %141, %cst_80 [1] : vector<128x128xf32> to vector<128xf32>
    %143 = vector.shape_cast %142 : vector<128xf32> to vector<128x1xf32>
    %cst_81 = arith.constant 3.125000e-02 : f32
    %144 = vector.broadcast %cst_81 : f32 to vector<128x1xf32>
    %145 = arith.mulf %143, %144 : vector<128x1xf32>
    %146 = vector.broadcast %145 : vector<128x1xf32> to vector<128x128xf32>
    %147 = arith.subf %141, %146 : vector<128x128xf32>
    %148 = tpu.iota {dimensions = array<i32: 1>} : vector<1x128xi32>
    %c32_i32 = arith.constant 32 : i32
    %149 = vector.broadcast %c32_i32 : i32 to vector<1x128xi32>
    %150 = arith.cmpi slt, %148, %149 : vector<1x128xi32>
    %cst_82 = arith.constant 0.000000e+00 : f32
    %151 = vector.shape_cast %150 : vector<1x128xi1> to vector<1x128xi1>
    %152 = vector.broadcast %151 : vector<1x128xi1> to vector<128x128xi1>
    %153 = vector.broadcast %cst_82 : f32 to vector<128x128xf32>
    %154 = arith.select %152, %147, %153 : vector<128x128xi1>, vector<128x128xf32>
    %155 = arith.mulf %154, %154 : vector<128x128xf32>
    %cst_83 = arith.constant dense<0.000000e+00> : vector<128xf32>
    %156 = vector.multi_reduction <add>, %155, %cst_83 [1] : vector<128x128xf32> to vector<128xf32>
    %157 = vector.shape_cast %156 : vector<128xf32> to vector<128x1xf32>
    %cst_84 = arith.constant 3.125000e-02 : f32
    %158 = vector.broadcast %cst_84 : f32 to vector<128x1xf32>
    %159 = arith.mulf %157, %158 : vector<128x1xf32>
    %cst_85 = arith.constant 9.99999974E-6 : f32
    %160 = vector.broadcast %cst_85 : f32 to vector<128x1xf32>
    %161 = arith.addf %159, %160 : vector<128x1xf32>
    %162 = math.rsqrt %161 : vector<128x1xf32>
    %163 = vector.broadcast %162 : vector<128x1xf32> to vector<128x128xf32>
    %164 = arith.mulf %147, %163 : vector<128x128xf32>
    %c0_86 = arith.constant 0 : index
    %c0_87 = arith.constant 0 : index
    %165 = vector.load %arg12[%c0_86, %c0_87] : memref<1x128xf32, #tpu.memory_space<vmem>>, vector<1x128xf32>
    %166 = vector.broadcast %165 : vector<1x128xf32> to vector<128x128xf32>
    %167 = arith.mulf %164, %166 : vector<128x128xf32>
    %c0_88 = arith.constant 0 : index
    %c0_89 = arith.constant 0 : index
    %168 = vector.load %arg13[%c0_88, %c0_89] : memref<1x128xf32, #tpu.memory_space<vmem>>, vector<1x128xf32>
    %169 = vector.broadcast %168 : vector<1x128xf32> to vector<128x128xf32>
    %170 = arith.addf %167, %169 : vector<128x128xf32>
    %c0_90 = arith.constant 0 : index
    %c0_91 = arith.constant 0 : index
    %171 = vector.load %arg14[%c0_90, %c0_91] : memref<128x128xf32, #tpu.memory_space<vmem>>, vector<128x128xf32>
    tpu.vector_store %arg14[%c0_90, %c0_91], %170 {strides = array<i32>} : memref<128x128xf32, #tpu.memory_space<vmem>>, vector<128x128xf32>,
    return
  }
  func.func @transform_0(%arg0: i32) -> (i32, i32) {
    %c0_i32 = arith.constant 0 : i32
    %c0_i32_0 = arith.constant 0 : i32
    return %arg0, %c0_i32 : i32, i32
  }
  func.func @transform_1(%arg0: i32) -> (i32, i32, i32) {
    %c0_i32 = arith.constant 0 : i32
    %c0_i32_0 = arith.constant 0 : i32
    %c0_i32_1 = arith.constant 0 : i32
    %c0_i32_2 = arith.constant 0 : i32
    return %c0_i32, %c0_i32_0, %c0_i32_1 : i32, i32, i32
  }
  func.func @transform_2(%arg0: i32) -> (i32, i32, i32) {
    %c0_i32 = arith.constant 0 : i32
    %c0_i32_0 = arith.constant 0 : i32
    %c0_i32_1 = arith.constant 0 : i32
    %c0_i32_2 = arith.constant 0 : i32
    return %c0_i32, %c0_i32_0, %c0_i32_1 : i32, i32, i32
  }
  func.func @transform_3(%arg0: i32) -> (i32, i32, i32) {
    %c0_i32 = arith.constant 0 : i32
    %c0_i32_0 = arith.constant 0 : i32
    %c0_i32_1 = arith.constant 0 : i32
    %c0_i32_2 = arith.constant 0 : i32
    return %c0_i32, %c0_i32_0, %c0_i32_1 : i32, i32, i32
  }
  func.func @transform_4(%arg0: i32) -> (i32, i32, i32) {
    %c0_i32 = arith.constant 0 : i32
    %c0_i32_0 = arith.constant 0 : i32
    %c0_i32_1 = arith.constant 0 : i32
    %c0_i32_2 = arith.constant 0 : i32
    return %c0_i32, %c0_i32_0, %c0_i32_1 : i32, i32, i32
  }
  func.func @transform_5(%arg0: i32) -> (i32, i32) {
    %c0_i32 = arith.constant 0 : i32
    %c0_i32_0 = arith.constant 0 : i32
    %c0_i32_1 = arith.constant 0 : i32
    return %c0_i32, %c0_i32_0 : i32, i32
  }
  func.func @transform_6(%arg0: i32) -> (i32, i32) {
    %c0_i32 = arith.constant 0 : i32
    %c0_i32_0 = arith.constant 0 : i32
    %c0_i32_1 = arith.constant 0 : i32
    return %c0_i32, %c0_i32_0 : i32, i32
  }
  func.func @transform_7(%arg0: i32) -> (i32, i32) {
    %c0_i32 = arith.constant 0 : i32
    %c0_i32_0 = arith.constant 0 : i32
    %c0_i32_1 = arith.constant 0 : i32
    return %c0_i32, %c0_i32_0 : i32, i32
  }
  func.func @transform_8(%arg0: i32) -> (i32, i32) {
    %c0_i32 = arith.constant 0 : i32
    %c0_i32_0 = arith.constant 0 : i32
    %c0_i32_1 = arith.constant 0 : i32
    return %c0_i32, %c0_i32_0 : i32, i32
  }
  func.func @transform_9(%arg0: i32) -> (i32, i32) {
    %c0_i32 = arith.constant 0 : i32
    %c0_i32_0 = arith.constant 0 : i32
    %c0_i32_1 = arith.constant 0 : i32
    return %c0_i32, %c0_i32_0 : i32, i32
  }
  func.func @transform_10(%arg0: i32) -> (i32, i32) {
    %c0_i32 = arith.constant 0 : i32
    %c0_i32_0 = arith.constant 0 : i32
    %c0_i32_1 = arith.constant 0 : i32
    return %c0_i32, %c0_i32_0 : i32, i32
  }
  func.func @transform_11(%arg0: i32) -> (i32, i32) {
    %c0_i32 = arith.constant 0 : i32
    %c0_i32_0 = arith.constant 0 : i32
    %c0_i32_1 = arith.constant 0 : i32
    return %c0_i32, %c0_i32_0 : i32, i32
  }
  func.func @transform_12(%arg0: i32) -> (i32, i32) {
    %c0_i32 = arith.constant 0 : i32
    %c0_i32_0 = arith.constant 0 : i32
    %c0_i32_1 = arith.constant 0 : i32
    return %c0_i32, %c0_i32_0 : i32, i32
  }
  func.func @transform_13(%arg0: i32) -> (i32, i32) {
    %c0_i32 = arith.constant 0 : i32
    %c0_i32_0 = arith.constant 0 : i32
    return %arg0, %c0_i32 : i32, i32
  }
}

</mosaic_0001>

<bundles_post_ra>
// kernel: tpu_custom_call.1
= control target key start
LH: loop header
LB: loop body
LE: loop exit
PB: predicated region body
PF: predicated region fallthrough
CT: control target
= control target key end

     0   :  { %18 = vsyncpa [#allocation3], 0  ;;  %s6924_s0 = inlined_call_operand.hbm [shape: f32[128,128], index: 0, kind: input, shape index: {}]   ;;  %s6925_s1 = inlined_call_operand.hbm [shape: f32[3,128,128], index: 1, kind: input, shape index: {}]   ;;  %s6926_s2 = inlined_call_operand.vmem [shape: f32[3,1,128], index: 2, kind: input, shape index: {}]   ;;  %s6927_s3 = inlined_call_operand.hbm [shape: f32[3,128,128], index: 3, kind: input, shape index: {}]   ;;  %s6928_s4 = inlined_call_operand.vmem [shape: f32[3,1,128], index: 4, kind: input, shape index: {}]   ;;  %s6929_s5 = inlined_call_operand.hbm [shape: f32[128,128], index: 5, kind: input, shape index: {}]   ;;  %s6930_s6 = inlined_call_operand.vmem [shape: f32[1,128], index: 6, kind: input, shape index: {}]   ;;  %s6931_s7 = inlined_call_operand.hbm [shape: f32[128,128], index: 7, kind: input, shape index: {}]   ;;  %s6932_s8 = inlined_call_operand.vmem [shape: f32[1,128], index: 8, kind: input, shape index: {}]   ;;  %s6933_s9 = inlined_call_operand.hbm [shape: f32[128,128], index: 9, kind: input, shape index: {}]   ;;  %s6934_s10 = inlined_call_operand.vmem [shape: f32[1,128], index: 10, kind: input, shape index: {}]   ;;  %s6935_s11 = inlined_call_operand.vmem [shape: f32[1,128], index: 11, kind: input, shape index: {}]   ;;  %s6936_s12 = inlined_call_operand.vmem [shape: f32[1,128], index: 12, kind: input, shape index: {}]   ;;  %s6937_s13 = inlined_call_operand.hbm [shape: f32[128,128], index: 13, kind: output, shape index: {}]  }
   0x1   :  { %19 = vsyncpa [#allocation6], 0 }
   0x2   :  { %20 = vsyncpa [#allocation9], 0 }
   0x3   :  { %21 = vsyncpa [#allocation12], 0 }
   0x4   :  { %22 = vsyncpa [#allocation4], 0  ;;  %s5021_s25 = smov [#allocation5]   ;;  %s5022_s27 = smov [#allocation8]  }
   0x5   :  { %s40_s26 = sshll.u32 %s5021_s25, 4  ;;  %s68_s28 = sshll.u32 %s5022_s27, 4  ;;  %s41_s26 = int_to_ptr.vmem [resolvable:$true] %s40_s26  ;;  %s5100_s28 = int_to_ptr.vmem [resolvable:$true] %s68_s28 }
   0x6   :  { %s4857_s14 = scalar_lea.hbm %s6925_s1, 6144 }
   0x7   :  { %p4858_p0 = scmp.ne.s32.totalorder %s6925_s1, %s4857_s14  ;;  %p4861_p1 = scmp.lt.u32.totalorder %s4857_s14, %s6925_s1 }
   0x9   :  { %p4863_p2 = pnand %p4861_p1, %p4858_p0 }
   0xb   :  { %4866 = shalt.err (!%p4863_p2)
}
   0xc   :  { %s4867_s19 = scalar_lea.vmem %s41_s26, 6144  ;;  %p4872_p4 = scmp.lt.s32.totalorder %s41_s26, %s41_s26 }
   0xd   :  { %p4868_p3 = scmp.ne.s32.totalorder %s41_s26, %s4867_s19  ;;  %p4873_p5 = scmp.lt.s32.totalorder %s4867_s19, %s4867_s19 }
   0xf   :  { %p4874_p6 = por %p4873_p5, %p4872_p4 }
  0x11   :  { %p4875_p7 = pnand %p4874_p6, %p4868_p3 }
  0x13   :  { %4878 = shalt.err (!%p4875_p7)
}
  0x14   :  { %s5023_s20 = smov 128   ;;  %s5024_s21 = smov 8  }
  0x15   :  { %46 = dma.hbm_to_vmem [thread:$0]  %s6925_s1, 6144, %s41_s26, [#allocation6], %s5023_s20, %s5023_s20, %s5024_s21  }
  0x16   :  { %s4879_s27 = scalar_lea.hbm %s6929_s5, 2048 }
  0x17   :  { %p4880_p8 = scmp.ne.s32.totalorder %s6929_s5, %s4879_s27  ;;  %p4883_p9 = scmp.lt.u32.totalorder %s4879_s27, %s6929_s5 }
  0x19   :  { %p4885_p10 = pnand %p4883_p9, %p4880_p8 }
  0x1b   :  { %4888 = shalt.err (!%p4885_p10)
}
  0x1c   :  { %s4889_s16 = scalar_lea.vmem %s5100_s28, 2048  ;;  %p4894_p12 = scmp.lt.s32.totalorder %s5100_s28, %s5100_s28 }
  0x1d   :  { %p4890_p11 = scmp.ne.s32.totalorder %s5100_s28, %s4889_s16  ;;  %p4895_p13 = scmp.lt.s32.totalorder %s4889_s16, %s4889_s16 }
  0x1f   :  { %p4896_p0 = por %p4895_p13, %p4894_p12 }
  0x21   :  { %p4897_p1 = pnand %p4896_p0, %p4890_p11 }
  0x23   :  { %4900 = shalt.err (!%p4897_p1)
}
  0x24   :  { %74 = dma.hbm_to_vmem [thread:$0]  %s6929_s5, 2048, %s5100_s28, [#allocation9], %s5023_s20, %s5023_s20, %s5024_s21  }
  0x25   :  { %s5025_s17 = smov [#allocation2]   ;;  %s5026_s19 = smov [#allocation7]  }
  0x26   :  { %s28_s18 = sshll.u32 %s5025_s17, 4  ;;  %s54_s22 = sshll.u32 %s5026_s19, 4  ;;  %s29_s18 = int_to_ptr.vmem [resolvable:$true] %s28_s18  ;;  %s5137_s22 = int_to_ptr.vmem [resolvable:$true] %s54_s22 }
  0x27   :  { %s4901_s25 = scalar_lea.hbm %s6924_s0, 2048 }
  0x28   :  { %p4902_p2 = scmp.ne.s32.totalorder %s6924_s0, %s4901_s25  ;;  %p4905_p3 = scmp.lt.u32.totalorder %s4901_s25, %s6924_s0 }
  0x2a   :  { %p4907_p4 = pnand %p4905_p3, %p4902_p2 }
  0x2c   :  { %4910 = shalt.err (!%p4907_p4)
}
  0x2d   :  { %s4911_s5 = scalar_lea.vmem %s29_s18, 2048  ;;  %p4916_p6 = scmp.lt.s32.totalorder %s29_s18, %s29_s18 }
  0x2e   :  { %p4912_p5 = scmp.ne.s32.totalorder %s29_s18, %s4911_s5  ;;  %p4917_p7 = scmp.lt.s32.totalorder %s4911_s5, %s4911_s5 }
  0x30   :  { %p4918_p8 = por %p4917_p7, %p4916_p6 }
  0x32   :  { %p4919_p9 = pnand %p4918_p8, %p4912_p5 }
  0x34   :  { %4922 = shalt.err (!%p4919_p9)
}
  0x35   :  { %34 = dma.hbm_to_vmem [thread:$0]  %s6924_s0, 2048, %s29_s18, [#allocation3], %s5023_s20, %s5023_s20, %s5024_s21  }
  0x36   :  { %s4923_s26 = scalar_lea.hbm %s6927_s3, 6144 }
  0x37   :  { %p4924_p10 = scmp.ne.s32.totalorder %s6927_s3, %s4923_s26  ;;  %p4927_p11 = scmp.lt.u32.totalorder %s4923_s26, %s6927_s3 }
  0x39   :  { %p4929_p12 = pnand %p4927_p11, %p4924_p10 }
  0x3b   :  { %4932 = shalt.err (!%p4929_p12)
}
  0x3c   :  { %s4933_s25 = scalar_lea.vmem %s5137_s22, 6144  ;;  %p4938_p0 = scmp.lt.s32.totalorder %s5137_s22, %s5137_s22 }
  0x3d   :  { %p4934_p13 = scmp.ne.s32.totalorder %s5137_s22, %s4933_s25  ;;  %p4939_p1 = scmp.lt.s32.totalorder %s4933_s25, %s4933_s25 }
  0x3f   :  { %p4940_p2 = por %p4939_p1, %p4938_p0 }
  0x41   :  { %p4941_p3 = pnand %p4940_p2, %p4934_p13 }
  0x43   :  { %4944 = shalt.err (!%p4941_p3)
}
  0x44   :  { %60 = dma.hbm_to_vmem [thread:$0]  %s6927_s3, 6144, %s5137_s22, [#allocation6], %s5023_s20, %s5023_s20, %s5024_s21  }
  0x45   :  { %s5027_s27 = smov [#allocation10]   ;;  %s5028_s30 = smov [#allocation11]  }
  0x46   :  { %s82_s29 = sshll.u32 %s5027_s27, 4  ;;  %s96_s14 = sshll.u32 %s5028_s30, 4  ;;  %s83_s29 = int_to_ptr.vmem [resolvable:$true] %s82_s29  ;;  %s5174_s14 = int_to_ptr.vmem [resolvable:$true] %s96_s14 }
  0x47   :  { %s4945_s15 = scalar_lea.hbm %s6931_s7, 2048 }
  0x48   :  { %p4946_p4 = scmp.ne.s32.totalorder %s6931_s7, %s4945_s15  ;;  %p4949_p5 = scmp.lt.u32.totalorder %s4945_s15, %s6931_s7 }
  0x4a   :  { %p4951_p6 = pnand %p4949_p5, %p4946_p4 }
  0x4c   :  { %4954 = shalt.err (!%p4951_p6)
}
  0x4d   :  { %s4955_s3 = scalar_lea.vmem %s83_s29, 2048  ;;  %p4960_p8 = scmp.lt.s32.totalorder %s83_s29, %s83_s29 }
  0x4e   :  { %p4956_p7 = scmp.ne.s32.totalorder %s83_s29, %s4955_s3  ;;  %p4961_p9 = scmp.lt.s32.totalorder %s4955_s3, %s4955_s3 }
  0x50   :  { %p4962_p10 = por %p4961_p9, %p4960_p8 }
  0x52   :  { %p4963_p11 = pnand %p4962_p10, %p4956_p7 }
  0x54   :  { %4966 = shalt.err (!%p4963_p11)
}
  0x55   :  { %88 = dma.hbm_to_vmem [thread:$0]  %s6931_s7, 2048, %s83_s29, [#allocation9], %s5023_s20, %s5023_s20, %s5024_s21  }
  0x56   :  { %s4967_s25 = scalar_lea.hbm %s6933_s9, 2048 }
  0x57   :  { %p4968_p12 = scmp.ne.s32.totalorder %s6933_s9, %s4967_s25  ;;  %p4971_p13 = scmp.lt.u32.totalorder %s4967_s25, %s6933_s9 }
  0x59   :  { %p4973_p0 = pnand %p4971_p13, %p4968_p12 }
  0x5b   :  { %4976 = shalt.err (!%p4973_p0)
}
  0x5c   :  { %s4977_s5 = scalar_lea.vmem %s5174_s14, 2048  ;;  %p4982_p2 = scmp.lt.s32.totalorder %s5174_s14, %s5174_s14 }
  0x5d   :  { %p4978_p1 = scmp.ne.s32.totalorder %s5174_s14, %s4977_s5  ;;  %p4983_p3 = scmp.lt.s32.totalorder %s4977_s5, %s4977_s5 }
  0x5f   :  { %p4984_p4 = por %p4983_p3, %p4982_p2 }
  0x61   :  { %p4985_p5 = pnand %p4984_p4, %p4978_p1 }
  0x63   :  { %4988 = shalt.err (!%p4985_p5)
}
  0x64   :  { %102 = dma.hbm_to_vmem [thread:$0]  %s6933_s9, 2048, %s5174_s14, [#allocation12], %s5023_s20, %s5023_s20, %s5024_s21  }
  0x65   :  { %5011 = dma.done.wait [#allocation3], 2048  }
  0x66   :  { %5012 = vsyncadd [#allocation3], 4294965248 }
  0x67   :  { %5013 = dma.done.wait [#allocation6], 12288  }
  0x68   :  { %5014 = vsyncadd [#allocation6], 4294955008 }
  0x69   :  { %5015 = dma.done.wait [#allocation9], 4096  }
  0x6a   :  { %5016 = vsyncadd [#allocation9], 4294963200 }
  0x6b   :  { %5017 = dma.done.wait [#allocation12], 2048  }
  0x6c   :  { %5018 = vsyncadd [#allocation12], 4294965248  ;;  %v143_v0 = vld [vmem:[#allocation8] sm:$0xff]  ;;  %v144_v1 = vld [vmem:[#allocation8 + $0x8] sm:$0xff] }
  0x6d   :  { %v145_v2 = vld [vmem:[#allocation8 + $0x10] sm:$0xff]  ;;  %v4207_v3 = vpack.c.bf16 %v144_v1, %v143_v0  ;;  %v146_v4 = vld [vmem:[#allocation8 + $0x18] sm:$0xff]  ;;  %v147_v6 = vld [vmem:[#allocation8 + $0x20] sm:$0xff] }
  0x6e   :  { %v4211_v5 = vpack.c.bf16 %v146_v4, %v145_v2  ;;  %v148_v7 = vld [vmem:[#allocation8 + $0x28] sm:$0xff]  ;;  %v5211_v9 = vld [vmem:[#allocation2] sm:$0xff]  ;;  %v149_v10 = vld [vmem:[#allocation8 + $0x30] sm:$0xff] }
  0x6f   :  { %4208 = vmatprep.subr.bf16.mxu0 %v4207_v3  ;;  %v4215_v8 = vpack.c.bf16 %v148_v7, %v147_v6  ;;  %v150_v11 = vld [vmem:[#allocation8 + $0x38] sm:$0xff]  ;;  %3623 = vmatprep.mubr.f32.mxu0 %v5211_v9  ;;  %v151_v13 = vld [vmem:[#allocation8 + $0x40] sm:$0xff]  ;;  %v152_v14 = vld [vmem:[#allocation8 + $0x48] sm:$0xff] }
  0x70   :  { %4210 = vmatpush3.bf16.msra.mxu0 %v4207_v3  ;;  %v4219_v12 = vpack.c.bf16 %v150_v11, %v149_v10  ;;  %v4223_v15 = vpack.c.bf16 %v152_v14, %v151_v13  ;;  %v153_v16 = vld [vmem:[#allocation8 + $0x50] sm:$0xff]  ;;  %v154_v17 = vld [vmem:[#allocation8 + $0x58] sm:$0xff]  ;;  %v311_v18 = vld [vmem:[#allocation10] sm:$0xff] }
  0x71   :  { %4212 = vmatprep.subr.bf16.mxu0 %v4211_v5  ;;  %v312_v19 = vld [vmem:[#allocation10 + $0x8] sm:$0xff]  ;;  %v313_v20 = vld [vmem:[#allocation10 + $0x10] sm:$0xff]  ;;  %v4227_v21 = vpack.c.bf16 %v154_v17, %v153_v16  ;;  %v155_v22 = vld [vmem:[#allocation8 + $0x60] sm:$0xff] }
  0x72   :  { %v4239_v23 = vpack.c.bf16 %v312_v19, %v311_v18  ;;  %v314_v24 = vld [vmem:[#allocation10 + $0x18] sm:$0xff]  ;;  %v156_v25 = vld [vmem:[#allocation8 + $0x68] sm:$0xff]  ;;  %v315_v27 = vld [vmem:[#allocation10 + $0x20] sm:$0xff] }
  0x73   :  { %v4243_v26 = vpack.c.bf16 %v314_v24, %v313_v20  ;;  %v316_v28 = vld [vmem:[#allocation10 + $0x28] sm:$0xff]  ;;  %v4231_v29 = vpack.c.bf16 %v156_v25, %v155_v22  ;;  %v157_v30 = vld [vmem:[#allocation8 + $0x70] sm:$0xff]  ;;  %v158_v32 = vld [vmem:[#allocation8 + $0x78] sm:$0xff] }
  0x74   :  { %4214 = vmatpush3.bf16.msra.mxu0 %v4211_v5  ;;  %4240 = vmatprep.subr.bf16.mxu1 %v4239_v23  ;;  %v4247_v31 = vpack.c.bf16 %v316_v28, %v315_v27  ;;  %v317_v33 = vld [vmem:[#allocation10 + $0x30] sm:$0xff]  ;;  %v318_v34 = vld [vmem:[#allocation10 + $0x38] sm:$0xff]  ;;  %v4235_v35 = vpack.c.bf16 %v158_v32, %v157_v30  ;;  %v527_v36 = vld [vmem:[#allocation5] sm:$0xff] }
  0x75   :  { %4216 = vmatprep.subr.bf16.mxu0 %v4215_v8  ;;  %4242 = vmatpush3.bf16.msra.mxu1 %v4239_v23  ;;  %v4251_v37 = vpack.c.bf16 %v318_v34, %v317_v33  ;;  %v528_v38 = vld [vmem:[#allocation5 + $0x8] sm:$0xff]  ;;  %v319_v39 = vld [vmem:[#allocation10 + $0x40] sm:$0xff]  ;;  %v529_v43 = vld [vmem:[#allocation5 + $0x10] sm:$0xff] }
  0x76   :  { %4244 = vmatprep.subr.bf16.mxu1 %v4243_v26  ;;  %v320_v40 = vld [vmem:[#allocation10 + $0x48] sm:$0xff]  ;;  %v4271_v41 = vpack.c.bf16 %v528_v38, %v527_v36  ;;  %v530_v44 = vld [vmem:[#allocation5 + $0x18] sm:$0xff]  ;;  %v321_v45 = vld [vmem:[#allocation10 + $0x50] sm:$0xff] }
  0x77   :  { %v4255_v42 = vpack.c.bf16 %v320_v40, %v319_v39  ;;  %v322_v46 = vld [vmem:[#allocation10 + $0x58] sm:$0xff]  ;;  %v5214_v47 = vld [vmem:[#allocation2 + $0x8] sm:$0xff]  ;;  %v5216_v48 = vld [vmem:[#allocation2 + $0x10] sm:$0xff]  ;;  %v4275_v49 = vpack.c.bf16 %v530_v44, %v529_v43 }
  0x78   :  { %4218 = vmatpush3.bf16.msra.mxu0 %v4215_v8  ;;  %v531_v50 = vld [vmem:[#allocation5 + $0x20] sm:$0xff]  ;;  %v532_v51 = vld [vmem:[#allocation5 + $0x28] sm:$0xff]  ;;  %v4259_v52 = vpack.c.bf16 %v322_v46, %v321_v45  ;;  %v5220_v55 = vld [vmem:[#allocation2 + $0x18] sm:$0xff] }
  0x79   :  { %4220 = vmatprep.subr.bf16.mxu0 %v4219_v12  ;;  %4246 = vmatpush3.bf16.msra.mxu1 %v4243_v26  ;;  %v323_v53 = vld [vmem:[#allocation10 + $0x60] sm:$0xff]  ;;  %v324_v54 = vld [vmem:[#allocation10 + $0x68] sm:$0xff]  ;;  %v4279_v57 = vpack.c.bf16 %v532_v51, %v531_v50  ;;  %v533_v58 = vld [vmem:[#allocation5 + $0x30] sm:$0xff] }
  0x7a   :  { %4248 = vmatprep.subr.bf16.mxu1 %v4247_v31  ;;  %v5222_v56 = vld [vmem:[#allocation2 + $0x20] sm:$0xff]  ;;  %v534_v59 = vld [vmem:[#allocation5 + $0x38] sm:$0xff]  ;;  %v4263_v60 = vpack.c.bf16 %v324_v54, %v323_v53  ;;  %v5226_v61 = vld [vmem:[#allocation2 + $0x28] sm:$0xff] }
  0x7b   :  { %v5228_v62 = vld [vmem:[#allocation2 + $0x30] sm:$0xff]  ;;  %v4283_v63 = vpack.c.bf16 %v534_v59, %v533_v58  ;;  %v535_v0 = vld [vmem:[#allocation5 + $0x40] sm:$0xff]  ;;  %v536_v1 = vld [vmem:[#allocation5 + $0x48] sm:$0xff] }
  0x7c   :  { %4222 = vmatpush3.bf16.msra.mxu0 %v4219_v12  ;;  %v5232_v2 = vld [vmem:[#allocation2 + $0x38] sm:$0xff]  ;;  %v5234_v3 = vld [vmem:[#allocation2 + $0x40] sm:$0xff]  ;;  %v4287_v4 = vpack.c.bf16 %v536_v1, %v535_v0  ;;  %v537_v5 = vld [vmem:[#allocation5 + $0x50] sm:$0xff] }
  0x7d   :  { %4224 = vmatprep.subr.bf16.mxu0 %v4223_v15  ;;  %4250 = vmatpush3.bf16.msra.mxu1 %v4247_v31  ;;  %v538_v6 = vld [vmem:[#allocation5 + $0x58] sm:$0xff]  ;;  %v5238_v7 = vld [vmem:[#allocation2 + $0x48] sm:$0xff]  ;;  %v5240_v8 = vld [vmem:[#allocation2 + $0x50] sm:$0xff] }
  0x7e   :  { %4252 = vmatprep.subr.bf16.mxu1 %v4251_v37  ;;  %v4291_v10 = vpack.c.bf16 %v538_v6, %v537_v5  ;;  %v539_v11 = vld [vmem:[#allocation5 + $0x60] sm:$0xff]  ;;  %v540_v12 = vld [vmem:[#allocation5 + $0x68] sm:$0xff]  ;;  %v5244_v13 = vld [vmem:[#allocation2 + $0x58] sm:$0xff] }
  0x7f   :  { %v5246_v14 = vld [vmem:[#allocation2 + $0x60] sm:$0xff]  ;;  %v541_v16 = vld [vmem:[#allocation5 + $0x70] sm:$0xff]  ;;  %v542_v17 = vld [vmem:[#allocation5 + $0x78] sm:$0xff] }
  0x80   :  { %4226 = vmatpush3.bf16.msra.mxu0 %v4223_v15  ;;  %v4295_v15 = vpack.c.bf16 %v540_v12, %v539_v11  ;;  %v5250_v18 = vld [vmem:[#allocation2 + $0x68] sm:$0xff]  ;;  %v5252_v19 = vld [vmem:[#allocation2 + $0x70] sm:$0xff]  ;;  %v4299_v20 = vpack.c.bf16 %v542_v17, %v541_v16  ;;  %v326_v23 = vld [vmem:[#allocation10 + $0x78] sm:$0xff] }
  0x81   :  { %4228 = vmatprep.subr.bf16.mxu0 %v4227_v21  ;;  %4254 = vmatpush3.bf16.msra.mxu1 %v4251_v37  ;;  %v325_v22 = vld [vmem:[#allocation10 + $0x70] sm:$0xff]  ;;  %v711_v25 = vld [vmem:[#allocation7] sm:$0xff]  ;;  %v712_v26 = vld [vmem:[#allocation7 + $0x8] sm:$0xff] }
  0x82   :  { %4256 = vmatprep.subr.bf16.mxu1 %v4255_v42  ;;  %v4267_v24 = vpack.c.bf16 %v326_v23, %v325_v22  ;;  %v4303_v27 = vpack.c.bf16 %v712_v26, %v711_v25  ;;  %v5278_v28 = vld [vmem:[%s6930_s6] ss:$0 sm:$0xff]  ;;  %v713_v31 = vld [vmem:[#allocation7 + $0x10] sm:$0xff]  ;;  %v714_v32 = vld [vmem:[#allocation7 + $0x18] sm:$0xff] }
  0x83   :  { %v5283_v30 = vld [vmem:[%s6932_s8] ss:$0 sm:$0xff]  ;;  %v4307_v37 = vpack.c.bf16 %v714_v32, %v713_v31  ;;  %v717_v51 = vld [vmem:[#allocation7 + $0x30] sm:$0xff]  ;;  %v720_v1 = vld [vmem:[#allocation7 + $0x48] sm:$0xff] }
  0x84   :  { %4230 = vmatpush3.bf16.msra.mxu0 %v4227_v21  ;;  %v5256_v21 = vld [vmem:[#allocation2 + $0x78] sm:$0xff]  ;;  %v719_v0 = vld [vmem:[#allocation7 + $0x40] sm:$0xff]  ;;  %v721_v16 = vld [vmem:[#allocation7 + $0x50] sm:$0xff] }
  0x85   :  { %4232 = vmatprep.subr.bf16.mxu0 %v4231_v29  ;;  %4258 = vmatpush3.bf16.msra.mxu1 %v4255_v42  ;;  %v716_v42 = vld [vmem:[#allocation7 + $0x28] sm:$0xff]  ;;  %v4319_v12 = vpack.c.bf16 %v720_v1, %v719_v0  ;;  %v722_v17 = vld [vmem:[#allocation7 + $0x58] sm:$0xff] }
  0x86   :  { %4260 = vmatprep.subr.bf16.mxu1 %v4259_v52  ;;  %v4323_v26 = vpack.c.bf16 %v722_v17, %v721_v16  ;;  %v724_v31 = vld [vmem:[#allocation7 + $0x68] sm:$0xff] }
  0x88   :  { %4234 = vmatpush3.bf16.msra.mxu0 %v4231_v29 }
  0x89   :  { %4236 = vmatprep.subr.bf16.mxu0 %v4235_v35  ;;  %4262 = vmatpush3.bf16.msra.mxu1 %v4259_v52  ;;  %v718_v52 = vld [vmem:[#allocation7 + $0x38] sm:$0xff] }
  0x8a   :  { %4264 = vmatprep.subr.bf16.mxu1 %v4263_v60 }
  0x8c   :  { %4238 = vmatpush3.bf16.msra.mxu0 %v4235_v35 }
  0x8d   :  { %4272 = vmatprep.subr.bf16.mxu0 %v4271_v41  ;;  %4266 = vmatpush3.bf16.msra.mxu1 %v4263_v60  ;;  %v4315_v60 = vpack.c.bf16 %v718_v52, %v717_v51  ;;  %v5316_v51 = vld [vmem:[%s6926_s2] ss:$0 sm:$0xff] }
  0x8e   :  { %4268 = vmatprep.subr.bf16.mxu1 %v4267_v24 }
  0x8f   :  { %3624 = vmatmul.mubr.f32.vlgmr.msra.gmra.mrb[0].mxu0 %v5214_v47 }
  0x90   :  { %4274 = vmatpush3.bf16.msra.mxu0 %v4271_v41  ;;  %3626 = vmatprep.mubr.f32.mxu0 %v5216_v48  ;;  %v715_v41 = vld [vmem:[#allocation7 + $0x20] sm:$0xff] }
  0x91   :  { %4276 = vmatprep.subr.bf16.mxu0 %v4275_v49  ;;  %4270 = vmatpush3.bf16.msra.mxu1 %v4267_v24 }
  0x92   :  { %4304 = vmatprep.subr.bf16.mxu1 %v4303_v27 }
  0x93   :  { %3627 = vmatmul.mubr.f32.gmra.mrb[2].mxu0 %v5220_v55 }
  0x94   :  { %4278 = vmatpush3.bf16.msra.mxu0 %v4275_v49  ;;  %3629 = vmatprep.mubr.f32.mxu0 %v5222_v56  ;;  %v4311_v49 = vpack.c.bf16 %v716_v42, %v715_v41 }
  0x95   :  { %4280 = vmatprep.subr.bf16.mxu0 %v4279_v57 }
  0x97   :  { %3630 = vmatmul.mubr.f32.gmra.mrb[4].mxu0 %v5226_v61 }
  0x98   :  { %4282 = vmatpush3.bf16.msra.mxu0 %v4279_v57  ;;  %3632 = vmatprep.mubr.f32.mxu0 %v5228_v62 }
  0x99   :  { %4284 = vmatprep.subr.bf16.mxu0 %v4283_v63 }
  0x9b   :  { %3633 = vmatmul.mubr.f32.gmra.mrb[6].mxu0 %v5232_v2 }
  0x9c   :  { %4286 = vmatpush3.bf16.msra.mxu0 %v4283_v63  ;;  %3635 = vmatprep.mubr.f32.mxu0 %v5234_v3 }
  0x9d   :  { %4288 = vmatprep.subr.bf16.mxu0 %v4287_v4 }
  0x9f   :  { %3636 = vmatmul.mubr.f32.gmra.mrb[8].mxu0 %v5238_v7 }
  0xa0   :  { %4290 = vmatpush3.bf16.msra.mxu0 %v4287_v4  ;;  %3638 = vmatprep.mubr.f32.mxu0 %v5240_v8 }
  0xa1   :  { %4292 = vmatprep.subr.bf16.mxu0 %v4291_v10 }
  0xa3   :  { %3639 = vmatmul.mubr.f32.gmra.mrb[10].mxu0 %v5244_v13 }
  0xa4   :  { %4294 = vmatpush3.bf16.msra.mxu0 %v4291_v10  ;;  %3641 = vmatprep.mubr.f32.mxu0 %v5246_v14 }
  0xa5   :  { %4296 = vmatprep.subr.bf16.mxu0 %v4295_v15 }
  0xa7   :  { %3642 = vmatmul.mubr.f32.gmra.mrb[12].mxu0 %v5250_v18 }
  0xa8   :  { %4298 = vmatpush3.bf16.msra.mxu0 %v4295_v15  ;;  %3644 = vmatprep.mubr.f32.mxu0 %v5252_v19 }
  0xa9   :  { %4300 = vmatprep.subr.bf16.mxu0 %v4299_v20 }
  0xab   :  { %3645 = vmatmul.mubr.f32.gmra.mrb[14].mxu0 %v5256_v21 }
  0xac   :  { %4302 = vmatpush3.bf16.msra.mxu0 %v4299_v20  ;;  %3735 = vmatprep.mubr.f32.mxu0 %v5211_v9 }
  0xaf   :  { %3736 = vmatmul.mubr.f32.vlgmr.msra.gmra.mrb[16].mxu0 %v5214_v47 }
  0xb0   :  { %3738 = vmatprep.mubr.f32.mxu0 %v5216_v48 }
  0xb3   :  { %3739 = vmatmul.mubr.f32.gmra.mrb[18].mxu0 %v5220_v55 }
  0xb4   :  { %3741 = vmatprep.mubr.f32.mxu0 %v5222_v56 }
  0xb7   :  { %3742 = vmatmul.mubr.f32.gmra.mrb[20].mxu0 %v5226_v61 }
  0xb8   :  { %3744 = vmatprep.mubr.f32.mxu0 %v5228_v62 }
  0xbb   :  { %3745 = vmatmul.mubr.f32.gmra.mrb[22].mxu0 %v5232_v2 }
  0xbc   :  { %3747 = vmatprep.mubr.f32.mxu0 %v5234_v3 }
  0xbf   :  { %3748 = vmatmul.mubr.f32.gmra.mrb[24].mxu0 %v5238_v7 }
  0xc0   :  { %3750 = vmatprep.mubr.f32.mxu0 %v5240_v8 }
  0xc3   :  { %3751 = vmatmul.mubr.f32.gmra.mrb[26].mxu0 %v5244_v13 }
  0xc4   :  { %3753 = vmatprep.mubr.f32.mxu0 %v5246_v14 }
  0xc7   :  { %3754 = vmatmul.mubr.f32.gmra.mrb[28].mxu0 %v5250_v18 }
  0xc8   :  { %3756 = vmatprep.mubr.f32.mxu0 %v5252_v19 }
  0xcb   :  { %3757 = vmatmul.mubr.f32.gmra.mrb[30].mxu0 %v5256_v21 }
 0x162   :  { %v3625_v29 = vpop.f32.mrb[0].mxu0 }
 0x163   :  { %v238_v33 = vadd.f32 %v3625_v29, %v5278_v28  ;;  %v232_v34 = vpop.f32.mrb[1].mxu0  ;;  %v723_v29 = vld [vmem:[#allocation7 + $0x60] sm:$0xff] }
 0x164   :  { %v233_v35 = vadd.f32 %v5278_v28, %v232_v34 }
 0x165   :  { %v480_v36 = vmul.f32 %v5283_v30, %v238_v33 }
 0x166   :  { %v3628_v38 = vpop.f32.mrb[2].mxu0  ;;  %3679 = vmatprep.mubr.f32.mxu1 %v233_v35  ;;  %v479_v45 = vmul.f32 %v5283_v30, %v233_v35 }
 0x167   :  { %v248_v39 = vadd.f32 %v3628_v38, %v5278_v28  ;;  %497 = vadd.xlane.f32.xlu0 %v480_v36  ;;  %v242_v40 = vpop.f32.mrb[3].mxu0  ;;  %3680 = vmatmul.mubr.f32.vlgmr.msra.gmra.mrb[0].mxu1 %v238_v33 }
 0x168   :  { %v243_v43 = vadd.f32 %v5278_v28, %v242_v40  ;;  %4306 = vmatpush3.bf16.msra.mxu1 %v4303_v27  ;;  %v726_v40 = vld [vmem:[#allocation7 + $0x78] sm:$0xff] }
 0x169   :  { %v482_v44 = vmul.f32 %v5283_v30, %v248_v39  ;;  %4308 = vmatprep.subr.bf16.mxu1 %v4307_v37 }
 0x16a   :  { %v3631_v46 = vpop.f32.mrb[4].mxu0  ;;  %3682 = vmatprep.mubr.f32.mxu1 %v243_v43  ;;  %v481_v57 = vmul.f32 %v5283_v30, %v243_v43 }
 0x16b   :  { %501 = vadd.xlane.f32.xlu1 %v482_v44  ;;  %v252_v50 = vpop.f32.mrb[5].mxu0  ;;  %495 = vadd.xlane.f32.xlu0 %v479_v45  ;;  %v258_v54 = vadd.f32 %v3631_v46, %v5278_v28 }
 0x16c   :  { %v253_v53 = vadd.f32 %v5278_v28, %v252_v50  ;;  %3683 = vmatmul.mubr.f32.gmra.mrb[2].mxu1 %v248_v39  ;;  %v725_v39 = vld [vmem:[#allocation7 + $0x70] sm:$0xff] }
 0x16d   :  { %4310 = vmatpush3.bf16.msra.mxu1 %v4307_v37  ;;  %v484_v6 = vmul.f32 %v5283_v30, %v258_v54  ;;  %v4327_v37 = vpack.c.bf16 %v724_v31, %v723_v29  ;;  %v4331_v46 = vpack.c.bf16 %v726_v40, %v725_v39 }
 0x16e   :  { %v3634_v58 = vpop.f32.mrb[6].mxu0  ;;  %3685 = vmatprep.mubr.f32.mxu1 %v253_v53  ;;  %v483_v59 = vmul.f32 %v5283_v30, %v253_v53  ;;  %4312 = vmatprep.subr.bf16.mxu1 %v4311_v49 }
 0x16f   :  { %v262_v63 = vpop.f32.mrb[7].mxu0  ;;  %499 = vadd.xlane.f32.xlu1 %v481_v57  ;;  %v268_v5 = vadd.f32 %v3634_v58, %v5278_v28 }
 0x170   :  { %v263_v4 = vadd.f32 %v5278_v28, %v262_v63  ;;  %3686 = vmatmul.mubr.f32.gmra.mrb[4].mxu1 %v258_v54  ;;  %503 = vadd.xlane.f32.xlu0 %v483_v59 }
 0x171   :  { %4314 = vmatpush3.bf16.msra.mxu1 %v4311_v49  ;;  %v486_v23 = vmul.f32 %v5283_v30, %v268_v5 }
 0x172   :  { %v3637_v10 = vpop.f32.mrb[8].mxu0  ;;  %3688 = vmatprep.mubr.f32.mxu1 %v263_v4  ;;  %v485_v11 = vmul.f32 %v5283_v30, %v263_v4  ;;  %4316 = vmatprep.subr.bf16.mxu1 %v4315_v60 }
 0x173   :  { %v272_v15 = vpop.f32.mrb[9].mxu0  ;;  %505 = vadd.xlane.f32.xlu1 %v484_v6  ;;  %v278_v22 = vadd.f32 %v3637_v10, %v5278_v28 }
 0x174   :  { %v273_v20 = vadd.f32 %v5278_v28, %v272_v15  ;;  %3689 = vmatmul.mubr.f32.gmra.mrb[6].mxu1 %v268_v5  ;;  %507 = vadd.xlane.f32.xlu0 %v485_v11 }
 0x175   :  { %4318 = vmatpush3.bf16.msra.mxu1 %v4315_v60  ;;  %v488_v34 = vmul.f32 %v5283_v30, %v278_v22 }
 0x176   :  { %v3640_v24 = vpop.f32.mrb[10].mxu0  ;;  %3691 = vmatprep.mubr.f32.mxu1 %v273_v20  ;;  %v487_v25 = vmul.f32 %v5283_v30, %v273_v20  ;;  %4320 = vmatprep.subr.bf16.mxu1 %v4319_v12 }
 0x177   :  { %v282_v27 = vpop.f32.mrb[11].mxu0  ;;  %509 = vadd.xlane.f32.xlu1 %v486_v23  ;;  %v288_v33 = vadd.f32 %v3640_v24, %v5278_v28 }
 0x178   :  { %v283_v32 = vadd.f32 %v5278_v28, %v282_v27  ;;  %3692 = vmatmul.mubr.f32.gmra.mrb[8].mxu1 %v278_v22  ;;  %511 = vadd.xlane.f32.xlu0 %v487_v25 }
 0x179   :  { %4322 = vmatpush3.bf16.msra.mxu1 %v4319_v12  ;;  %v490_v43 = vmul.f32 %v5283_v30, %v288_v33 }
 0x17a   :  { %v3643_v35 = vpop.f32.mrb[12].mxu0  ;;  %3694 = vmatprep.mubr.f32.mxu1 %v283_v32  ;;  %v489_v36 = vmul.f32 %v5283_v30, %v283_v32  ;;  %4324 = vmatprep.subr.bf16.mxu1 %v4323_v26 }
 0x17b   :  { %v292_v38 = vpop.f32.mrb[13].mxu0  ;;  %513 = vadd.xlane.f32.xlu1 %v488_v34  ;;  %v298_v42 = vadd.f32 %v3643_v35, %v5278_v28 }
 0x17c   :  { %v293_v41 = vadd.f32 %v5278_v28, %v292_v38  ;;  %3695 = vmatmul.mubr.f32.gmra.mrb[10].mxu1 %v288_v33  ;;  %515 = vadd.xlane.f32.xlu0 %v489_v36 }
 0x17d   :  { %4326 = vmatpush3.bf16.msra.mxu1 %v4323_v26  ;;  %v492_v53 = vmul.f32 %v5283_v30, %v298_v42 }
 0x17e   :  { %v3646_v44 = vpop.f32.mrb[14].mxu0  ;;  %3697 = vmatprep.mubr.f32.mxu1 %v293_v41  ;;  %v491_v45 = vmul.f32 %v5283_v30, %v293_v41  ;;  %4328 = vmatprep.subr.bf16.mxu1 %v4327_v37 }
 0x17f   :  { %v302_v49 = vpop.f32.mrb[15].mxu0  ;;  %517 = vadd.xlane.f32.xlu1 %v490_v43  ;;  %v308_v52 = vadd.f32 %v3646_v44, %v5278_v28 }
 0x180   :  { %v303_v50 = vadd.f32 %v5278_v28, %v302_v49  ;;  %3698 = vmatmul.mubr.f32.gmra.mrb[12].mxu1 %v298_v42  ;;  %519 = vadd.xlane.f32.xlu0 %v491_v45 }
 0x181   :  { %4330 = vmatpush3.bf16.msra.mxu1 %v4327_v37  ;;  %v494_v63 = vmul.f32 %v5283_v30, %v308_v52 }
 0x182   :  { %3700 = vmatprep.mubr.f32.mxu1 %v303_v50  ;;  %v3737_v54 = vpop.f32.mrb[16].mxu0  ;;  %v493_v57 = vmul.f32 %v5283_v30, %v303_v50  ;;  %4332 = vmatprep.subr.bf16.mxu1 %v4331_v46 }
 0x183   :  { %v622_v58 = vadd.f32 %v3737_v54, %v5316_v51  ;;  %v616_v59 = vpop.f32.mrb[17].mxu0  ;;  %521 = vadd.xlane.f32.xlu1 %v492_v53 }
 0x184   :  { %v617_v60 = vadd.f32 %v5316_v51, %v616_v59  ;;  %3701 = vmatmul.mubr.f32.gmra.mrb[14].mxu1 %v308_v52  ;;  %523 = vadd.xlane.f32.xlu0 %v493_v57  ;;  %v911_v59 = vld [vmem:[#allocation11] sm:$0xff] }
 0x185   :  { %4334 = vmatpush3.bf16.msra.mxu1 %v4331_v46  ;;  %v696_v1 = vmax.f32 %v622_v58, 0.0 }
 0x186   :  { %v695_v28 = vmax.f32 %v617_v60, 0.0  ;;  %v3740_v0 = vpop.f32.mrb[18].mxu0  ;;  %v912_v60 = vld [vmem:[#allocation11 + $0x8] sm:$0xff] }
 0x187   :  { %v632_v4 = vadd.f32 %v3740_v0, %v5316_v51  ;;  %v626_v5 = vpop.f32.mrb[19].mxu0  ;;  %525 = vadd.xlane.f32.xlu1 %v494_v63  ;;  %v5338_v63 = vpack.c.bf16 %v912_v60, %v911_v59  ;;  %v914_v0 = vld [vmem:[#allocation11 + $0x18] sm:$0xff] }
 0x188   :  { %v627_v6 = vadd.f32 %v5316_v51, %v626_v5  ;;  %3791 = vmatprep.mubr.f32.mxu1 %v695_v28  ;;  %v913_v28 = vld [vmem:[#allocation11 + $0x10] sm:$0xff] }
 0x189   :  { %3792 = vmatmul.mubr.f32.vlgmr.msra.gmra.mrb[16].mxu1 %v696_v1  ;;  %v698_v12 = vmax.f32 %v632_v4, 0.0  ;;  %7069 = vst [vmem:[#allocation19_spill] sm:$0xff] %v5338_v63  ;;  %4336 = vmatprep.subr.bf16.mxu0 %v5338_v63  ;;  %v1320_v1 = vld [vmem:[#allocation5 + $0x80] sm:$0xff]  ;;  %v5342_v4 = vpack.c.bf16 %v914_v0, %v913_v28 }
 0x18a   :  { %v697_v10 = vmax.f32 %v627_v6, 0.0  ;;  %v3743_v11 = vpop.f32.mrb[20].mxu0  ;;  %4338 = vmatpush3.bf16.msra.mxu0 %v5338_v63  ;;  %v915_v6 = vld [vmem:[#allocation11 + $0x20] sm:$0xff] }
 0x18b   :  { %v642_v15 = vadd.f32 %v3743_v11, %v5316_v51  ;;  %v636_v16 = vpop.f32.mrb[21].mxu0  ;;  %7070 = vst [vmem:[#allocation20_spill] sm:$0xff] %v5342_v4  ;;  %4340 = vmatprep.subr.bf16.mxu0 %v5342_v4  ;;  %v1322_v11 = vld [vmem:[#allocation5 + $0x90] sm:$0xff] }
 0x18c   :  { %v637_v17 = vadd.f32 %v5316_v51, %v636_v16  ;;  %3794 = vmatprep.mubr.f32.mxu1 %v697_v10  ;;  %v916_v10 = vld [vmem:[#allocation11 + $0x28] sm:$0xff] }
 0x18d   :  { %3795 = vmatmul.mubr.f32.gmra.mrb[18].mxu1 %v698_v12  ;;  %v700_v22 = vmax.f32 %v642_v15, 0.0  ;;  %v5346_v12 = vpack.c.bf16 %v916_v10, %v915_v6  ;;  %v1323_v15 = vld [vmem:[#allocation5 + $0x98] sm:$0xff] }
 0x18e   :  { %v699_v30 = vmax.f32 %v637_v17, 0.0  ;;  %v3746_v20 = vpop.f32.mrb[22].mxu0  ;;  %4342 = vmatpush3.bf16.msra.mxu0 %v5342_v4  ;;  %v4371_v16 = vpack.c.bf16 %v1323_v15, %v1322_v11  ;;  %v917_v17 = vld [vmem:[#allocation11 + $0x30] sm:$0xff] }
 0x18f   :  { %v652_v23 = vadd.f32 %v3746_v20, %v5316_v51  ;;  %v646_v24 = vpop.f32.mrb[23].mxu0  ;;  %7071 = vst [vmem:[#allocation21_spill] sm:$0xff] %v5346_v12  ;;  %4344 = vmatprep.subr.bf16.mxu0 %v5346_v12  ;;  %v1324_v20 = vld [vmem:[#allocation5 + $0xa0] sm:$0xff] }
 0x190   :  { %v647_v25 = vadd.f32 %v5316_v51, %v646_v24  ;;  %3797 = vmatprep.mubr.f32.mxu1 %v699_v30  ;;  %v918_v30 = vld [vmem:[#allocation11 + $0x38] sm:$0xff] }
 0x191   :  { %3798 = vmatmul.mubr.f32.gmra.mrb[20].mxu1 %v700_v22  ;;  %v702_v29 = vmax.f32 %v652_v23, 0.0  ;;  %v5350_v22 = vpack.c.bf16 %v918_v30, %v917_v17  ;;  %v1325_v23 = vld [vmem:[#allocation5 + $0xa8] sm:$0xff] }
 0x192   :  { %v701_v26 = vmax.f32 %v647_v25, 0.0  ;;  %v3749_v27 = vpop.f32.mrb[24].mxu0  ;;  %4346 = vmatpush3.bf16.msra.mxu0 %v5346_v12  ;;  %v4375_v24 = vpack.c.bf16 %v1325_v23, %v1324_v20  ;;  %v919_v25 = vld [vmem:[#allocation11 + $0x40] sm:$0xff] }
 0x193   :  { %v662_v31 = vadd.f32 %v3749_v27, %v5316_v51  ;;  %v656_v32 = vpop.f32.mrb[25].mxu0  ;;  %7072 = vst [vmem:[#allocation22_spill] sm:$0xff] %v5350_v22  ;;  %4348 = vmatprep.subr.bf16.mxu0 %v5350_v22  ;;  %v1326_v27 = vld [vmem:[#allocation5 + $0xb0] sm:$0xff] }
 0x194   :  { %v657_v33 = vadd.f32 %v5316_v51, %v656_v32  ;;  %3800 = vmatprep.mubr.f32.mxu1 %v701_v26  ;;  %v920_v26 = vld [vmem:[#allocation11 + $0x48] sm:$0xff] }
 0x195   :  { %3801 = vmatmul.mubr.f32.gmra.mrb[22].mxu1 %v702_v29  ;;  %v704_v36 = vmax.f32 %v662_v31, 0.0  ;;  %v5354_v29 = vpack.c.bf16 %v920_v26, %v919_v25  ;;  %v1327_v31 = vld [vmem:[#allocation5 + $0xb8] sm:$0xff] }
 0x196   :  { %v703_v34 = vmax.f32 %v657_v33, 0.0  ;;  %v3752_v35 = vpop.f32.mrb[26].mxu0  ;;  %4350 = vmatpush3.bf16.msra.mxu0 %v5350_v22  ;;  %v4379_v32 = vpack.c.bf16 %v1327_v31, %v1326_v27  ;;  %v921_v33 = vld [vmem:[#allocation11 + $0x50] sm:$0xff] }
 0x197   :  { %v672_v37 = vadd.f32 %v3752_v35, %v5316_v51  ;;  %v666_v38 = vpop.f32.mrb[27].mxu0  ;;  %7073 = vst [vmem:[#allocation23_spill] sm:$0xff] %v5354_v29  ;;  %4352 = vmatprep.subr.bf16.mxu0 %v5354_v29  ;;  %v1328_v35 = vld [vmem:[#allocation5 + $0xc0] sm:$0xff] }
 0x198   :  { %v667_v39 = vadd.f32 %v5316_v51, %v666_v38  ;;  %3803 = vmatprep.mubr.f32.mxu1 %v703_v34  ;;  %v922_v34 = vld [vmem:[#allocation11 + $0x58] sm:$0xff] }
 0x199   :  { %3804 = vmatmul.mubr.f32.gmra.mrb[24].mxu1 %v704_v36  ;;  %v706_v42 = vmax.f32 %v672_v37, 0.0  ;;  %v5358_v36 = vpack.c.bf16 %v922_v34, %v921_v33  ;;  %v1329_v37 = vld [vmem:[#allocation5 + $0xc8] sm:$0xff] }
 0x19a   :  { %v705_v40 = vmax.f32 %v667_v39, 0.0  ;;  %v3755_v41 = vpop.f32.mrb[28].mxu0  ;;  %4354 = vmatpush3.bf16.msra.mxu0 %v5354_v29  ;;  %v4383_v38 = vpack.c.bf16 %v1329_v37, %v1328_v35  ;;  %v923_v39 = vld [vmem:[#allocation11 + $0x60] sm:$0xff] }
 0x19b   :  { %v682_v43 = vadd.f32 %v3755_v41, %v5316_v51  ;;  %v676_v44 = vpop.f32.mrb[29].mxu0  ;;  %7074 = vst [vmem:[#allocation24_spill] sm:$0xff] %v5358_v36  ;;  %4356 = vmatprep.subr.bf16.mxu0 %v5358_v36  ;;  %v1330_v41 = vld [vmem:[#allocation5 + $0xd0] sm:$0xff] }
 0x19c   :  { %v677_v45 = vadd.f32 %v5316_v51, %v676_v44  ;;  %3806 = vmatprep.mubr.f32.mxu1 %v705_v40  ;;  %v924_v40 = vld [vmem:[#allocation11 + $0x68] sm:$0xff] }
 0x19d   :  { %3807 = vmatmul.mubr.f32.gmra.mrb[26].mxu1 %v706_v42  ;;  %v708_v50 = vmax.f32 %v682_v43, 0.0  ;;  %v5362_v42 = vpack.c.bf16 %v924_v40, %v923_v39  ;;  %v1331_v43 = vld [vmem:[#allocation5 + $0xd8] sm:$0xff] }
 0x19e   :  { %v707_v46 = vmax.f32 %v677_v45, 0.0  ;;  %v3758_v49 = vpop.f32.mrb[30].mxu0  ;;  %4358 = vmatpush3.bf16.msra.mxu0 %v5358_v36  ;;  %v4387_v44 = vpack.c.bf16 %v1331_v43, %v1330_v41  ;;  %v925_v45 = vld [vmem:[#allocation11 + $0x70] sm:$0xff] }
 0x19f   :  { %v692_v52 = vadd.f32 %v3758_v49, %v5316_v51  ;;  %v686_v53 = vpop.f32.mrb[31].mxu0  ;;  %7075 = vst [vmem:[#allocation25_spill] sm:$0xff] %v5362_v42  ;;  %4360 = vmatprep.subr.bf16.mxu0 %v5362_v42  ;;  %v1332_v49 = vld [vmem:[#allocation5 + $0xe0] sm:$0xff] }
 0x1a0   :  { %v687_v54 = vadd.f32 %v5316_v51, %v686_v53  ;;  %3809 = vmatprep.mubr.f32.mxu1 %v707_v46  ;;  %v1321_v51 = vld [vmem:[#allocation5 + $0x88] sm:$0xff]  ;;  %v926_v46 = vld [vmem:[#allocation11 + $0x78] sm:$0xff] }
 0x1a1   :  { %3810 = vmatmul.mubr.f32.gmra.mrb[28].mxu1 %v708_v50  ;;  %v710_v58 = vmax.f32 %v692_v52, 0.0  ;;  %v4367_v5 = vpack.c.bf16 %v1321_v51, %v1320_v1  ;;  %v5366_v50 = vpack.c.bf16 %v926_v46, %v925_v45  ;;  %v1333_v52 = vld [vmem:[#allocation5 + $0xe8] sm:$0xff] }
 0x1a2   :  { %v709_v57 = vmax.f32 %v687_v54, 0.0  ;;  %4362 = vmatpush3.bf16.msra.mxu0 %v5362_v42  ;;  %v4391_v53 = vpack.c.bf16 %v1333_v52, %v1332_v49  ;;  %v1334_v54 = vld [vmem:[#allocation5 + $0xf0] sm:$0xff] }
 0x1a3   :  { %4368 = vmatprep.subr.bf16.mxu1 %v4367_v5  ;;  %7076 = vst [vmem:[#allocation26_spill] sm:$0xff] %v5366_v50  ;;  %4364 = vmatprep.subr.bf16.mxu0 %v5366_v50 }
 0x1a4   :  { %3812 = vmatprep.mubr.f32.mxu1 %v709_v57  ;;  %4370 = vmatpush3.bf16.msra.mxu1 %v4367_v5  ;;  %v1335_v57 = vld [vmem:[#allocation5 + $0xf8] sm:$0xff] }
 0x1a5   :  { %3813 = vmatmul.mubr.f32.gmra.mrb[30].mxu1 %v710_v58  ;;  %4372 = vmatprep.subr.bf16.mxu1 %v4371_v16  ;;  %v4395_v58 = vpack.c.bf16 %v1335_v57, %v1334_v54 }
 0x1a6   :  { %4366 = vmatpush3.bf16.msra.mxu0 %v5366_v50 }
 0x1a8   :  { %4374 = vmatpush3.bf16.msra.mxu1 %v4371_v16 }
 0x1a9   :  { %4376 = vmatprep.subr.bf16.mxu1 %v4375_v24 }
 0x1ac   :  { %4378 = vmatpush3.bf16.msra.mxu1 %v4375_v24  ;;  %v5406_v24 = vld [vmem:[%s6928_s4] ss:$0 sm:$0xff] }
 0x1ad   :  { %4380 = vmatprep.subr.bf16.mxu1 %v4379_v32 }
 0x1b0   :  { %4382 = vmatpush3.bf16.msra.mxu1 %v4379_v32 }
 0x1b1   :  { %4384 = vmatprep.subr.bf16.mxu1 %v4383_v38 }
 0x1b4   :  { %4386 = vmatpush3.bf16.msra.mxu1 %v4383_v38 }
 0x1b5   :  { %4388 = vmatprep.subr.bf16.mxu1 %v4387_v44 }
 0x1b8   :  { %4390 = vmatpush3.bf16.msra.mxu1 %v4387_v44 }
 0x1b9   :  { %4392 = vmatprep.subr.bf16.mxu1 %v4391_v53 }
 0x1bc   :  { %4394 = vmatpush3.bf16.msra.mxu1 %v4391_v53 }
 0x1bd   :  { %4396 = vmatprep.subr.bf16.mxu1 %v4395_v58 }
 0x1c0   :  { %4398 = vmatpush3.bf16.msra.mxu1 %v4395_v58 }
 0x1c1   :  { %4432 = vmatprep.subr.bf16.mxu1 %v5338_v63 }
 0x23a   :  { %v5371_v59 = vpop.f32.mrb[0].mxu1 }
 0x23b   :  { %7077 = vst [vmem:[#allocation27_spill] sm:$0xff] %v5371_v59  ;;  %v5373_v60 = vpop.f32.mrb[1].mxu1 }
 0x23c   :  { %7078 = vst [vmem:[#allocation28_spill] sm:$0xff] %v5373_v60 }
 0x23f   :  { %v5375_v28 = vpop.f32.mrb[2].mxu1 }
 0x240   :  { %7079 = vst [vmem:[#allocation29_spill] sm:$0xff] %v5375_v28  ;;  %v5377_v0 = vpop.f32.mrb[3].mxu1 }
 0x241   :  { %7080 = vst [vmem:[#allocation30_spill] sm:$0xff] %v5377_v0 }
 0x243   :  { %v5379_v1 = vpop.f32.mrb[4].mxu1 }
 0x244   :  { %7081 = vst [vmem:[#allocation31_spill] sm:$0xff] %v5379_v1  ;;  %v5381_v51 = vpop.f32.mrb[5].mxu1 }
 0x245   :  { %7082 = vst [vmem:[#allocation32_spill] sm:$0xff] %v5381_v51 }
 0x247   :  { %v5383_v5 = vpop.f32.mrb[6].mxu1 }
 0x248   :  { %7083 = vst [vmem:[#allocation33_spill] sm:$0xff] %v5383_v5  ;;  %v5385_v6 = vpop.f32.mrb[7].mxu1 }
 0x249   :  { %7084 = vst [vmem:[#allocation34_spill] sm:$0xff] %v5385_v6 }
 0x24b   :  { %v5387_v10 = vpop.f32.mrb[8].mxu1 }
 0x24c   :  { %7085 = vst [vmem:[#allocation35_spill] sm:$0xff] %v5387_v10  ;;  %v5389_v11 = vpop.f32.mrb[9].mxu1 }
 0x24d   :  { %7086 = vst [vmem:[#allocation36_spill] sm:$0xff] %v5389_v11 }
 0x24f   :  { %v5391_v15 = vpop.f32.mrb[10].mxu1 }
 0x250   :  { %7087 = vst [vmem:[#allocation37_spill] sm:$0xff] %v5391_v15  ;;  %v5393_v16 = vpop.f32.mrb[11].mxu1 }
 0x251   :  { %7088 = vst [vmem:[#allocation38_spill] sm:$0xff] %v5393_v16 }
 0x253   :  { %v5395_v17 = vpop.f32.mrb[12].mxu1 }
 0x254   :  { %7089 = vst [vmem:[#allocation39_spill] sm:$0xff] %v5395_v17  ;;  %v5397_v30 = vpop.f32.mrb[13].mxu1 }
 0x255   :  { %7090 = vst [vmem:[#allocation40_spill] sm:$0xff] %v5397_v30 }
 0x257   :  { %v5399_v20 = vpop.f32.mrb[14].mxu1 }
 0x258   :  { %7091 = vst [vmem:[#allocation41_spill] sm:$0xff] %v5399_v20  ;;  %v5401_v23 = vpop.f32.mrb[15].mxu1 }
 0x259   :  { %7092 = vst [vmem:[#allocation42_spill] sm:$0xff] %v5401_v23 }
 0x25c   :  { %v3793_v25 = vpop.f32.mrb[16].mxu1 }
 0x25d   :  { %v806_v26 = vadd.f32 %v3793_v25, %v5406_v24  ;;  %v800_v27 = vpop.f32.mrb[17].mxu1 }
 0x25e   :  { %v801_v31 = vadd.f32 %v5406_v24, %v800_v27 }
 0x25f   :  { %v1080_v32 = vmul.f32 %v5371_v59, %v806_v26  ;;  %v880_v33 = vmul.f32 0.5, %v806_v26 }
 0x260   :  { %v879_v34 = vmul.f32 0.5, %v801_v31  ;;  %v3796_v35 = vpop.f32.mrb[18].mxu1  ;;  %3847 = vmatprep.mubr.f32.mxu0 %v801_v31  ;;  %v1079_v37 = vmul.f32 %v801_v31, %v5373_v60 }
 0x261   :  { %v816_v38 = vadd.f32 %v3796_v35, %v5406_v24  ;;  %1097 = vadd.xlane.f32.xlu1 %v1080_v32  ;;  %v810_v39 = vpop.f32.mrb[19].mxu1  ;;  %3848 = vmatmul.mubr.f32.vlgmr.msra.gmra.mrb[32].mxu0 %v806_v26  ;;  %v5419_v44 = vadd.f32 %v880_v33, %v5214_v47 }
 0x262   :  { %v811_v40 = vadd.f32 %v5406_v24, %v810_v39  ;;  %1095 = vadd.xlane.f32.xlu0 %v1079_v37  ;;  %v5415_v41 = vadd.f32 %v879_v34, %v5211_v9 }
 0x263   :  { %v1082_v43 = vmul.f32 %v5375_v28, %v816_v38  ;;  %v882_v45 = vmul.f32 0.5, %v816_v38 }
 0x264   :  { %v881_v46 = vmul.f32 0.5, %v811_v40  ;;  %v3799_v49 = vpop.f32.mrb[20].mxu1  ;;  %3850 = vmatprep.mubr.f32.mxu0 %v811_v40  ;;  %3903 = vmatprep.mubr.f32.mxu1 %v5415_v41  ;;  %v1081_v52 = vmul.f32 %v811_v40, %v5377_v0 }
 0x265   :  { %v826_v53 = vadd.f32 %v3799_v49, %v5406_v24  ;;  %1101 = vadd.xlane.f32.xlu1 %v1082_v43  ;;  %v820_v54 = vpop.f32.mrb[21].mxu1  ;;  %3851 = vmatmul.mubr.f32.gmra.mrb[34].mxu0 %v816_v38  ;;  %v5433_v27 = vadd.f32 %v882_v45, %v5220_v55 }
 0x266   :  { %v821_v9 = vadd.f32 %v5406_v24, %v820_v54  ;;  %3904 = vmatmul.mubr.f32.vlgmr.msra.gmra.mrb[32].mxu1 %v5419_v44  ;;  %1099 = vadd.xlane.f32.xlu0 %v1081_v52  ;;  %v5427_v47 = vadd.f32 %v881_v46, %v5216_v48 }
 0x267   :  { %v1084_v57 = vmul.f32 %v5379_v1, %v826_v53  ;;  %4434 = vmatpush3.bf16.msra.mxu1 %v5338_v63  ;;  %v884_v58 = vmul.f32 0.5, %v826_v53 }
 0x268   :  { %v883_v25 = vmul.f32 0.5, %v821_v9  ;;  %v3802_v26 = vpop.f32.mrb[22].mxu1  ;;  %3853 = vmatprep.mubr.f32.mxu0 %v821_v9  ;;  %3906 = vmatprep.mubr.f32.mxu1 %v5427_v47  ;;  %v1083_v31 = vmul.f32 %v821_v9, %v5381_v51 }
 0x269   :  { %v836_v32 = vadd.f32 %v3802_v26, %v5406_v24  ;;  %1105 = vadd.xlane.f32.xlu1 %v1084_v57  ;;  %v830_v48 = vpop.f32.mrb[23].mxu1  ;;  %3854 = vmatmul.mubr.f32.gmra.mrb[36].mxu0 %v826_v53  ;;  %v5446_v39 = vadd.f32 %v884_v58, %v5226_v61 }
 0x26a   :  { %v831_v33 = vadd.f32 %v5406_v24, %v830_v48  ;;  %3907 = vmatmul.mubr.f32.gmra.mrb[34].mxu1 %v5433_v27  ;;  %1103 = vadd.xlane.f32.xlu0 %v1083_v31  ;;  %v5440_v34 = vadd.f32 %v883_v25, %v5222_v56 }
 0x26b   :  { %v1086_v35 = vmul.f32 %v5383_v5, %v836_v32  ;;  %4436 = vmatprep.subr.bf16.mxu1 %v5342_v4  ;;  %v886_v55 = vmul.f32 0.5, %v836_v32 }
 0x26c   :  { %v885_v37 = vmul.f32 0.5, %v831_v33  ;;  %v3805_v38 = vpop.f32.mrb[24].mxu1  ;;  %3856 = vmatprep.mubr.f32.mxu0 %v831_v33  ;;  %3909 = vmatprep.mubr.f32.mxu1 %v5440_v34  ;;  %v1085_v40 = vmul.f32 %v831_v33, %v5385_v6 }
 0x26d   :  { %v846_v43 = vadd.f32 %v3805_v38, %v5406_v24  ;;  %1109 = vadd.xlane.f32.xlu1 %v1086_v35  ;;  %v840_v56 = vpop.f32.mrb[25].mxu1  ;;  %3857 = vmatmul.mubr.f32.gmra.mrb[38].mxu0 %v836_v32  ;;  %v5459_v54 = vadd.f32 %v886_v55, %v5232_v2 }
 0x26e   :  { %v841_v45 = vadd.f32 %v5406_v24, %v840_v56  ;;  %3910 = vmatmul.mubr.f32.gmra.mrb[36].mxu1 %v5446_v39  ;;  %1107 = vadd.xlane.f32.xlu0 %v1085_v40  ;;  %v5453_v46 = vadd.f32 %v885_v37, %v5228_v62 }
 0x26f   :  { %v1088_v49 = vmul.f32 %v5387_v10, %v846_v43  ;;  %4438 = vmatpush3.bf16.msra.mxu1 %v5342_v4  ;;  %v888_v61 = vmul.f32 0.5, %v846_v43 }
 0x270   :  { %v887_v52 = vmul.f32 0.5, %v841_v45  ;;  %v3808_v53 = vpop.f32.mrb[26].mxu1  ;;  %3859 = vmatprep.mubr.f32.mxu0 %v841_v45  ;;  %3912 = vmatprep.mubr.f32.mxu1 %v5453_v46  ;;  %v1087_v9 = vmul.f32 %v841_v45, %v5389_v11 }
 0x271   :  { %v856_v57 = vadd.f32 %v3808_v53, %v5406_v24  ;;  %1113 = vadd.xlane.f32.xlu1 %v1088_v49  ;;  %v850_v62 = vpop.f32.mrb[27].mxu1  ;;  %3860 = vmatmul.mubr.f32.gmra.mrb[40].mxu0 %v846_v43  ;;  %v5472_v48 = vadd.f32 %v888_v61, %v5238_v7 }
 0x272   :  { %v851_v58 = vadd.f32 %v5406_v24, %v850_v62  ;;  %3913 = vmatmul.mubr.f32.gmra.mrb[38].mxu1 %v5459_v54  ;;  %1111 = vadd.xlane.f32.xlu0 %v1087_v9  ;;  %v5466_v25 = vadd.f32 %v887_v52, %v5234_v3 }
 0x273   :  { %v1090_v26 = vmul.f32 %v5391_v15, %v856_v57  ;;  %4440 = vmatprep.subr.bf16.mxu1 %v5346_v12  ;;  %v890_v2 = vmul.f32 0.5, %v856_v57 }
 0x274   :  { %v889_v31 = vmul.f32 0.5, %v851_v58  ;;  %v3811_v32 = vpop.f32.mrb[28].mxu1  ;;  %3862 = vmatprep.mubr.f32.mxu0 %v851_v58  ;;  %3915 = vmatprep.mubr.f32.mxu1 %v5466_v25  ;;  %v1089_v33 = vmul.f32 %v851_v58, %v5393_v16 }
 0x275   :  { %v866_v35 = vadd.f32 %v3811_v32, %v5406_v24  ;;  %1117 = vadd.xlane.f32.xlu1 %v1090_v26  ;;  %v860_v3 = vpop.f32.mrb[29].mxu1  ;;  %3863 = vmatmul.mubr.f32.gmra.mrb[42].mxu0 %v856_v57  ;;  %v5485_v56 = vadd.f32 %v890_v2, %v5244_v13  ;;  %v1509_v26 = vld [vmem:[#allocation7 + $0x98] sm:$0xff]  ;;  %v1511_v32 = vld [vmem:[#allocation7 + $0xa8] sm:$0xff] }
 0x276   :  { %v861_v55 = vadd.f32 %v5406_v24, %v860_v3  ;;  %3916 = vmatmul.mubr.f32.gmra.mrb[40].mxu1 %v5472_v48  ;;  %1115 = vadd.xlane.f32.xlu0 %v1089_v33  ;;  %v5479_v37 = vadd.f32 %v889_v31, %v5240_v8  ;;  %v1510_v31 = vld [vmem:[#allocation7 + $0xa0] sm:$0xff]  ;;  %v1513_v3 = vld [vmem:[#allocation7 + $0xb8] sm:$0xff] }
 0x277   :  { %v1092_v38 = vmul.f32 %v5395_v17, %v866_v35  ;;  %4442 = vmatpush3.bf16.msra.mxu1 %v5346_v12  ;;  %v892_v7 = vmul.f32 0.5, %v866_v35  ;;  %v4407_v33 = vpack.c.bf16 %v1511_v32, %v1510_v31 }
 0x278   :  { %v891_v40 = vmul.f32 0.5, %v861_v55  ;;  %v3814_v43 = vpop.f32.mrb[30].mxu1  ;;  %3865 = vmatprep.mubr.f32.mxu0 %v861_v55  ;;  %3918 = vmatprep.mubr.f32.mxu1 %v5479_v37  ;;  %v1091_v45 = vmul.f32 %v861_v55, %v5397_v30 }
 0x279   :  { %v876_v49 = vadd.f32 %v3814_v43, %v5406_v24  ;;  %1121 = vadd.xlane.f32.xlu1 %v1092_v38  ;;  %v870_v8 = vpop.f32.mrb[31].mxu1  ;;  %3866 = vmatmul.mubr.f32.gmra.mrb[44].mxu0 %v866_v35  ;;  %v5498_v57 = vadd.f32 %v892_v7, %v5250_v18  ;;  %v1506_v18 = vld [vmem:[#allocation7 + $0x80] sm:$0xff]  ;;  %v1512_v35 = vld [vmem:[#allocation7 + $0xb0] sm:$0xff]  ;;  %v1515_v7 = vld [vmem:[#allocation7 + $0xc8] sm:$0xff] }
 0x27a   :  { %v871_v61 = vadd.f32 %v5406_v24, %v870_v8  ;;  %3919 = vmatmul.mubr.f32.gmra.mrb[42].mxu1 %v5485_v56  ;;  %1119 = vadd.xlane.f32.xlu0 %v1091_v45  ;;  %v5492_v52 = vadd.f32 %v891_v40, %v5246_v14  ;;  %v4411_v55 = vpack.c.bf16 %v1513_v3, %v1512_v35  ;;  %v1514_v38 = vld [vmem:[#allocation7 + $0xc0] sm:$0xff]  ;;  %v1516_v43 = vld [vmem:[#allocation7 + $0xd0] sm:$0xff]  ;;  %v1517_v45 = vld [vmem:[#allocation7 + $0xd8] sm:$0xff] }
 0x27b   :  { %v1094_v53 = vmul.f32 %v5399_v20, %v876_v49  ;;  %4444 = vmatprep.subr.bf16.mxu1 %v5350_v22  ;;  %v894_v13 = vmul.f32 0.5, %v876_v49  ;;  %v4415_v40 = vpack.c.bf16 %v1515_v7, %v1514_v38  ;;  %v1518_v8 = vld [vmem:[#allocation7 + $0xe0] sm:$0xff]  ;;  %v2127_v38 = vld [vmem:[#allocation5 + $0x110] sm:$0xff]  ;;  %v2128_v7 = vld [vmem:[#allocation5 + $0x118] sm:$0xff] }
 0x27c   :  { %v893_v9 = vmul.f32 0.5, %v871_v61  ;;  %3868 = vmatprep.mubr.f32.mxu0 %v871_v61  ;;  %3921 = vmatprep.mubr.f32.mxu1 %v5492_v52  ;;  %v1093_v24 = vmul.f32 %v871_v61, %v5401_v23  ;;  %v1519_v61 = vld [vmem:[#allocation7 + $0xe8] sm:$0xff] }
 0x27d   :  { %1125 = vadd.xlane.f32.xlu1 %v1094_v53  ;;  %3869 = vmatmul.mubr.f32.gmra.mrb[46].mxu0 %v876_v49  ;;  %v5508_v62 = vadd.f32 %v894_v13, %v5256_v21  ;;  %v1508_v21 = vld [vmem:[#allocation7 + $0x90] sm:$0xff]  ;;  %v4419_v49 = vpack.c.bf16 %v1517_v45, %v1516_v43  ;;  %v4423_v53 = vpack.c.bf16 %v1519_v61, %v1518_v8 }
 0x27e   :  { %3922 = vmatmul.mubr.f32.gmra.mrb[44].mxu1 %v5498_v57  ;;  %1123 = vadd.xlane.f32.xlu0 %v1093_v24  ;;  %v5503_v14 = vadd.f32 %v893_v9, %v5252_v19  ;;  %v1507_v19 = vld [vmem:[#allocation7 + $0x88] sm:$0xff]  ;;  %v4403_v2 = vpack.c.bf16 %v1509_v26, %v1508_v21  ;;  %v1520_v13 = vld [vmem:[#allocation7 + $0xf0] sm:$0xff]  ;;  %v1521_v9 = vld [vmem:[#allocation7 + $0xf8] sm:$0xff] }
 0x27f   :  { %4446 = vmatpush3.bf16.msra.mxu1 %v5350_v22  ;;  %v4399_v58 = vpack.c.bf16 %v1507_v19, %v1506_v18  ;;  %v4427_v24 = vpack.c.bf16 %v1521_v9, %v1520_v13  ;;  %v2125_v18 = vld [vmem:[#allocation5 + $0x100] sm:$0xff]  ;;  %v2126_v19 = vld [vmem:[#allocation5 + $0x108] sm:$0xff]  ;;  %v4467_v13 = vpack.c.bf16 %v2128_v7, %v2127_v38  ;;  %v2131_v7 = vld [vmem:[#allocation5 + $0x130] sm:$0xff] }
 0x280   :  { %3924 = vmatprep.mubr.f32.mxu1 %v5503_v14  ;;  %4448 = vmatprep.subr.bf16.mxu1 %v5354_v29  ;;  %v4463_v21 = vpack.c.bf16 %v2126_v19, %v2125_v18  ;;  %v2130_v18 = vld [vmem:[#allocation5 + $0x128] sm:$0xff] }
 0x281   :  { %4400 = vmatprep.subr.bf16.mxu0 %v4399_v58 }
 0x282   :  { %3925 = vmatmul.mubr.f32.gmra.mrb[46].mxu1 %v5508_v62  ;;  %4402 = vmatpush3.bf16.msra.mxu0 %v4399_v58 }
 0x283   :  { %4450 = vmatpush3.bf16.msra.mxu1 %v5354_v29  ;;  %4404 = vmatprep.subr.bf16.mxu0 %v4403_v2 }
 0x284   :  { %4452 = vmatprep.subr.bf16.mxu1 %v5358_v36 }
 0x286   :  { %4406 = vmatpush3.bf16.msra.mxu0 %v4403_v2  ;;  %v5526_v2 = vld [vmem:[%s6926_s2 + $0x1] ss:$0 sm:$0xff] }
 0x287   :  { %4454 = vmatpush3.bf16.msra.mxu1 %v5358_v36  ;;  %4408 = vmatprep.subr.bf16.mxu0 %v4407_v33 }
 0x288   :  { %4456 = vmatprep.subr.bf16.mxu1 %v5362_v42 }
 0x28a   :  { %4410 = vmatpush3.bf16.msra.mxu0 %v4407_v33 }
 0x28b   :  { %4458 = vmatpush3.bf16.msra.mxu1 %v5362_v42  ;;  %4412 = vmatprep.subr.bf16.mxu0 %v4411_v55 }
 0x28c   :  { %4460 = vmatprep.subr.bf16.mxu1 %v5366_v50 }
 0x28e   :  { %4414 = vmatpush3.bf16.msra.mxu0 %v4411_v55 }
 0x28f   :  { %4462 = vmatpush3.bf16.msra.mxu1 %v5366_v50  ;;  %4416 = vmatprep.subr.bf16.mxu0 %v4415_v40 }
 0x292   :  { %4418 = vmatpush3.bf16.msra.mxu0 %v4415_v40 }
 0x293   :  { %4420 = vmatprep.subr.bf16.mxu0 %v4419_v49 }
 0x296   :  { %4422 = vmatpush3.bf16.msra.mxu0 %v4419_v49 }
 0x297   :  { %4424 = vmatprep.subr.bf16.mxu0 %v4423_v53 }
 0x29a   :  { %4426 = vmatpush3.bf16.msra.mxu0 %v4423_v53 }
 0x29b   :  { %4428 = vmatprep.subr.bf16.mxu0 %v4427_v24 }
 0x29e   :  { %4430 = vmatpush3.bf16.msra.mxu0 %v4427_v24  ;;  %v2129_v24 = vld [vmem:[#allocation5 + $0x120] sm:$0xff] }
 0x29f   :  { %4464 = vmatprep.subr.bf16.mxu0 %v4463_v21 }
 0x334   :  { %v5519_v58 = vpop.f32.mrb[32].mxu0 }
 0x335   :  { %v5521_v26 = vpop.f32.mrb[33].mxu0 }
 0x338   :  { %v5528_v31 = vpop.f32.mrb[34].mxu0 }
 0x339   :  { %v3905_v32 = vpop.f32.mrb[32].mxu1  ;;  %v5530_v33 = vpop.f32.mrb[35].mxu0 }
 0x33a   :  { %v1416_v35 = vadd.f32 %v3905_v32, %v5526_v2  ;;  %v1410_v3 = vpop.f32.mrb[33].mxu1 }
 0x33b   :  { %v1411_v55 = vadd.f32 %v5526_v2, %v1410_v3 }
 0x33c   :  { %v5534_v40 = vpop.f32.mrb[36].mxu0  ;;  %v1490_v8 = vmax.f32 %v1416_v35, 0.0 }
 0x33d   :  { %7093 = vst [vmem:[#allocation43_spill] sm:$0xff] %v5534_v40  ;;  %v1489_v43 = vmax.f32 %v1411_v55, 0.0  ;;  %v3908_v45 = vpop.f32.mrb[34].mxu1  ;;  %v5536_v49 = vpop.f32.mrb[37].mxu0 }
 0x33e   :  { %7094 = vst [vmem:[#allocation44_spill] sm:$0xff] %v5536_v49  ;;  %v1426_v61 = vadd.f32 %v3908_v45, %v5526_v2  ;;  %v1420_v53 = vpop.f32.mrb[35].mxu1  ;;  %v4471_v45 = vpack.c.bf16 %v2130_v18, %v2129_v24  ;;  %v2134_v18 = vld [vmem:[#allocation5 + $0x148] sm:$0xff] }
 0x33f   :  { %v1421_v9 = vadd.f32 %v5526_v2, %v1420_v53  ;;  %3959 = vmatprep.mubr.f32.mxu0 %v1489_v43  ;;  %v2132_v43 = vld [vmem:[#allocation5 + $0x138] sm:$0xff] }
 0x340   :  { %3960 = vmatmul.mubr.f32.vlgmr.msra.gmra.mrb[48].mxu0 %v1490_v8  ;;  %v5540_v19 = vpop.f32.mrb[38].mxu0  ;;  %v1492_v55 = vmax.f32 %v1426_v61, 0.0 }
 0x341   :  { %7095 = vst [vmem:[#allocation45_spill] sm:$0xff] %v5540_v19  ;;  %v1491_v32 = vmax.f32 %v1421_v9, 0.0  ;;  %v3911_v3 = vpop.f32.mrb[36].mxu1  ;;  %v5542_v40 = vpop.f32.mrb[39].mxu0  ;;  %4466 = vmatpush3.bf16.msra.mxu0 %v4463_v21 }
 0x342   :  { %7096 = vst [vmem:[#allocation46_spill] sm:$0xff] %v5542_v40  ;;  %v1436_v35 = vadd.f32 %v3911_v3, %v5526_v2  ;;  %v1430_v49 = vpop.f32.mrb[37].mxu1  ;;  %4468 = vmatprep.subr.bf16.mxu0 %v4467_v13  ;;  %v4475_v40 = vpack.c.bf16 %v2132_v43, %v2131_v7  ;;  %v2135_v43 = vld [vmem:[#allocation5 + $0x150] sm:$0xff] }
 0x343   :  { %v1431_v38 = vadd.f32 %v5526_v2, %v1430_v49  ;;  %3962 = vmatprep.mubr.f32.mxu0 %v1491_v32  ;;  %v2133_v49 = vld [vmem:[#allocation5 + $0x140] sm:$0xff] }
 0x344   :  { %3963 = vmatmul.mubr.f32.gmra.mrb[50].mxu0 %v1492_v55  ;;  %v5546_v8 = vpop.f32.mrb[40].mxu0  ;;  %v1494_v21 = vmax.f32 %v1436_v35, 0.0 }
 0x345   :  { %7097 = vst [vmem:[#allocation47_spill] sm:$0xff] %v5546_v8  ;;  %v1493_v53 = vmax.f32 %v1431_v38, 0.0  ;;  %v3914_v9 = vpop.f32.mrb[38].mxu1  ;;  %v5548_v19 = vpop.f32.mrb[41].mxu0  ;;  %4470 = vmatpush3.bf16.msra.mxu0 %v4467_v13 }
 0x346   :  { %7098 = vst [vmem:[#allocation48_spill] sm:$0xff] %v5548_v19  ;;  %v1446_v61 = vadd.f32 %v3914_v9, %v5526_v2  ;;  %v1440_v3 = vpop.f32.mrb[39].mxu1  ;;  %4472 = vmatprep.subr.bf16.mxu0 %v4471_v45  ;;  %v4479_v19 = vpack.c.bf16 %v2134_v18, %v2133_v49 }
 0x347   :  { %v1441_v24 = vadd.f32 %v5526_v2, %v1440_v3  ;;  %3965 = vmatprep.mubr.f32.mxu0 %v1493_v53  ;;  %v2136_v53 = vld [vmem:[#allocation5 + $0x158] sm:$0xff] }
 0x348   :  { %3966 = vmatmul.mubr.f32.gmra.mrb[52].mxu0 %v1494_v21  ;;  %v5552_v32 = vpop.f32.mrb[42].mxu0  ;;  %v1496_v13 = vmax.f32 %v1446_v61, 0.0 }
 0x349   :  { %7099 = vst [vmem:[#allocation49_spill] sm:$0xff] %v5552_v32  ;;  %v1495_v55 = vmax.f32 %v1441_v24, 0.0  ;;  %v3917_v38 = vpop.f32.mrb[40].mxu1  ;;  %v5554_v8 = vpop.f32.mrb[43].mxu0  ;;  %4474 = vmatpush3.bf16.msra.mxu0 %v4471_v45 }
 0x34a   :  { %7100 = vst [vmem:[#allocation50_spill] sm:$0xff] %v5554_v8  ;;  %v1456_v35 = vadd.f32 %v3917_v38, %v5526_v2  ;;  %v1450_v9 = vpop.f32.mrb[41].mxu1  ;;  %4476 = vmatprep.subr.bf16.mxu0 %v4475_v40  ;;  %v4483_v8 = vpack.c.bf16 %v2136_v53, %v2135_v43 }
 0x34b   :  { %v1451_v7 = vadd.f32 %v5526_v2, %v1450_v9  ;;  %3968 = vmatprep.mubr.f32.mxu0 %v1495_v55 }
 0x34c   :  { %3969 = vmatmul.mubr.f32.gmra.mrb[54].mxu0 %v1496_v13  ;;  %v5558_v21 = vpop.f32.mrb[44].mxu0  ;;  %v1498_v45 = vmax.f32 %v1456_v35, 0.0 }
 0x34d   :  { %7101 = vst [vmem:[#allocation51_spill] sm:$0xff] %v5558_v21  ;;  %v1497_v3 = vmax.f32 %v1451_v7, 0.0  ;;  %v3920_v24 = vpop.f32.mrb[42].mxu1  ;;  %v5560_v32 = vpop.f32.mrb[45].mxu0  ;;  %4478 = vmatpush3.bf16.msra.mxu0 %v4475_v40 }
 0x34e   :  { %7102 = vst [vmem:[#allocation52_spill] sm:$0xff] %v5560_v32  ;;  %v1466_v61 = vadd.f32 %v3920_v24, %v5526_v2  ;;  %v1460_v38 = vpop.f32.mrb[43].mxu1  ;;  %4480 = vmatprep.subr.bf16.mxu0 %v4479_v19 }
 0x34f   :  { %v1461_v49 = vadd.f32 %v5526_v2, %v1460_v38  ;;  %3971 = vmatprep.mubr.f32.mxu0 %v1497_v3 }
 0x350   :  { %3972 = vmatmul.mubr.f32.gmra.mrb[56].mxu0 %v1498_v45  ;;  %v5564_v18 = vpop.f32.mrb[46].mxu0  ;;  %v1500_v7 = vmax.f32 %v1466_v61, 0.0 }
 0x351   :  { %7103 = vst [vmem:[#allocation53_spill] sm:$0xff] %v5564_v18  ;;  %v1499_v55 = vmax.f32 %v1461_v49, 0.0  ;;  %v3923_v13 = vpop.f32.mrb[44].mxu1  ;;  %v5566_v9 = vpop.f32.mrb[47].mxu0  ;;  %4482 = vmatpush3.bf16.msra.mxu0 %v4479_v19 }
 0x352   :  { %7104 = vst [vmem:[#allocation54_spill] sm:$0xff] %v5566_v9  ;;  %v1476_v40 = vadd.f32 %v3923_v13, %v5526_v2  ;;  %v1470_v35 = vpop.f32.mrb[45].mxu1  ;;  %4484 = vmatprep.subr.bf16.mxu0 %v4483_v8  ;;  %v2137_v13 = vld [vmem:[#allocation5 + $0x160] sm:$0xff]  ;;  %v2138_v9 = vld [vmem:[#allocation5 + $0x168] sm:$0xff] }
 0x353   :  { %v1471_v24 = vadd.f32 %v5526_v2, %v1470_v35  ;;  %3974 = vmatprep.mubr.f32.mxu0 %v1499_v55  ;;  %v4487_v35 = vpack.c.bf16 %v2138_v9, %v2137_v13  ;;  %v2139_v55 = vld [vmem:[#allocation5 + $0x170] sm:$0xff] }
 0x354   :  { %3975 = vmatmul.mubr.f32.gmra.mrb[58].mxu0 %v1500_v7  ;;  %v1502_v3 = vmax.f32 %v1476_v40, 0.0  ;;  %v2140_v7 = vld [vmem:[#allocation5 + $0x178] sm:$0xff] }
 0x355   :  { %v1501_v43 = vmax.f32 %v1471_v24, 0.0  ;;  %v3926_v53 = vpop.f32.mrb[46].mxu1  ;;  %4486 = vmatpush3.bf16.msra.mxu0 %v4483_v8  ;;  %v4491_v24 = vpack.c.bf16 %v2140_v7, %v2139_v55 }
 0x356   :  { %v1486_v45 = vadd.f32 %v3926_v53, %v5526_v2  ;;  %v1480_v38 = vpop.f32.mrb[47].mxu1  ;;  %4488 = vmatprep.subr.bf16.mxu0 %v4487_v35 }
 0x357   :  { %v1481_v49 = vadd.f32 %v5526_v2, %v1480_v38  ;;  %3977 = vmatprep.mubr.f32.mxu0 %v1501_v43  ;;  %v5576_v2 = vld [vmem:[%s6928_s4 + $0x1] ss:$0 sm:$0xff] }
 0x358   :  { %3978 = vmatmul.mubr.f32.gmra.mrb[60].mxu0 %v1502_v3  ;;  %v1504_v61 = vmax.f32 %v1486_v45, 0.0 }
 0x359   :  { %v1503_v19 = vmax.f32 %v1481_v49, 0.0  ;;  %4490 = vmatpush3.bf16.msra.mxu0 %v4487_v35 }
 0x35a   :  { %4492 = vmatprep.subr.bf16.mxu0 %v4491_v24 }
 0x35b   :  { %3980 = vmatprep.mubr.f32.mxu0 %v1503_v19 }
 0x35c   :  { %3981 = vmatmul.mubr.f32.gmra.mrb[62].mxu0 %v1504_v61 }
 0x35d   :  { %4494 = vmatpush3.bf16.msra.mxu0 %v4491_v24 }
 0x35e   :  { %4528 = vmatprep.subr.bf16.mxu0 %v5338_v63 }
 0x413   :  { %v3961_v8 = vpop.f32.mrb[48].mxu0 }
 0x414   :  { %v1602_v40 = vadd.f32 %v3961_v8, %v5576_v2  ;;  %v1596_v43 = vpop.f32.mrb[49].mxu0 }
 0x415   :  { %v1597_v9 = vadd.f32 %v5576_v2, %v1596_v43 }
 0x416   :  { %v1853_v53 = vmul.f32 %v5371_v59, %v1602_v40  ;;  %v1676_v3 = vmul.f32 0.5, %v1602_v40 }
 0x417   :  { %v1675_v45 = vmul.f32 0.5, %v1597_v9  ;;  %v3964_v38 = vpop.f32.mrb[50].mxu0  ;;  %4015 = vmatprep.mubr.f32.mxu1 %v1597_v9  ;;  %v1852_v49 = vmul.f32 %v1597_v9, %v5373_v60 }
 0x418   :  { %v1612_v19 = vadd.f32 %v3964_v38, %v5576_v2  ;;  %1870 = vadd.xlane.f32.xlu1 %v1853_v53  ;;  %v1606_v61 = vpop.f32.mrb[51].mxu0  ;;  %4016 = vmatmul.mubr.f32.vlgmr.msra.gmra.mrb[48].mxu1 %v1602_v40  ;;  %v1692_v7 = vadd.f32 %v1676_v3, %v5419_v44 }
 0x419   :  { %v1607_v13 = vadd.f32 %v5576_v2, %v1606_v61  ;;  %1868 = vadd.xlane.f32.xlu0 %v1852_v49  ;;  %v1691_v35 = vadd.f32 %v1675_v45, %v5415_v41 }
 0x41a   :  { %v1855_v55 = vmul.f32 %v5375_v28, %v1612_v19  ;;  %v1678_v24 = vmul.f32 0.5, %v1612_v19 }
 0x41b   :  { %v1677_v8 = vmul.f32 0.5, %v1607_v13  ;;  %v3967_v43 = vpop.f32.mrb[52].mxu0  ;;  %4018 = vmatprep.mubr.f32.mxu1 %v1607_v13  ;;  %4071 = vmatprep.mubr.f32.mxu0 %v1691_v35  ;;  %v1854_v9 = vmul.f32 %v1607_v13, %v5377_v0 }
 0x41c   :  { %v1622_v53 = vadd.f32 %v3967_v43, %v5576_v2  ;;  %1874 = vadd.xlane.f32.xlu1 %v1855_v55  ;;  %v1616_v40 = vpop.f32.mrb[53].mxu0  ;;  %4019 = vmatmul.mubr.f32.gmra.mrb[50].mxu1 %v1612_v19  ;;  %v1694_v61 = vadd.f32 %v1678_v24, %v5433_v27 }
 0x41d   :  { %v1617_v38 = vadd.f32 %v5576_v2, %v1616_v40  ;;  %4072 = vmatmul.mubr.f32.vlgmr.msra.gmra.mrb[64].mxu0 %v1692_v7  ;;  %1872 = vadd.xlane.f32.xlu0 %v1854_v9  ;;  %v1693_v41 = vadd.f32 %v1677_v8, %v5427_v47 }
 0x41e   :  { %v1857_v44 = vmul.f32 %v5379_v1, %v1622_v53  ;;  %4530 = vmatpush3.bf16.msra.mxu0 %v5338_v63  ;;  %v1680_v3 = vmul.f32 0.5, %v1622_v53 }
 0x41f   :  { %v1679_v45 = vmul.f32 0.5, %v1617_v38  ;;  %v3970_v49 = vpop.f32.mrb[54].mxu0  ;;  %4021 = vmatprep.mubr.f32.mxu1 %v1617_v38  ;;  %4074 = vmatprep.mubr.f32.mxu0 %v1693_v41  ;;  %v1856_v13 = vmul.f32 %v1617_v38, %v5381_v51 }
 0x420   :  { %v1632_v19 = vadd.f32 %v3970_v49, %v5576_v2  ;;  %1878 = vadd.xlane.f32.xlu1 %v1857_v44  ;;  %v1626_v35 = vpop.f32.mrb[55].mxu0  ;;  %4022 = vmatmul.mubr.f32.gmra.mrb[52].mxu1 %v1622_v53  ;;  %v1696_v24 = vadd.f32 %v1680_v3, %v5446_v39 }
 0x421   :  { %v1627_v47 = vadd.f32 %v5576_v2, %v1626_v35  ;;  %4075 = vmatmul.mubr.f32.gmra.mrb[66].mxu0 %v1694_v61  ;;  %1876 = vadd.xlane.f32.xlu0 %v1856_v13  ;;  %v1695_v55 = vadd.f32 %v1679_v45, %v5440_v34 }
 0x422   :  { %v1859_v7 = vmul.f32 %v5383_v5, %v1632_v19  ;;  %4532 = vmatprep.subr.bf16.mxu0 %v5342_v4  ;;  %v1682_v8 = vmul.f32 0.5, %v1632_v19 }
 0x423   :  { %v1681_v43 = vmul.f32 0.5, %v1627_v47  ;;  %v3973_v27 = vpop.f32.mrb[56].mxu0  ;;  %4024 = vmatprep.mubr.f32.mxu1 %v1627_v47  ;;  %4077 = vmatprep.mubr.f32.mxu0 %v1695_v55  ;;  %v1858_v9 = vmul.f32 %v1627_v47, %v5385_v6 }
 0x424   :  { %v1642_v53 = vadd.f32 %v3973_v27, %v5576_v2  ;;  %1882 = vadd.xlane.f32.xlu1 %v1859_v7  ;;  %v1636_v40 = vpop.f32.mrb[57].mxu0  ;;  %4025 = vmatmul.mubr.f32.gmra.mrb[54].mxu1 %v1632_v19  ;;  %v1698_v3 = vadd.f32 %v1682_v8, %v5459_v54 }
 0x425   :  { %v1637_v34 = vadd.f32 %v5576_v2, %v1636_v40  ;;  %4078 = vmatmul.mubr.f32.gmra.mrb[68].mxu0 %v1696_v24  ;;  %1880 = vadd.xlane.f32.xlu0 %v1858_v9  ;;  %v1697_v38 = vadd.f32 %v1681_v43, %v5453_v46 }
 0x426   :  { %v1861_v41 = vmul.f32 %v5387_v10, %v1642_v53  ;;  %4534 = vmatpush3.bf16.msra.mxu0 %v5342_v4  ;;  %v1684_v44 = vmul.f32 0.5, %v1642_v53 }
 0x427   :  { %v1683_v45 = vmul.f32 0.5, %v1637_v34  ;;  %v3976_v39 = vpop.f32.mrb[58].mxu0  ;;  %4027 = vmatprep.mubr.f32.mxu1 %v1637_v34  ;;  %4080 = vmatprep.mubr.f32.mxu0 %v1697_v38  ;;  %v1860_v49 = vmul.f32 %v1637_v34, %v5389_v11 }
 0x428   :  { %v1652_v61 = vadd.f32 %v3976_v39, %v5576_v2  ;;  %1886 = vadd.xlane.f32.xlu1 %v1861_v41  ;;  %v1646_v13 = vpop.f32.mrb[59].mxu0  ;;  %4028 = vmatmul.mubr.f32.gmra.mrb[56].mxu1 %v1642_v53  ;;  %v1700_v7 = vadd.f32 %v1684_v44, %v5472_v48 }
 0x429   :  { %v1647_v46 = vadd.f32 %v5576_v2, %v1646_v13  ;;  %4081 = vmatmul.mubr.f32.gmra.mrb[70].mxu0 %v1698_v3  ;;  %1884 = vadd.xlane.f32.xlu0 %v1860_v49  ;;  %v1699_v19 = vadd.f32 %v1683_v45, %v5466_v25 }
 0x42a   :  { %v1863_v35 = vmul.f32 %v5391_v15, %v1652_v61  ;;  %4536 = vmatprep.subr.bf16.mxu0 %v5346_v12  ;;  %v1686_v47 = vmul.f32 0.5, %v1652_v61 }
 0x42b   :  { %v1685_v55 = vmul.f32 0.5, %v1647_v46  ;;  %v3979_v54 = vpop.f32.mrb[60].mxu0  ;;  %4030 = vmatprep.mubr.f32.mxu1 %v1647_v46  ;;  %4083 = vmatprep.mubr.f32.mxu0 %v1699_v19  ;;  %v1862_v8 = vmul.f32 %v1647_v46, %v5393_v16  ;;  %v2311_v19 = vld [vmem:[#allocation7 + $0x100] sm:$0xff] }
 0x42c   :  { %v1662_v43 = vadd.f32 %v3979_v54, %v5576_v2  ;;  %1890 = vadd.xlane.f32.xlu1 %v1863_v35  ;;  %v1656_v27 = vpop.f32.mrb[61].mxu0  ;;  %4031 = vmatmul.mubr.f32.gmra.mrb[58].mxu1 %v1652_v61  ;;  %v1702_v34 = vadd.f32 %v1686_v47, %v5485_v56  ;;  %v2312_v35 = vld [vmem:[#allocation7 + $0x108] sm:$0xff] }
 0x42d   :  { %v1657_v25 = vadd.f32 %v5576_v2, %v1656_v27  ;;  %4084 = vmatmul.mubr.f32.gmra.mrb[72].mxu0 %v1700_v7  ;;  %1888 = vadd.xlane.f32.xlu0 %v1862_v8  ;;  %v1701_v24 = vadd.f32 %v1685_v55, %v5479_v37  ;;  %v4495_v47 = vpack.c.bf16 %v2312_v35, %v2311_v19  ;;  %v2313_v7 = vld [vmem:[#allocation7 + $0x110] sm:$0xff]  ;;  %v2314_v8 = vld [vmem:[#allocation7 + $0x118] sm:$0xff] }
 0x42e   :  { %v1865_v9 = vmul.f32 %v5395_v17, %v1662_v43  ;;  %4538 = vmatpush3.bf16.msra.mxu0 %v5346_v12  ;;  %v1688_v53 = vmul.f32 0.5, %v1662_v43  ;;  %v4499_v27 = vpack.c.bf16 %v2314_v8, %v2313_v7  ;;  %v2325_v35 = vld [vmem:[#allocation7 + $0x170] sm:$0xff] }
 0x42f   :  { %v1687_v40 = vmul.f32 0.5, %v1657_v25  ;;  %v3982_v48 = vpop.f32.mrb[62].mxu0  ;;  %4033 = vmatprep.mubr.f32.mxu1 %v1657_v25  ;;  %4086 = vmatprep.mubr.f32.mxu0 %v1701_v24  ;;  %v1864_v38 = vmul.f32 %v1657_v25, %v5397_v30  ;;  %v2316_v25 = vld [vmem:[#allocation7 + $0x128] sm:$0xff] }
 0x430   :  { %v1672_v41 = vadd.f32 %v3982_v48, %v5576_v2  ;;  %1894 = vadd.xlane.f32.xlu1 %v1865_v9  ;;  %v1666_v44 = vpop.f32.mrb[63].mxu0  ;;  %4034 = vmatmul.mubr.f32.gmra.mrb[60].mxu1 %v1662_v43  ;;  %v1704_v56 = vadd.f32 %v1688_v53, %v5498_v57  ;;  %v5641_v57 = vpop.xlane.xlu1 %501  ;;  %v2315_v43 = vld [vmem:[#allocation7 + $0x120] sm:$0xff]  ;;  %v2317_v9 = vld [vmem:[#allocation7 + $0x130] sm:$0xff]  ;;  %v2318_v53 = vld [vmem:[#allocation7 + $0x138] sm:$0xff] }
 0x431   :  { %v1667_v37 = vadd.f32 %v5576_v2, %v1666_v44  ;;  %4087 = vmatmul.mubr.f32.gmra.mrb[74].mxu0 %v1702_v34  ;;  %1892 = vadd.xlane.f32.xlu0 %v1864_v38  ;;  %v1703_v45 = vadd.f32 %v1687_v40, %v5492_v52  ;;  %7105 = vst [vmem:[#allocation55_spill] sm:$0xff] %v5641_v57  ;;  %v2319_v38 = vld [vmem:[#allocation7 + $0x140] sm:$0xff] }
 0x432   :  { %v1867_v39 = vmul.f32 %v5399_v20, %v1672_v41  ;;  %4540 = vmatprep.subr.bf16.mxu0 %v5350_v22  ;;  %v1690_v3 = vmul.f32 0.5, %v1672_v41  ;;  %4496 = vmatprep.subr.bf16.mxu1 %v4495_v47  ;;  %v4503_v24 = vpack.c.bf16 %v2316_v25, %v2315_v43  ;;  %v4507_v48 = vpack.c.bf16 %v2318_v53, %v2317_v9 }
 0x433   :  { %v1689_v49 = vmul.f32 0.5, %v1667_v37  ;;  %4036 = vmatprep.mubr.f32.mxu1 %v1667_v37  ;;  %4089 = vmatprep.mubr.f32.mxu0 %v1703_v45  ;;  %v1866_v61 = vmul.f32 %v1667_v37, %v5401_v23  ;;  %v2321_v37 = vld [vmem:[#allocation7 + $0x150] sm:$0xff]  ;;  %v2322_v45 = vld [vmem:[#allocation7 + $0x158] sm:$0xff] }
 0x434   :  { %1898 = vadd.xlane.f32.xlu1 %v1867_v39  ;;  %4037 = vmatmul.mubr.f32.gmra.mrb[62].mxu1 %v1672_v41  ;;  %v1706_v52 = vadd.f32 %v1690_v3, %v5508_v62  ;;  %v5645_v62 = vpop.xlane.xlu1 %499  ;;  %v2320_v41 = vld [vmem:[#allocation7 + $0x148] sm:$0xff] }
 0x435   :  { %4090 = vmatmul.mubr.f32.gmra.mrb[76].mxu0 %v1704_v56  ;;  %1896 = vadd.xlane.f32.xlu0 %v1866_v61  ;;  %v1705_v2 = vadd.f32 %v1689_v49, %v5503_v14  ;;  %v5643_v14 = vpop.xlane.xlu0 %497  ;;  %7107 = vst [vmem:[#allocation57_spill] sm:$0xff] %v5645_v62  ;;  %v4511_v44 = vpack.c.bf16 %v2320_v41, %v2319_v38  ;;  %v2323_v56 = vld [vmem:[#allocation7 + $0x160] sm:$0xff]  ;;  %v2324_v61 = vld [vmem:[#allocation7 + $0x168] sm:$0xff] }
 0x436   :  { %4542 = vmatpush3.bf16.msra.mxu0 %v5350_v22  ;;  %7106 = vst [vmem:[#allocation56_spill] sm:$0xff] %v5643_v14  ;;  %4498 = vmatpush3.bf16.msra.mxu1 %v4495_v47  ;;  %v4515_v49 = vpack.c.bf16 %v2322_v45, %v2321_v37  ;;  %v2326_v47 = vld [vmem:[#allocation7 + $0x178] sm:$0xff] }
 0x437   :  { %4092 = vmatprep.mubr.f32.mxu0 %v1705_v2  ;;  %4544 = vmatprep.subr.bf16.mxu0 %v5354_v29  ;;  %v4523_v7 = vpack.c.bf16 %v2326_v47, %v2325_v35 }
 0x438   :  { %v5649_v46 = vpop.xlane.xlu1 %505  ;;  %4500 = vmatprep.subr.bf16.mxu1 %v4499_v27 }
 0x439   :  { %4093 = vmatmul.mubr.f32.gmra.mrb[78].mxu0 %v1706_v52  ;;  %v5647_v13 = vpop.xlane.xlu0 %495  ;;  %7109 = vst [vmem:[#allocation59_spill] sm:$0xff] %v5649_v46  ;;  %v4519_v52 = vpack.c.bf16 %v2324_v61, %v2323_v56 }
 0x43a   :  { %4546 = vmatpush3.bf16.msra.mxu0 %v5354_v29  ;;  %7108 = vst [vmem:[#allocation58_spill] sm:$0xff] %v5647_v13  ;;  %4502 = vmatpush3.bf16.msra.mxu1 %v4499_v27 }
 0x43b   :  { %4548 = vmatprep.subr.bf16.mxu0 %v5358_v36  ;;  %4504 = vmatprep.subr.bf16.mxu1 %v4503_v24 }
 0x43c   :  { %v5653_v54 = vpop.xlane.xlu1 %509 }
 0x43d   :  { %v5651_v55 = vpop.xlane.xlu0 %503  ;;  %7111 = vst [vmem:[#allocation61_spill] sm:$0xff] %v5653_v54 }
 0x43e   :  { %4550 = vmatpush3.bf16.msra.mxu0 %v5358_v36  ;;  %7110 = vst [vmem:[#allocation60_spill] sm:$0xff] %v5651_v55  ;;  %4506 = vmatpush3.bf16.msra.mxu1 %v4503_v24 }
 0x43f   :  { %4552 = vmatprep.subr.bf16.mxu0 %v5362_v42  ;;  %4508 = vmatprep.subr.bf16.mxu1 %v4507_v48 }
 0x440   :  { %v5657_v34 = vpop.xlane.xlu1 %513 }
 0x441   :  { %v5655_v40 = vpop.xlane.xlu0 %507  ;;  %7113 = vst [vmem:[#allocation63_spill] sm:$0xff] %v5657_v34 }
 0x442   :  { %4554 = vmatpush3.bf16.msra.mxu0 %v5362_v42  ;;  %7112 = vst [vmem:[#allocation62_spill] sm:$0xff] %v5655_v40  ;;  %4510 = vmatpush3.bf16.msra.mxu1 %v4507_v48 }
 0x443   :  { %4556 = vmatprep.subr.bf16.mxu0 %v5366_v50  ;;  %4512 = vmatprep.subr.bf16.mxu1 %v4511_v44 }
 0x444   :  { %v5661_v3 = vpop.xlane.xlu1 %517 }
 0x445   :  { %v5659_v39 = vpop.xlane.xlu0 %511  ;;  %7115 = vst [vmem:[#allocation65_spill] sm:$0xff] %v5661_v3 }
 0x446   :  { %4558 = vmatpush3.bf16.msra.mxu0 %v5366_v50  ;;  %7114 = vst [vmem:[#allocation64_spill] sm:$0xff] %v5659_v39  ;;  %4514 = vmatpush3.bf16.msra.mxu1 %v4511_v44 }
 0x447   :  { %4516 = vmatprep.subr.bf16.mxu1 %v4515_v49 }
 0x448   :  { %v5665_v19 = vpop.xlane.xlu1 %521 }
 0x449   :  { %v5663_v2 = vpop.xlane.xlu0 %515  ;;  %7117 = vst [vmem:[#allocation67_spill] sm:$0xff] %v5665_v19 }
 0x44a   :  { %7116 = vst [vmem:[#allocation66_spill] sm:$0xff] %v5663_v2  ;;  %4518 = vmatpush3.bf16.msra.mxu1 %v4515_v49 }
 0x44b   :  { %4520 = vmatprep.subr.bf16.mxu1 %v4519_v52 }
 0x44c   :  { %v5669_v43 = vpop.xlane.xlu1 %525 }
 0x44d   :  { %v5667_v8 = vpop.xlane.xlu0 %519  ;;  %7119 = vst [vmem:[#allocation69_spill] sm:$0xff] %v5669_v43 }
 0x44e   :  { %7118 = vst [vmem:[#allocation68_spill] sm:$0xff] %v5667_v8  ;;  %4522 = vmatpush3.bf16.msra.mxu1 %v4519_v52 }
 0x44f   :  { %4524 = vmatprep.subr.bf16.mxu1 %v4523_v7 }
 0x450   :  { %v1098_v27 = vpop.xlane.xlu1 %1097 }
 0x451   :  { %v5671_v25 = vpop.xlane.xlu0 %523  ;;  %v1128_v44 = vadd.f32 %v1098_v27, %v5643_v14 }
 0x452   :  { %4526 = vmatpush3.bf16.msra.mxu1 %v4523_v7  ;;  %7120 = vst [vmem:[#allocation70_spill] sm:$0xff] %v5671_v25 }
 0x453   :  { %4559 = vmatprep.subr.bf16.mxu1 %v5338_v63  ;;  %v5676_v45 = vmul.f32 0.17677669, %v1128_v44 }
 0x454   :  { %v1102_v9 = vpop.xlane.xlu1 %1101 }
 0x455   :  { %v1096_v24 = vpop.xlane.xlu0 %1095  ;;  %v1130_v49 = vadd.f32 %v1102_v9, %v5641_v57  ;;  %v1208_v47 = vsub.f32 %v5676_v45, %v5676_v45  ;;  %v1160_v9 = vsub.f32 -inf, %v5676_v45 }
 0x456   :  { %v1127_v37 = vadd.f32 %v1096_v24, %v5647_v13 }
 0x457   :  { %v5684_v7 = vmul.f32 0.17677669, %v1130_v49  ;;  %v1225_v30 = vmul.f32 1.442695, %v1208_v47 }
 0x458   :  { %v1106_v48 = vpop.xlane.xlu1 %1105  ;;  %v5679_v61 = vmul.f32 0.17677669, %v1127_v37 }
 0x459   :  { %v1100_v53 = vpop.xlane.xlu0 %1099  ;;  %v1132_v24 = vadd.f32 %v1106_v48, %v5649_v46  ;;  %v1210_v49 = vsub.f32 %v5684_v7, %v5684_v7  ;;  %v1162_v16 = vsub.f32 -inf, %v5684_v7  ;;  %v1177_v48 = vmul.f32 1.442695, %v1160_v9 }
 0x45a   :  { %v1129_v52 = vadd.f32 %v1100_v53, %v5645_v62  ;;  %v1207_v27 = vsub.f32 %v5679_v61, %v5679_v61  ;;  %v1159_v37 = vsub.f32 -inf, %v5679_v61  ;;  %4584 = vpow2.f32 %v1225_v30 }
 0x45b   :  { %v5699_v15 = vmul.f32 0.17677669, %v1132_v24  ;;  %v1229_v47 = vmul.f32 1.442695, %v1210_v49  ;;  %v1181_v51 = vmul.f32 1.442695, %v1162_v16 }
 0x45c   :  { %v1110_v41 = vpop.xlane.xlu1 %1109  ;;  %v5688_v23 = vmul.f32 0.17677669, %v1129_v52  ;;  %v1223_v17 = vmul.f32 1.442695, %v1207_v27  ;;  %v1175_v10 = vmul.f32 1.442695, %v1159_v37 }
 0x45d   :  { %v1104_v38 = vpop.xlane.xlu0 %1103  ;;  %v1134_v11 = vadd.f32 %v1110_v41, %v5653_v54  ;;  %v1212_v24 = vsub.f32 %v5699_v15, %v5699_v15  ;;  %v1164_v9 = vsub.f32 -inf, %v5699_v15 }
 0x45e   :  { %v1131_v53 = vadd.f32 %v1104_v38, %v5651_v55  ;;  %v1209_v52 = vsub.f32 %v5688_v23, %v5688_v23  ;;  %v1161_v5 = vsub.f32 -inf, %v5688_v23  ;;  %4586 = vpow2.f32 %v1223_v17 }
 0x45f   :  { %v5709_v41 = vmul.f32 0.17677669, %v1134_v11  ;;  %4588 = vpow2.f32 %v1177_v48  ;;  %v1233_v49 = vmul.f32 1.442695, %v1212_v24 }
 0x460   :  { %v1114_v35 = vpop.xlane.xlu1 %1113  ;;  %v5702_v6 = vmul.f32 0.17677669, %v1131_v53  ;;  %v1227_v1 = vmul.f32 1.442695, %v1209_v52  ;;  %4590 = vpow2.f32 %v1175_v10  ;;  %v1179_v16 = vmul.f32 1.442695, %v1161_v5 }
 0x461   :  { %v1108_v56 = vpop.xlane.xlu0 %1107  ;;  %v1136_v37 = vadd.f32 %v1114_v35, %v5657_v34  ;;  %4592 = vpow2.f32 %v1229_v47  ;;  %v1185_v52 = vmul.f32 1.442695, %v1164_v9  ;;  %v1214_v35 = vsub.f32 %v5709_v41, %v5709_v41 }
 0x462   :  { %v1133_v38 = vadd.f32 %v1108_v56, %v5655_v40  ;;  %v1163_v30 = vsub.f32 -inf, %v5702_v6  ;;  %v1211_v56 = vsub.f32 %v5702_v6, %v5702_v6  ;;  %4594 = vpow2.f32 %v1227_v1 }
 0x463   :  { %v5721_v48 = vmul.f32 0.17677669, %v1136_v37  ;;  %4596 = vpow2.f32 %v1181_v51  ;;  %v1166_v1 = vsub.f32 -inf, %v5709_v41  ;;  %v1237_v37 = vmul.f32 1.442695, %v1214_v35 }
 0x464   :  { %v1118_v20 = vpop.xlane.xlu1 %1117  ;;  %v5715_v53 = vmul.f32 0.17677669, %v1133_v38  ;;  %v1183_v38 = vmul.f32 1.442695, %v1163_v30  ;;  %v1231_v59 = vmul.f32 1.442695, %v1211_v56  ;;  %4598 = vpow2.f32 %v1179_v16  ;;  %v5734_v9 = vpop.eup %4584 }
 0x465   :  { %v1112_v44 = vpop.xlane.xlu0 %1111  ;;  %v1138_v11 = vadd.f32 %v1118_v20, %v5661_v3  ;;  %7121 = vst [vmem:[#allocation71_spill] sm:$0xff] %v5721_v48  ;;  %4600 = vpow2.f32 %v1233_v49  ;;  %7124 = vst [vmem:[#allocation74_spill] sm:$0xff] %v5734_v9  ;;  %v1216_v51 = vsub.f32 %v5721_v48, %v5721_v48  ;;  %v1168_v16 = vsub.f32 -inf, %v5721_v48 }
 0x466   :  { %v1135_v17 = vadd.f32 %v1112_v44, %v5659_v39  ;;  %v1213_v5 = vsub.f32 %v5715_v53, %v5715_v53  ;;  %v1165_v47 = vsub.f32 -inf, %v5715_v53  ;;  %4602 = vpow2.f32 %v1231_v59 }
 0x467   :  { %v5731_v24 = vmul.f32 0.17677669, %v1138_v11  ;;  %v1189_v11 = vmul.f32 1.442695, %v1166_v1  ;;  %4604 = vpow2.f32 %v1185_v52  ;;  %v1193_v52 = vmul.f32 1.442695, %v1168_v16 }
 0x468   :  { %v1122_v0 = vpop.xlane.xlu1 %1121  ;;  %v5727_v44 = vmul.f32 0.17677669, %v1135_v17  ;;  %v5741_v17 = vpop.eup %4586  ;;  %4606 = vpow2.f32 %v1183_v38 }
 0x469   :  { %v1116_v27 = vpop.xlane.xlu0 %1115  ;;  %v1140_v20 = vadd.f32 %v1122_v0, %v5665_v19  ;;  %7123 = vst [vmem:[#allocation73_spill] sm:$0xff] %v5731_v24  ;;  %7126 = vst [vmem:[#allocation76_spill] sm:$0xff] %v5741_v17  ;;  %v1235_v0 = vmul.f32 1.442695, %v1213_v5  ;;  %v5744_v49 = vpop.eup %4588  ;;  %v1170_v42 = vsub.f32 -inf, %v5731_v24  ;;  %4608 = vpow2.f32 %v1237_v37 }
 0x46a   :  { %v1137_v28 = vadd.f32 %v1116_v27, %v5663_v2  ;;  %7122 = vst [vmem:[#allocation72_spill] sm:$0xff] %v5727_v44  ;;  %v5749_v35 = vpop.eup %4590  ;;  %v1241_v5 = vmul.f32 1.442695, %v1216_v51  ;;  %v7147_v2 = vld [vmem:[#allocation44_spill] sm:$0xff] }
 0x46b   :  { %v5747_v50 = vmul.f32 0.17677669, %v1140_v20  ;;  %v5754_v59 = vpop.eup %4592  ;;  %4610 = vpow2.f32 %v1235_v0  ;;  %v1197_v12 = vmul.f32 1.442695, %v1170_v42 }
 0x46c   :  { %v1126_v10 = vpop.xlane.xlu1 %1125  ;;  %v5738_v30 = vmul.f32 0.17677669, %v1137_v28  ;;  %v1187_v28 = vmul.f32 1.442695, %v1165_v47  ;;  %7129 = vst [vmem:[#allocation79_spill] sm:$0xff] %v5754_v59  ;;  %v5759_v20 = vpop.eup %4594  ;;  %v1215_v47 = vsub.f32 %v5727_v44, %v5727_v44  ;;  %4612 = vpow2.f32 %v1189_v11 }
 0x46d   :  { %v1120_v60 = vpop.xlane.xlu0 %1119  ;;  %v1142_v56 = vadd.f32 %v1126_v10, %v5669_v43  ;;  %7127 = vst [vmem:[#allocation77_spill] sm:$0xff] %v5747_v50  ;;  %7131 = vst [vmem:[#allocation81_spill] sm:$0xff] %v5759_v20  ;;  %v4597_v38 = vpop.eup %4596 }
 0x46e   :  { %v1139_v27 = vadd.f32 %v1120_v60, %v5667_v8  ;;  %7125 = vst [vmem:[#allocation75_spill] sm:$0xff] %v5738_v30  ;;  %v1167_v60 = vsub.f32 -inf, %v5727_v44  ;;  %v1169_v36 = vsub.f32 -inf, %v5738_v30  ;;  %4614 = vpow2.f32 %v1187_v28 }
 0x46f   :  { %v5757_v1 = vmul.f32 0.17677669, %v1142_v56  ;;  %v4599_v56 = vpop.eup %4598  ;;  %4616 = vpow2.f32 %v1241_v5  ;;  %v1239_v63 = vmul.f32 1.442695, %v1215_v47  ;;  %v1217_v42 = vsub.f32 %v5738_v30, %v5738_v30 }
 0x470   :  { %v5752_v10 = vmul.f32 0.17677669, %v1139_v27  ;;  %v1191_v22 = vmul.f32 1.442695, %v1167_v60  ;;  %v1172_v27 = vsub.f32 -inf, %v5747_v50  ;;  %v5767_v16 = vpop.eup %4600  ;;  %v1218_v60 = vsub.f32 %v5731_v24, %v5731_v24 }
 0x471   :  { %7130 = vst [vmem:[#allocation80_spill] sm:$0xff] %v5757_v1  ;;  %v1124_v29 = vpop.xlane.xlu0 %1123  ;;  %v1195_v4 = vmul.f32 1.442695, %v1169_v36  ;;  %v1174_v0 = vsub.f32 -inf, %v5757_v1  ;;  %7132 = vst [vmem:[#allocation82_spill] sm:$0xff] %v5767_v16  ;;  %4618 = vpow2.f32 %v1193_v52  ;;  %v1220_v36 = vsub.f32 %v5747_v50, %v5747_v50 }
 0x472   :  { %7128 = vst [vmem:[#allocation78_spill] sm:$0xff] %v5752_v10  ;;  %v1171_v37 = vsub.f32 -inf, %v5752_v10  ;;  %v1141_v51 = vadd.f32 %v1124_v29, %v5671_v25  ;;  %v1201_v18 = vmul.f32 1.442695, %v1172_v27  ;;  %4620 = vpow2.f32 %v1191_v22  ;;  %v5773_v29 = vpop.eup %4602 }
 0x473   :  { %7133 = vst [vmem:[#allocation83_spill] sm:$0xff] %v5773_v29  ;;  %4622 = vpow2.f32 %v1197_v12  ;;  %v4605_v47 = vpop.eup %4604  ;;  %v1219_v25 = vsub.f32 %v5752_v10, %v5752_v10  ;;  %v1205_v52 = vmul.f32 1.442695, %v1174_v0  ;;  %v1245_v27 = vmul.f32 1.442695, %v1218_v60 }
 0x474   :  { %v1199_v28 = vmul.f32 1.442695, %v1171_v37  ;;  %v5777_v5 = vmul.f32 0.17677669, %v1141_v51  ;;  %4624 = vpow2.f32 %v1195_v4  ;;  %v4607_v32 = vpop.eup %4606  ;;  %v1222_v22 = vsub.f32 %v5757_v1, %v5757_v1 }
 0x475   :  { %4626 = vpow2.f32 %v1239_v63  ;;  %v5783_v21 = vpop.eup %4608  ;;  %v1243_v50 = vmul.f32 1.442695, %v1217_v42  ;;  %v1249_v12 = vmul.f32 1.442695, %v1220_v36  ;;  %v1247_v10 = vmul.f32 1.442695, %v1219_v25 }
 0x476   :  { %7134 = vst [vmem:[#allocation84_spill] sm:$0xff] %v5777_v5  ;;  %7135 = vst [vmem:[#allocation85_spill] sm:$0xff] %v5783_v21  ;;  %4628 = vpow2.f32 %v1201_v18  ;;  %v5785_v37 = vpop.eup %4610  ;;  %v1221_v51 = vsub.f32 %v5777_v5, %v5777_v5  ;;  %v1253_v60 = vmul.f32 1.442695, %v1222_v22  ;;  %v1173_v1 = vsub.f32 -inf, %v5777_v5 }
 0x477   :  { %7136 = vst [vmem:[#allocation86_spill] sm:$0xff] %v5785_v37  ;;  %4630 = vpow2.f32 %v1199_v28  ;;  %v4613_v4 = vpop.eup %4612  ;;  %v5795_v28 = vld [vmem:[%s6934_s10] ss:$0 sm:$0xff]  ;;  %v5802_v22 = vmul.f32 0.0, %v5749_v35  ;;  %v5815_v35 = vmul.f32 0.0, %v4607_v32 }
 0x478   :  { %4632 = vpow2.f32 %v1205_v52  ;;  %v4615_v63 = vpop.eup %4614  ;;  %v1251_v36 = vmul.f32 1.442695, %v1221_v51  ;;  %v5806_v51 = vmul.f32 0.0, %v4599_v56  ;;  %v5821_v56 = vmul.f32 0.0, %v4613_v4 }
 0x479   :  { %4634 = vpow2.f32 %v1245_v27  ;;  %v5790_v30 = vpop.eup %4616  ;;  %v5799_v27 = vmul.f32 0.0, %v5744_v49  ;;  %7139 = vst [vmem:[#allocation89_spill] sm:$0xff] %v5802_v22  ;;  %v1001_v49 = vadd.f32 %v5795_v28, %v5521_v26 }
 0x47a   :  { %7137 = vst [vmem:[#allocation87_spill] sm:$0xff] %v5790_v30  ;;  %4636 = vpow2.f32 %v1243_v50  ;;  %v5804_v50 = vmul.f32 0.0, %v4597_v38 }
 0x47b   :  { %v4619_v42 = vpop.eup %4618  ;;  %4638 = vpow2.f32 %v1249_v12  ;;  %7138 = vst [vmem:[#allocation88_spill] sm:$0xff] %v5799_v27  ;;  %v1203_v12 = vmul.f32 1.442695, %v1173_v1  ;;  %v1016_v1 = vadd.f32 %v5528_v31, %v5795_v28 }
 0x47c   :  { %v4621_v52 = vpop.eup %4620  ;;  %4640 = vpow2.f32 %v1247_v10  ;;  %v1006_v10 = vadd.f32 %v5519_v58, %v5795_v28  ;;  %v5827_v58 = vmul.f32 0.0, %v4619_v42  ;;  %v1287_v42 = vmul.f32 %v5741_v17, %v1001_v49  ;;  %v7150_v49 = vld [vmem:[#allocation45_spill] sm:$0xff] }
 0x47d   :  { %v4623_v5 = vpop.eup %4622  ;;  %4642 = vpow2.f32 %v1253_v60  ;;  %v5829_v26 = vmul.f32 0.0, %v4621_v52  ;;  %v7145_v52 = vld [vmem:[#allocation43_spill] sm:$0xff] }
 0x47e   :  { %v4625_v44 = vpop.eup %4624  ;;  %4644 = vpow2.f32 %v1251_v36  ;;  %7141 = vst [vmem:[#allocation91_spill] sm:$0xff] %v5827_v58  ;;  %v1011_v36 = vadd.f32 %v5795_v28, %v5530_v33  ;;  %v5834_v19 = vmul.f32 0.0, %v4623_v5  ;;  %v1026_v48 = vadd.f32 %v7145_v52, %v5795_v28 }
 0x47f   :  { %v5817_v38 = vpop.eup %4626  ;;  %7142 = vst [vmem:[#allocation92_spill] sm:$0xff] %v5829_v26  ;;  %v5836_v31 = vmul.f32 0.0, %v4625_v44  ;;  %4646 = vpow2.f32 %v1203_v12  ;;  %v1021_v33 = vadd.f32 %v5795_v28, %v7147_v2  ;;  %v1036_v52 = vadd.f32 %v7150_v49, %v5795_v28 }
 0x480   :  { %7140 = vst [vmem:[#allocation90_spill] sm:$0xff] %v5817_v38  ;;  %v4629_v60 = vpop.eup %4628  ;;  %7143 = vst [vmem:[#allocation93_spill] sm:$0xff] %v5834_v19  ;;  %v1289_v2 = vmul.f32 %v5759_v20, %v1011_v36 }
 0x481   :  { %7144 = vst [vmem:[#allocation94_spill] sm:$0xff] %v5836_v31  ;;  %v5856_v12 = vmul.f32 0.0, %v4629_v60 }
 0x4a5   :  { %v1871_v11 = vpop.xlane.xlu1 %1870 }
 0x4a6   :  { %v1869_v43 = vpop.xlane.xlu0 %1868  ;;  %v1901_v25 = vadd.f32 %v1871_v11, %v5643_v14  ;;  %v5813_v11 = vmul.f32 0.0, %v4605_v47  ;;  %v4631_v14 = vpop.eup %4630 }
 0x4a7   :  { %v1900_v8 = vadd.f32 %v1869_v43, %v5647_v13  ;;  %v5825_v13 = vmul.f32 0.0, %v4615_v63  ;;  %v1288_v63 = vmul.f32 %v5734_v9, %v1006_v10  ;;  %v5858_v17 = vmul.f32 0.0, %v4631_v14  ;;  %v7152_v9 = vld [vmem:[#allocation46_spill] sm:$0xff] }
 0x4a8   :  { %v5823_v43 = vmul.f32 0.17677669, %v1901_v25  ;;  %v4633_v25 = vpop.eup %4632  ;;  %v1031_v31 = vadd.f32 %v5795_v28, %v7152_v9  ;;  %v5878_v14 = vadd.f32 %v1287_v42, %v5802_v22  ;;  %v7156_v42 = vld [vmem:[#allocation47_spill] sm:$0xff] }
 0x4a9   :  { %v1875_v0 = vpop.xlane.xlu1 %1874  ;;  %v1916_v4 = vmul.f32 0.17677669, %v1900_v8  ;;  %v5875_v60 = vadd.f32 %v1288_v63, %v5799_v27  ;;  %v1294_v27 = vmul.f32 %v5783_v21, %v1036_v52  ;;  %v1046_v22 = vadd.f32 %v7156_v42, %v5795_v28 }
 0x4aa   :  { %v1873_v18 = vpop.xlane.xlu0 %1872  ;;  %v1903_v32 = vadd.f32 %v1875_v0, %v5641_v57  ;;  %v5842_v0 = vpop.eup %4634  ;;  %v1290_v57 = vmul.f32 %v5754_v59, %v1016_v1  ;;  %v5849_v44 = vmax.f32 %v5676_v45, %v5823_v43 }
 0x4ab   :  { %7146 = vst [vmem:[#allocation43_spill] sm:$0xff] %v5842_v0  ;;  %v1902_v8 = vadd.f32 %v1873_v18, %v5645_v62  ;;  %v5852_v10 = vpop.eup %4636  ;;  %v5867_v18 = vmul.f32 0.0, %v4633_v25  ;;  %v5870_v62 = vmax.f32 %v5679_v61, %v1916_v4  ;;  %v1291_v25 = vmul.f32 %v5773_v29, %v1021_v33 }
 0x4ac   :  { %7148 = vst [vmem:[#allocation44_spill] sm:$0xff] %v5849_v44  ;;  %7149 = vst [vmem:[#allocation95_spill] sm:$0xff] %v5852_v10  ;;  %v5860_v1 = vmul.f32 0.17677669, %v1903_v32  ;;  %v5862_v59 = vpop.eup %4638  ;;  %v1292_v32 = vmul.f32 %v5767_v16, %v1026_v48  ;;  %v5885_v9 = vadd.f32 %v1290_v57, %v5804_v50  ;;  %v1997_v48 = vsub.f32 %v5823_v43, %v5849_v44  ;;  %v7158_v43 = vld [vmem:[#allocation48_spill] sm:$0xff] }
 0x4ad   :  { %v1879_v24 = vpop.xlane.xlu1 %1878  ;;  %7151 = vst [vmem:[#allocation45_spill] sm:$0xff] %v5862_v59  ;;  %7153 = vst [vmem:[#allocation46_spill] sm:$0xff] %v5867_v18  ;;  %v5872_v19 = vpop.eup %4640  ;;  %v1949_v18 = vsub.f32 %v5676_v45, %v5849_v44  ;;  %v1918_v63 = vmul.f32 0.17677669, %v1902_v8  ;;  %v5902_v33 = vadd.f32 %v1289_v2, %v5806_v51  ;;  %v1293_v45 = vmul.f32 %v5785_v37, %v1031_v31 }
 0x4ae   :  { %v1877_v47 = vpop.xlane.xlu0 %1876  ;;  %7154 = vst [vmem:[#allocation96_spill] sm:$0xff] %v5870_v62  ;;  %7155 = vst [vmem:[#allocation97_spill] sm:$0xff] %v5872_v19  ;;  %v1905_v36 = vadd.f32 %v1879_v24, %v5649_v46  ;;  %v5882_v20 = vpop.eup %4642  ;;  %v5897_v24 = vmax.f32 %v5684_v7, %v5860_v1  ;;  %v1948_v8 = vsub.f32 %v5679_v61, %v5870_v62 }
 0x4af   :  { %v5899_v57 = vpop.eup %4644  ;;  %v1904_v52 = vadd.f32 %v1877_v47, %v5651_v55  ;;  %v5909_v46 = vadd.f32 %v1292_v32, %v5813_v11  ;;  %v1041_v44 = vadd.f32 %v5795_v28, %v7158_v43  ;;  %v1996_v21 = vsub.f32 %v1916_v4, %v5870_v62 }
 0x4b0   :  { %7157 = vst [vmem:[#allocation47_spill] sm:$0xff] %v5897_v24  ;;  %v1921_v29 = vmul.f32 0.17677669, %v1905_v36  ;;  %v5915_v2 = vadd.f32 %v1291_v25, %v5815_v35  ;;  %v1966_v16 = vmul.f32 1.442695, %v1949_v18  ;;  %v5918_v31 = vmax.f32 %v5688_v23, %v1918_v63  ;;  %v5921_v47 = vpop.eup %4646 }
 0x4b1   :  { %v1883_v5 = vpop.xlane.xlu1 %1882  ;;  %v5924_v32 = vadd.f32 %v1294_v27, %v5821_v56  ;;  %v1296_v55 = vmul.f32 %v5790_v30, %v1046_v22  ;;  %v2014_v43 = vmul.f32 1.442695, %v1997_v48  ;;  %v1951_v4 = vsub.f32 %v5684_v7, %v5897_v24 }
 0x4b2   :  { %v1881_v49 = vpop.xlane.xlu0 %1880  ;;  %7159 = vst [vmem:[#allocation48_spill] sm:$0xff] %v5918_v31  ;;  %v1907_v61 = vadd.f32 %v1883_v5, %v5653_v54  ;;  %v5930_v25 = vadd.f32 %v1293_v45, %v5825_v13  ;;  %v1964_v18 = vmul.f32 1.442695, %v1948_v8  ;;  %v1920_v62 = vmul.f32 0.17677669, %v1904_v52 }
 0x4b3   :  { %v1906_v37 = vadd.f32 %v1881_v49, %v5655_v40  ;;  %v1295_v5 = vmul.f32 %v5817_v38, %v1041_v44  ;;  %v2012_v54 = vmul.f32 1.442695, %v1996_v21  ;;  %v1999_v27 = vsub.f32 %v5860_v1, %v5897_v24  ;;  %v7166_v40 = vld [vmem:[#allocation50_spill] sm:$0xff] }
 0x4b4   :  { %v5937_v22 = vmax.f32 %v5699_v15, %v1921_v29  ;;  %4648 = vpow2.f32 %v1966_v16  ;;  %v1950_v7 = vsub.f32 %v5688_v23, %v5918_v31  ;;  %v1923_v48 = vmul.f32 0.17677669, %v1907_v61  ;;  %v7162_v23 = vld [vmem:[#allocation49_spill] sm:$0xff]  ;;  %v7188_v38 = vld [vmem:[#allocation78_spill] sm:$0xff] }
 0x4b5   :  { %v1887_v42 = vpop.xlane.xlu1 %1886  ;;  %v5943_v52 = vadd.f32 %v1296_v55, %v5827_v58  ;;  %4650 = vpow2.f32 %v2014_v43  ;;  %v1970_v44 = vmul.f32 1.442695, %v1951_v4  ;;  %v1998_v21 = vsub.f32 %v1918_v63, %v5918_v31  ;;  %v7177_v31 = vld [vmem:[#allocation68_spill] sm:$0xff] }
 0x4b6   :  { %v1885_v36 = vpop.xlane.xlu0 %1884  ;;  %7160 = vst [vmem:[#allocation98_spill] sm:$0xff] %v5937_v22  ;;  %v1909_v45 = vadd.f32 %v1887_v42, %v5657_v34  ;;  %4652 = vpow2.f32 %v1964_v18  ;;  %v5947_v1 = vmax.f32 %v5702_v6, %v1920_v62  ;;  %v1922_v49 = vmul.f32 0.17677669, %v1906_v37 }
 0x4b7   :  { %v1908_v16 = vadd.f32 %v1885_v36, %v5659_v39  ;;  %v1056_v61 = vadd.f32 %v7162_v23, %v5795_v28  ;;  %4654 = vpow2.f32 %v2012_v54  ;;  %v2018_v42 = vmul.f32 1.442695, %v1999_v27 }
 0x4b8   :  { %7161 = vst [vmem:[#allocation99_spill] sm:$0xff] %v5947_v1  ;;  %v1953_v55 = vsub.f32 %v5699_v15, %v5937_v22  ;;  %v1968_v43 = vmul.f32 1.442695, %v1950_v7  ;;  %v5955_v4 = vmax.f32 %v5709_v41, %v1923_v48  ;;  %v1925_v63 = vmul.f32 0.17677669, %v1909_v45  ;;  %v7165_v7 = vld [vmem:[#allocation66_spill] sm:$0xff] }
 0x4b9   :  { %v1891_v8 = vpop.xlane.xlu1 %1890  ;;  %v5959_v37 = vadd.f32 %v1295_v5, %v5829_v26  ;;  %4656 = vpow2.f32 %v1970_v44  ;;  %v2016_v36 = vmul.f32 1.442695, %v1998_v21  ;;  %v2001_v23 = vsub.f32 %v1921_v29, %v5937_v22 }
 0x4ba   :  { %v1889_v34 = vpop.xlane.xlu0 %1888  ;;  %7163 = vst [vmem:[#allocation49_spill] sm:$0xff] %v5955_v4  ;;  %v1911_v18 = vadd.f32 %v1891_v8, %v5661_v3  ;;  %v1952_v54 = vsub.f32 %v5702_v6, %v5947_v1  ;;  %v5965_v15 = vmax.f32 %v5715_v53, %v1922_v49  ;;  %v5967_v27 = vmul.f32 0.17677669, %v1908_v16  ;;  %v7167_v6 = vld [vmem:[#allocation71_spill] sm:$0xff] }
 0x4bb   :  { %v1910_v39 = vadd.f32 %v1889_v34, %v7165_v7  ;;  %v1051_v8 = vadd.f32 %v5795_v28, %v7166_v40  ;;  %4658 = vpow2.f32 %v2018_v42  ;;  %v1974_v5 = vmul.f32 1.442695, %v1953_v55  ;;  %v7169_v7 = vld [vmem:[#allocation67_spill] sm:$0xff] }
 0x4bc   :  { %7164 = vst [vmem:[#allocation100_spill] sm:$0xff] %v5965_v15  ;;  %v2000_v44 = vsub.f32 %v1920_v62, %v5947_v1  ;;  %4660 = vpow2.f32 %v1968_v43  ;;  %v1955_v29 = vsub.f32 %v5709_v41, %v5955_v4  ;;  %v5976_v21 = vmax.f32 %v7167_v6, %v1925_v63  ;;  %v7171_v41 = vld [vmem:[#allocation72_spill] sm:$0xff] }
 0x4bd   :  { %v1895_v45 = vpop.xlane.xlu1 %1894  ;;  %v5978_v3 = vmul.f32 0.17677669, %v1911_v18  ;;  %4662 = vpow2.f32 %v2016_v36  ;;  %v2022_v16 = vmul.f32 1.442695, %v2001_v23  ;;  %v2003_v34 = vsub.f32 %v1923_v48, %v5955_v4 }
 0x4be   :  { %7168 = vst [vmem:[#allocation50_spill] sm:$0xff] %v5976_v21  ;;  %v1913_v22 = vadd.f32 %v1895_v45, %v7169_v7  ;;  %v1893_v40 = vpop.xlane.xlu0 %1892  ;;  %v5982_v42 = vpop.eup %4648  ;;  %v1972_v55 = vmul.f32 1.442695, %v1952_v54  ;;  %v1954_v62 = vsub.f32 %v5715_v53, %v5965_v15  ;;  %v5988_v43 = vmax.f32 %v7171_v41, %v5967_v27  ;;  %v7175_v53 = vld [vmem:[#allocation73_spill] sm:$0xff] }
 0x4bf   :  { %7170 = vst [vmem:[#allocation71_spill] sm:$0xff] %v5982_v42  ;;  %v1926_v1 = vmul.f32 0.17677669, %v1910_v39  ;;  %v5990_v18 = vpop.eup %4650  ;;  %v1298_v36 = vmul.f32 %v5842_v0, %v1056_v61  ;;  %4664 = vpow2.f32 %v1974_v5  ;;  %v2020_v48 = vmul.f32 1.442695, %v2000_v44 }
 0x4c0   :  { %7172 = vst [vmem:[#allocation72_spill] sm:$0xff] %v5988_v43  ;;  %7173 = vst [vmem:[#allocation101_spill] sm:$0xff] %v5990_v18  ;;  %v2002_v23 = vsub.f32 %v1922_v49, %v5965_v15  ;;  %v5994_v45 = vpop.eup %4652  ;;  %v1978_v7 = vmul.f32 1.442695, %v1955_v29  ;;  %v1957_v54 = vsub.f32 %v7167_v6, %v5976_v21  ;;  %v6000_v4 = vmax.f32 %v7175_v53, %v5978_v3  ;;  %v7179_v6 = vld [vmem:[#allocation75_spill] sm:$0xff] }
 0x4c1   :  { %7174 = vst [vmem:[#allocation102_spill] sm:$0xff] %v5994_v45  ;;  %v1912_v39 = vadd.f32 %v1893_v40, %v7177_v31  ;;  %v6003_v24 = vpop.eup %4654  ;;  %4666 = vpow2.f32 %v2022_v16  ;;  %v2026_v61 = vmul.f32 1.442695, %v2003_v34  ;;  %v2005_v5 = vsub.f32 %v1925_v63, %v5976_v21 }
 0x4c2   :  { %7176 = vst [vmem:[#allocation73_spill] sm:$0xff] %v6000_v4  ;;  %7178 = vst [vmem:[#allocation103_spill] sm:$0xff] %v6003_v24  ;;  %v6006_v44 = vmul.f32 0.17677669, %v1913_v22  ;;  %4668 = vpow2.f32 %v1972_v55  ;;  %v1976_v49 = vmul.f32 1.442695, %v1954_v62  ;;  %v1956_v29 = vsub.f32 %v7171_v41, %v5988_v43  ;;  %v1897_v21 = vpop.xlane.xlu0 %1896 }
 0x4c3   :  { %v6011_v15 = vmax.f32 %v7179_v6, %v1926_v1  ;;  %v6013_v0 = vpop.eup %4656  ;;  %v1297_v40 = vmul.f32 %v5852_v10, %v1051_v8  ;;  %4670 = vpow2.f32 %v2020_v48  ;;  %v2024_v31 = vmul.f32 1.442695, %v2002_v23  ;;  %v7183_v8 = vld [vmem:[#allocation77_spill] sm:$0xff]  ;;  %v1899_v23 = vpop.xlane.xlu1 %1898 }
 0x4c4   :  { %7181 = vst [vmem:[#allocation104_spill] sm:$0xff] %v6013_v0  ;;  %v2004_v16 = vsub.f32 %v5967_v27, %v5988_v43  ;;  %4672 = vpow2.f32 %v1978_v7  ;;  %v1982_v22 = vmul.f32 1.442695, %v1957_v54  ;;  %v1959_v63 = vsub.f32 %v7175_v53, %v6000_v4  ;;  %v7185_v7 = vld [vmem:[#allocation51_spill] sm:$0xff] }
 0x4c5   :  { %7180 = vst [vmem:[#allocation75_spill] sm:$0xff] %v6011_v15  ;;  %v6020_v34 = vmul.f32 0.17677669, %v1912_v39  ;;  %v6022_v55 = vpop.eup %4658  ;;  %4674 = vpow2.f32 %v2026_v61  ;;  %v2030_v62 = vmul.f32 1.442695, %v2005_v5  ;;  %v2007_v41 = vsub.f32 %v5978_v3, %v6000_v4  ;;  %v7187_v5 = vld [vmem:[#allocation52_spill] sm:$0xff] }
 0x4c6   :  { %7182 = vst [vmem:[#allocation105_spill] sm:$0xff] %v6022_v55  ;;  %v6028_v48 = vmax.f32 %v7183_v8, %v6006_v44  ;;  %v6030_v27 = vpop.eup %4660  ;;  %v1066_v54 = vadd.f32 %v7185_v7, %v5795_v28  ;;  %4676 = vpow2.f32 %v1976_v49  ;;  %v1980_v53 = vmul.f32 1.442695, %v1956_v29  ;;  %v7190_v49 = vld [vmem:[#allocation69_spill] sm:$0xff] }
 0x4c7   :  { %v1958_v39 = vsub.f32 %v7179_v6, %v6011_v15  ;;  %v6036_v61 = vpop.eup %4662  ;;  %v1061_v3 = vadd.f32 %v5795_v28, %v7187_v5  ;;  %4678 = vpow2.f32 %v2024_v31  ;;  %v2028_v4 = vmul.f32 1.442695, %v2004_v16  ;;  %v7191_v6 = vld [vmem:[#allocation93_spill] sm:$0xff] }
 0x4c8   :  { %7184 = vst [vmem:[#allocation77_spill] sm:$0xff] %v6028_v48  ;;  %7186 = vst [vmem:[#allocation51_spill] sm:$0xff] %v6036_v61  ;;  %v2006_v43 = vsub.f32 %v1926_v1, %v6011_v15  ;;  %4680 = vpow2.f32 %v1982_v22  ;;  %v1986_v10 = vmul.f32 1.442695, %v1959_v63  ;;  %v6043_v7 = vmax.f32 %v7188_v38, %v6020_v34  ;;  %v7192_v1 = vld [vmem:[#allocation94_spill] sm:$0xff] }
 0x4c9   :  { %v1915_v29 = vadd.f32 %v1899_v23, %v7190_v49  ;;  %v6046_v26 = vpop.eup %4664  ;;  %v6049_v30 = vadd.f32 %v1298_v36, %v7191_v6  ;;  %4682 = vpow2.f32 %v2030_v62  ;;  %v2034_v5 = vmul.f32 1.442695, %v2007_v41  ;;  %v7193_v63 = vld [vmem:[#allocation70_spill] sm:$0xff] }
 0x4ca   :  { %7189 = vst [vmem:[#allocation52_spill] sm:$0xff] %v6043_v7  ;;  %v1961_v31 = vsub.f32 %v7183_v8, %v6028_v48  ;;  %v6054_v16 = vadd.f32 %v1297_v40, %v7192_v1  ;;  %4684 = vpow2.f32 %v1980_v53  ;;  %v1984_v22 = vmul.f32 1.442695, %v1958_v39 }
 0x4cb   :  { %v1914_v15 = vadd.f32 %v1897_v21, %v7193_v63  ;;  %v6057_v58 = vpop.eup %4666  ;;  %v6060_v23 = vmul.f32 %v5862_v59, %v1066_v54  ;;  %4686 = vpow2.f32 %v2028_v4  ;;  %v2032_v36 = vmul.f32 1.442695, %v2006_v43 }
 0x4cc   :  { %v2009_v62 = vsub.f32 %v6006_v44, %v6028_v48  ;;  %v6064_v41 = vpop.eup %4668  ;;  %v6067_v8 = vmul.f32 %v5872_v19, %v1061_v3  ;;  %4688 = vpow2.f32 %v1986_v10  ;;  %v1960_v40 = vsub.f32 %v7188_v38, %v6043_v7  ;;  %v7194_v10 = vld [vmem:[#allocation53_spill] sm:$0xff] }
 0x4cd   :  { %v6071_v21 = vmul.f32 0.17677669, %v1915_v29  ;;  %v6073_v39 = vpop.eup %4670  ;;  %4690 = vpow2.f32 %v2034_v5  ;;  %v1990_v4 = vmul.f32 1.442695, %v1961_v31  ;;  %v2008_v43 = vsub.f32 %v6020_v34, %v6043_v7 }
 0x4ce   :  { %v6078_v63 = vpop.eup %4672  ;;  %v6082_v3 = vadd.f32 %v7194_v10, %v5795_v28  ;;  %4692 = vpow2.f32 %v1984_v22  ;;  %v6084_v38 = vmul.f32 0.17677669, %v1914_v15  ;;  %v2038_v5 = vmul.f32 1.442695, %v2009_v62  ;;  %v7195_v22 = vld [vmem:[#allocation80_spill] sm:$0xff] }
 0x4cf   :  { %v6087_v48 = vpop.eup %4674  ;;  %4694 = vpow2.f32 %v2032_v36  ;;  %v2077_v34 = vmul.f32 %v5982_v42, %v5875_v60  ;;  %v1988_v15 = vmul.f32 1.442695, %v1960_v40  ;;  %v2076_v36 = vmul.f32 %v5994_v45, %v5878_v14  ;;  %v7198_v42 = vld [vmem:[#allocation84_spill] sm:$0xff] }
 0x4d0   :  { %v6097_v10 = vpop.eup %4676  ;;  %4696 = vpow2.f32 %v1990_v4  ;;  %v6115_v1 = vmax.f32 %v7198_v42, %v6084_v38 }
 0x4d1   :  { %v6106_v7 = vpop.eup %4678  ;;  %4698 = vpow2.f32 %v2038_v5 }
 0x4d2   :  { %v6111_v59 = vpop.eup %4680  ;;  %7199 = vst [vmem:[#allocation53_spill] sm:$0xff] %v6115_v1  ;;  %4700 = vpow2.f32 %v1988_v15  ;;  %v1962_v15 = vsub.f32 %v7198_v42, %v6115_v1 }
 0x4eb   :  { %v4017_v53 = vpop.f32.mrb[48].mxu1 }
 0x4ec   :  { %v1779_v44 = vadd.f32 %v4017_v53, %v5795_v28  ;;  %v1773_v54 = vpop.f32.mrb[49].mxu1  ;;  %v6095_v53 = vld [vmem:[%s6926_s2 + $0x2] ss:$0 sm:$0xff] }
 0x4ed   :  { %v1774_v29 = vadd.f32 %v5795_v28, %v1773_v54  ;;  %v6101_v54 = vmax.f32 %v7195_v22, %v6071_v21 }
 0x4ee   :  { %v2093_v31 = vmul.f32 %v5990_v18, %v1779_v44  ;;  %v2036_v44 = vmul.f32 1.442695, %v2008_v43  ;;  %v6121_v43 = vpop.eup %4682 }
 0x4ef   :  { %7196 = vst [vmem:[#allocation78_spill] sm:$0xff] %v6101_v54  ;;  %v2092_v62 = vmul.f32 %v6003_v24, %v1774_v29  ;;  %v4020_v60 = vpop.f32.mrb[50].mxu1 }
 0x4f0   :  { %v6108_v49 = vadd.f32 %v2093_v31, %v2077_v34  ;;  %v1789_v18 = vadd.f32 %v4020_v60, %v5795_v28  ;;  %v4073_v19 = vpop.f32.mrb[64].mxu0  ;;  %v1783_v40 = vpop.f32.mrb[51].mxu1  ;;  %v2079_v34 = vmul.f32 %v6013_v0, %v5885_v9  ;;  %4702 = vpow2.f32 %v2036_v44 }
 0x4f1   :  { %v6117_v14 = vadd.f32 %v2092_v62, %v2076_v36  ;;  %v2221_v29 = vadd.f32 %v4073_v19, %v6095_v53  ;;  %v1784_v24 = vadd.f32 %v5795_v28, %v1783_v40  ;;  %v2215_v4 = vpop.f32.mrb[65].mxu0  ;;  %v1963_v36 = vsub.f32 %v7195_v22, %v6101_v54 }
 0x4f2   :  { %7197 = vst [vmem:[#allocation93_spill] sm:$0xff] %v6108_v49  ;;  %v2095_v31 = vmul.f32 %v6022_v55, %v1789_v18  ;;  %v2216_v60 = vadd.f32 %v6095_v53, %v2215_v4  ;;  %v6127_v49 = vpop.eup %4684  ;;  %v2011_v19 = vsub.f32 %v6071_v21, %v6101_v54  ;;  %v2078_v62 = vmul.f32 %v6030_v27, %v5902_v33 }
 0x4f3   :  { %7200 = vst [vmem:[#allocation80_spill] sm:$0xff] %v6117_v14  ;;  %v2094_v5 = vmul.f32 %v6036_v61, %v1784_v24  ;;  %v4023_v40 = vpop.f32.mrb[52].mxu1  ;;  %v6136_v14 = vpop.eup %4686  ;;  %v2295_v45 = vmax.f32 %v2221_v29, 0.0 }
 0x4f4   :  { %v6138_v9 = vadd.f32 %v2095_v31, %v2079_v34  ;;  %v2294_v18 = vmax.f32 %v2216_v60, 0.0  ;;  %v1799_v4 = vadd.f32 %v4023_v40, %v5795_v28  ;;  %v4076_v55 = vpop.f32.mrb[66].mxu0  ;;  %v1793_v0 = vpop.f32.mrb[53].mxu1  ;;  %v2081_v34 = vmul.f32 %v6046_v26, %v5909_v46 }
 0x4f5   :  { %v6141_v22 = vpop.eup %4688  ;;  %v6143_v21 = vadd.f32 %v2094_v5, %v2078_v62  ;;  %v2231_v33 = vadd.f32 %v4076_v55, %v6095_v53  ;;  %v1794_v24 = vadd.f32 %v5795_v28, %v1793_v0  ;;  %v2225_v54 = vpop.f32.mrb[67].mxu0  ;;  %v2010_v0 = vsub.f32 %v6084_v38, %v6115_v1  ;;  %v7206_v1 = vld [vmem:[#allocation20_spill] sm:$0xff] }
 0x4f6   :  { %7201 = vst [vmem:[#allocation84_spill] sm:$0xff] %v6138_v9  ;;  %v6147_v61 = vpop.eup %4690  ;;  %v2097_v31 = vmul.f32 %v6057_v58, %v1799_v4  ;;  %v2226_v60 = vadd.f32 %v6095_v53, %v2225_v54  ;;  %4127 = vmatprep.mubr.f32.mxu1 %v2294_v18  ;;  %v2080_v55 = vmul.f32 %v6064_v41, %v5915_v2  ;;  %v1994_v46 = vmul.f32 1.442695, %v1963_v36 }
 0x4f7   :  { %7202 = vst [vmem:[#allocation106_spill] sm:$0xff] %v6143_v21  ;;  %v6155_v29 = vpop.eup %4692  ;;  %v2096_v62 = vmul.f32 %v6073_v39, %v1794_v24  ;;  %4128 = vmatmul.mubr.f32.vlgmr.msra.gmra.mrb[64].mxu1 %v2295_v45  ;;  %v4026_v42 = vpop.f32.mrb[54].mxu1  ;;  %v7204_v21 = vld [vmem:[#allocation19_spill] sm:$0xff]  ;;  %v2297_v38 = vmax.f32 %v2231_v33, 0.0  ;;  %v2042_v33 = vmul.f32 1.442695, %v2011_v19 }
 0x4f8   :  { %v6162_v5 = vpop.eup %4694  ;;  %v6164_v40 = vadd.f32 %v2097_v31, %v2081_v34  ;;  %v2296_v54 = vmax.f32 %v2226_v60, 0.0  ;;  %v1809_v18 = vadd.f32 %v4026_v42, %v5795_v28  ;;  %v4079_v4 = vpop.f32.mrb[68].mxu0  ;;  %4567 = vmatpush3.bf16.msra.mxu1 %v7204_v21  ;;  %v1992_v34 = vmul.f32 1.442695, %v1962_v15 }
 0x4f9   :  { %v1803_v44 = vpop.f32.mrb[55].mxu1  ;;  %v6168_v9 = vadd.f32 %v2096_v62, %v2080_v55  ;;  %v2241_v2 = vadd.f32 %v4079_v4, %v6095_v53  ;;  %v2235_v24 = vpop.f32.mrb[69].mxu0  ;;  %4560 = vmatprep.subr.bf16.mxu1 %v7206_v1  ;;  %v2083_v31 = vmul.f32 %v6078_v63, %v5924_v32  ;;  %v2040_v55 = vmul.f32 1.442695, %v2010_v0 }
 0x4fa   :  { %7203 = vst [vmem:[#allocation107_spill] sm:$0xff] %v6164_v40  ;;  %v1804_v45 = vadd.f32 %v5795_v28, %v1803_v44  ;;  %v6173_v36 = vpop.eup %4696  ;;  %v2099_v60 = vmul.f32 %v6087_v48, %v1809_v18  ;;  %v2236_v21 = vadd.f32 %v6095_v53, %v2235_v24  ;;  %4130 = vmatprep.mubr.f32.mxu1 %v2296_v54  ;;  %4704 = vpow2.f32 %v1994_v46  ;;  %v7266_v40 = vld [vmem:[#allocation102_spill] sm:$0xff] }
 0x4fb   :  { %7205 = vst [vmem:[#allocation19_spill] sm:$0xff] %v6168_v9  ;;  %v2082_v62 = vmul.f32 %v6097_v10, %v5930_v25  ;;  %4131 = vmatmul.mubr.f32.gmra.mrb[66].mxu1 %v2297_v38  ;;  %v4029_v4 = vpop.f32.mrb[56].mxu1  ;;  %v6182_v44 = vpop.eup %4698  ;;  %v2299_v19 = vmax.f32 %v2241_v2, 0.0  ;;  %4706 = vpow2.f32 %v1992_v34  ;;  %v7210_v2 = vld [vmem:[#allocation54_spill] sm:$0xff] }
 0x4fc   :  { %v2098_v42 = vmul.f32 %v6106_v7, %v1804_v45  ;;  %v6184_v15 = vadd.f32 %v2099_v60, %v2083_v31  ;;  %v2298_v32 = vmax.f32 %v2236_v21, 0.0  ;;  %v1819_v18 = vadd.f32 %v4029_v4, %v5795_v28  ;;  %v4082_v9 = vpop.f32.mrb[70].mxu0  ;;  %v1813_v24 = vpop.f32.mrb[57].mxu1  ;;  %4568 = vmatpush3.bf16.msra.mxu1 %v7206_v1  ;;  %v7209_v45 = vld [vmem:[#allocation21_spill] sm:$0xff] }
 0x4fd   :  { %v2251_v25 = vadd.f32 %v4082_v9, %v6095_v53  ;;  %v1814_v54 = vadd.f32 %v5795_v28, %v1813_v24  ;;  %v2245_v38 = vpop.f32.mrb[71].mxu0  ;;  %4561 = vmatprep.subr.bf16.mxu1 %v7209_v45  ;;  %v6193_v46 = vpop.eup %4700  ;;  %v2085_v31 = vmul.f32 %v6111_v59, %v5943_v52  ;;  %v1071_v21 = vadd.f32 %v5795_v28, %v7210_v2 }
 0x4fe   :  { %7207 = vst [vmem:[#allocation20_spill] sm:$0xff] %v6184_v15  ;;  %v6188_v0 = vadd.f32 %v2098_v42, %v2082_v62  ;;  %v2101_v60 = vmul.f32 %v6121_v43, %v1819_v18  ;;  %v2246_v1 = vadd.f32 %v6095_v53, %v2245_v38  ;;  %4133 = vmatprep.mubr.f32.mxu1 %v2298_v32  ;;  %4708 = vpow2.f32 %v2042_v33  ;;  %v6208_v32 = vpop.eup %4702  ;;  %v7259_v15 = vld [vmem:[#allocation92_spill] sm:$0xff] }
 0x4ff   :  { %v2084_v9 = vmul.f32 %v6127_v49, %v5959_v37  ;;  %v2100_v62 = vmul.f32 %v6136_v14, %v1814_v54  ;;  %4134 = vmatmul.mubr.f32.gmra.mrb[68].mxu1 %v2299_v19  ;;  %v4032_v42 = vpop.f32.mrb[58].mxu1  ;;  %4710 = vpow2.f32 %v2040_v55  ;;  %7212 = vst [vmem:[#allocation54_spill] sm:$0xff] %v6208_v32  ;;  %v2301_v33 = vmax.f32 %v2251_v25, 0.0  ;;  %v7214_v55 = vld [vmem:[#allocation22_spill] sm:$0xff] }
 0x500   :  { %7208 = vst [vmem:[#allocation108_spill] sm:$0xff] %v6188_v0  ;;  %v6204_v34 = vadd.f32 %v2101_v60, %v2085_v31  ;;  %v2300_v52 = vmax.f32 %v2246_v1, 0.0  ;;  %v1829_v4 = vadd.f32 %v4032_v42, %v5795_v28  ;;  %v4085_v18 = vpop.f32.mrb[72].mxu0  ;;  %v1823_v24 = vpop.f32.mrb[59].mxu1  ;;  %4569 = vmatpush3.bf16.msra.mxu1 %v7209_v45  ;;  %v1316_v31 = vadd.f32 %v6060_v23, %v5856_v12  ;;  %v7257_v0 = vld [vmem:[#allocation91_spill] sm:$0xff] }
 0x501   :  { %v6210_v38 = vadd.f32 %v2100_v62, %v2084_v9  ;;  %v2261_v37 = vadd.f32 %v4085_v18, %v6095_v53  ;;  %v1824_v19 = vadd.f32 %v5795_v28, %v1823_v24  ;;  %v2255_v54 = vpop.f32.mrb[73].mxu0  ;;  %4562 = vmatprep.subr.bf16.mxu1 %v7214_v55  ;;  %v2087_v60 = vmul.f32 %v6141_v22, %v6049_v30 }
 0x502   :  { %7211 = vst [vmem:[#allocation21_spill] sm:$0xff] %v6204_v34  ;;  %v2103_v45 = vmul.f32 %v6147_v61, %v1829_v4  ;;  %v2256_v1 = vadd.f32 %v6095_v53, %v2255_v54  ;;  %4136 = vmatprep.mubr.f32.mxu1 %v2300_v52  ;;  %v1315_v25 = vadd.f32 %v6067_v8, %v5858_v17  ;;  %v7217_v54 = vld [vmem:[#allocation23_spill] sm:$0xff] }
 0x503   :  { %7213 = vst [vmem:[#allocation109_spill] sm:$0xff] %v6210_v38  ;;  %v1302_v2 = vmul.f32 %v5882_v20, %v6082_v3  ;;  %v2086_v9 = vmul.f32 %v6155_v29, %v6054_v16  ;;  %v2102_v62 = vmul.f32 %v6162_v5, %v1824_v19  ;;  %4137 = vmatmul.mubr.f32.gmra.mrb[70].mxu1 %v2301_v33  ;;  %v4035_v23 = vpop.f32.mrb[60].mxu1  ;;  %v2303_v8 = vmax.f32 %v2261_v37, 0.0 }
 0x504   :  { %v1301_v30 = vmul.f32 %v5899_v57, %v1071_v21  ;;  %v6229_v42 = vadd.f32 %v2103_v45, %v2087_v60  ;;  %v2302_v4 = vmax.f32 %v2256_v1, 0.0  ;;  %v1839_v52 = vadd.f32 %v4035_v23, %v5795_v28  ;;  %v4088_v18 = vpop.f32.mrb[74].mxu0  ;;  %v1833_v24 = vpop.f32.mrb[61].mxu1  ;;  %4570 = vmatpush3.bf16.msra.mxu1 %v7214_v55  ;;  %v7218_v55 = vld [vmem:[#allocation46_spill] sm:$0xff] }
 0x505   :  { %v6233_v3 = vadd.f32 %v2102_v62, %v2086_v9  ;;  %v2271_v16 = vadd.f32 %v4088_v18, %v6095_v53  ;;  %v1834_v19 = vadd.f32 %v5795_v28, %v1833_v24  ;;  %v2265_v33 = vpop.f32.mrb[75].mxu0  ;;  %4563 = vmatprep.subr.bf16.mxu1 %v7217_v54  ;;  %v6238_v21 = vpop.eup %4704  ;;  %v6241_v60 = vmul.f32 0.0, %v5921_v47 }
 0x506   :  { %7215 = vst [vmem:[#allocation22_spill] sm:$0xff] %v6229_v42  ;;  %v2089_v45 = vmul.f32 %v6173_v36, %v1316_v31  ;;  %v2105_v1 = vmul.f32 %v6182_v44, %v1839_v52  ;;  %v2266_v37 = vadd.f32 %v6095_v53, %v2265_v33  ;;  %4139 = vmatprep.mubr.f32.mxu1 %v2302_v4  ;;  %v6249_v24 = vpop.eup %4706 }
 0x507   :  { %7216 = vst [vmem:[#allocation110_spill] sm:$0xff] %v6233_v3  ;;  %v1318_v9 = vadd.f32 %v1302_v2, %v7218_v55  ;;  %v2088_v62 = vmul.f32 %v6193_v46, %v1315_v25  ;;  %v2104_v23 = vmul.f32 %v6208_v32, %v1834_v19  ;;  %4140 = vmatmul.mubr.f32.gmra.mrb[72].mxu1 %v2303_v8  ;;  %v4038_v18 = vpop.f32.mrb[62].mxu1  ;;  %v2305_v25 = vmax.f32 %v2271_v16, 0.0  ;;  %v7271_v32 = vld [vmem:[#allocation97_spill] sm:$0xff] }
 0x508   :  { %v1317_v47 = vadd.f32 %v1301_v30, %v6241_v60  ;;  %v6252_v3 = vadd.f32 %v2105_v1, %v2089_v45  ;;  %v2304_v31 = vmax.f32 %v2266_v37, 0.0  ;;  %v1849_v52 = vadd.f32 %v4038_v18, %v5795_v28  ;;  %v4091_v42 = vpop.f32.mrb[76].mxu0  ;;  %v1843_v33 = vpop.f32.mrb[63].mxu1  ;;  %4571 = vmatpush3.bf16.msra.mxu1 %v7217_v54  ;;  %v7222_v30 = vld [vmem:[#allocation24_spill] sm:$0xff] }
 0x509   :  { %v6256_v2 = vpop.eup %4708  ;;  %v6258_v4 = vadd.f32 %v2104_v23, %v2088_v62  ;;  %v2281_v8 = vadd.f32 %v4091_v42, %v6095_v53  ;;  %v1844_v19 = vadd.f32 %v5795_v28, %v1843_v33  ;;  %v2275_v38 = vpop.f32.mrb[77].mxu0  ;;  %4564 = vmatprep.subr.bf16.mxu1 %v7222_v30  ;;  %v2091_v1 = vmul.f32 %v6238_v21, %v1318_v9 }
 0x50a   :  { %7219 = vst [vmem:[#allocation23_spill] sm:$0xff] %v6252_v3  ;;  %7220 = vst [vmem:[#allocation46_spill] sm:$0xff] %v6256_v2  ;;  %v6263_v45 = vpop.eup %4710  ;;  %v2107_v37 = vmul.f32 %v6256_v2, %v1849_v52  ;;  %v2276_v54 = vadd.f32 %v6095_v53, %v2275_v38  ;;  %4142 = vmatprep.mubr.f32.mxu1 %v2304_v31  ;;  %v2090_v16 = vmul.f32 %v6249_v24, %v1317_v47  ;;  %v7270_v2 = vld [vmem:[#allocation59_spill] sm:$0xff] }
 0x50b   :  { %7221 = vst [vmem:[#allocation111_spill] sm:$0xff] %v6258_v4  ;;  %7223 = vst [vmem:[#allocation24_spill] sm:$0xff] %v6263_v45  ;;  %v2106_v62 = vmul.f32 %v6263_v45, %v1844_v19  ;;  %4143 = vmatmul.mubr.f32.gmra.mrb[74].mxu1 %v2305_v25  ;;  %v2307_v18 = vmax.f32 %v2281_v8, 0.0  ;;  %v7226_v4 = vld [vmem:[#allocation25_spill] sm:$0xff]  ;;  %v7227_v25 = vld [vmem:[#allocation26_spill] sm:$0xff] }
 0x50c   :  { %v6270_v42 = vadd.f32 %v2107_v37, %v2091_v1  ;;  %v2306_v28 = vmax.f32 %v2276_v54, 0.0  ;;  %v4094_v23 = vpop.f32.mrb[78].mxu0  ;;  %4572 = vmatpush3.bf16.msra.mxu1 %v7222_v30  ;;  %v6284_v8 = vld [vmem:[%s6928_s4 + $0x2] ss:$0 sm:$0xff] }
 0x50d   :  { %v6273_v33 = vadd.f32 %v2106_v62, %v2090_v16  ;;  %v2291_v9 = vadd.f32 %v4094_v23, %v6095_v53  ;;  %v2285_v52 = vpop.f32.mrb[79].mxu0  ;;  %4565 = vmatprep.subr.bf16.mxu1 %v7226_v4  ;;  %v7228_v37 = vld [vmem:[#allocation27_spill] sm:$0xff]  ;;  %v7229_v16 = vld [vmem:[#allocation28_spill] sm:$0xff] }
 0x50e   :  { %7224 = vst [vmem:[#allocation112_spill] sm:$0xff] %v6270_v42  ;;  %v2286_v38 = vadd.f32 %v6095_v53, %v2285_v52  ;;  %4145 = vmatprep.mubr.f32.mxu1 %v2306_v28 }
 0x50f   :  { %7225 = vst [vmem:[#allocation113_spill] sm:$0xff] %v6273_v33  ;;  %4146 = vmatmul.mubr.f32.gmra.mrb[76].mxu1 %v2307_v18  ;;  %v2309_v31 = vmax.f32 %v2291_v9, 0.0  ;;  %v7230_v9 = vld [vmem:[#allocation29_spill] sm:$0xff]  ;;  %v7249_v33 = vld [vmem:[#allocation76_spill] sm:$0xff] }
 0x510   :  { %v2308_v47 = vmax.f32 %v2286_v38, 0.0  ;;  %4573 = vmatpush3.bf16.msra.mxu1 %v7226_v4 }
 0x511   :  { %4566 = vmatprep.subr.bf16.mxu1 %v7227_v25 }
 0x512   :  { %4148 = vmatprep.mubr.f32.mxu1 %v2308_v47  ;;  %v7231_v47 = vld [vmem:[#allocation30_spill] sm:$0xff] }
 0x513   :  { %4149 = vmatmul.mubr.f32.gmra.mrb[78].mxu1 %v2309_v31 }
 0x514   :  { %4574 = vmatpush3.bf16.msra.mxu1 %v7227_v25 }
 0x5ca   :  { %v4129_v19 = vpop.f32.mrb[64].mxu1 }
 0x5cb   :  { %v2407_v53 = vadd.f32 %v4129_v19, %v6284_v8  ;;  %v2401_v30 = vpop.f32.mrb[65].mxu1 }
 0x5cc   :  { %v2402_v1 = vadd.f32 %v6284_v8, %v2401_v30 }
 0x5cd   :  { %v2626_v4 = vmul.f32 %v7228_v37, %v2407_v53 }
 0x5ce   :  { %v4132_v54 = vpop.f32.mrb[66].mxu1  ;;  %4183 = vmatprep.mubr.f32.mxu0 %v2402_v1  ;;  %v2625_v62 = vmul.f32 %v2402_v1, %v7229_v16  ;;  %v7232_v1 = vld [vmem:[#allocation31_spill] sm:$0xff] }
 0x5cf   :  { %v2417_v28 = vadd.f32 %v4132_v54, %v6284_v8  ;;  %2643 = vadd.xlane.f32.xlu1 %v2626_v4  ;;  %v2411_v23 = vpop.f32.mrb[67].mxu1  ;;  %4184 = vmatmul.mubr.f32.vlgmr.msra.gmra.mrb[80].mxu0 %v2407_v53  ;;  %v7233_v4 = vld [vmem:[#allocation32_spill] sm:$0xff] }
 0x5d0   :  { %v2412_v18 = vadd.f32 %v6284_v8, %v2411_v23  ;;  %2641 = vadd.xlane.f32.xlu0 %v2625_v62 }
 0x5d1   :  { %v2628_v52 = vmul.f32 %v7230_v9, %v2417_v28 }
 0x5d2   :  { %v4135_v38 = vpop.f32.mrb[68].mxu1  ;;  %4186 = vmatprep.mubr.f32.mxu0 %v2412_v18  ;;  %v2627_v31 = vmul.f32 %v2412_v18, %v7231_v47  ;;  %v7234_v18 = vld [vmem:[#allocation33_spill] sm:$0xff] }
 0x5d3   :  { %v2427_v25 = vadd.f32 %v4135_v38, %v6284_v8  ;;  %2647 = vadd.xlane.f32.xlu1 %v2628_v52  ;;  %v2421_v19 = vpop.f32.mrb[69].mxu1  ;;  %4187 = vmatmul.mubr.f32.gmra.mrb[82].mxu0 %v2417_v28  ;;  %v7235_v52 = vld [vmem:[#allocation34_spill] sm:$0xff] }
 0x5d4   :  { %v2422_v30 = vadd.f32 %v6284_v8, %v2421_v19  ;;  %2645 = vadd.xlane.f32.xlu0 %v2627_v31 }
 0x5d5   :  { %v2630_v37 = vmul.f32 %v7232_v1, %v2427_v25 }
 0x5d6   :  { %v4138_v53 = vpop.f32.mrb[70].mxu1  ;;  %4189 = vmatprep.mubr.f32.mxu0 %v2422_v30  ;;  %v2629_v54 = vmul.f32 %v2422_v30, %v7233_v4  ;;  %v7236_v30 = vld [vmem:[#allocation35_spill] sm:$0xff] }
 0x5d7   :  { %v2437_v16 = vadd.f32 %v4138_v53, %v6284_v8  ;;  %2651 = vadd.xlane.f32.xlu1 %v2630_v37  ;;  %v2431_v62 = vpop.f32.mrb[71].mxu1  ;;  %4190 = vmatmul.mubr.f32.gmra.mrb[84].mxu0 %v2427_v25  ;;  %v7237_v37 = vld [vmem:[#allocation36_spill] sm:$0xff] }
 0x5d8   :  { %v2432_v23 = vadd.f32 %v6284_v8, %v2431_v62  ;;  %2649 = vadd.xlane.f32.xlu0 %v2629_v54 }
 0x5d9   :  { %v2632_v9 = vmul.f32 %v7234_v18, %v2437_v16 }
 0x5da   :  { %v4141_v28 = vpop.f32.mrb[72].mxu1  ;;  %4192 = vmatprep.mubr.f32.mxu0 %v2432_v23  ;;  %v2631_v38 = vmul.f32 %v2432_v23, %v7235_v52  ;;  %v7238_v23 = vld [vmem:[#allocation37_spill] sm:$0xff] }
 0x5db   :  { %v2447_v47 = vadd.f32 %v4141_v28, %v6284_v8  ;;  %2655 = vadd.xlane.f32.xlu1 %v2632_v9  ;;  %v2441_v31 = vpop.f32.mrb[73].mxu1  ;;  %4193 = vmatmul.mubr.f32.gmra.mrb[86].mxu0 %v2437_v16  ;;  %v7239_v9 = vld [vmem:[#allocation38_spill] sm:$0xff] }
 0x5dc   :  { %v2442_v19 = vadd.f32 %v6284_v8, %v2441_v31  ;;  %2653 = vadd.xlane.f32.xlu0 %v2631_v38 }
 0x5dd   :  { %v2634_v1 = vmul.f32 %v7236_v30, %v2447_v47 }
 0x5de   :  { %v4144_v25 = vpop.f32.mrb[74].mxu1  ;;  %4195 = vmatprep.mubr.f32.mxu1 %v2442_v19  ;;  %v2633_v53 = vmul.f32 %v2442_v19, %v7237_v37  ;;  %v7240_v19 = vld [vmem:[#allocation39_spill] sm:$0xff] }
 0x5df   :  { %v2457_v4 = vadd.f32 %v4144_v25, %v6284_v8  ;;  %2659 = vadd.xlane.f32.xlu1 %v2634_v1  ;;  %v2451_v54 = vpop.f32.mrb[75].mxu1  ;;  %4196 = vmatmul.mubr.f32.vlgmr.msra.gmra.mrb[80].mxu1 %v2447_v47  ;;  %v7241_v1 = vld [vmem:[#allocation40_spill] sm:$0xff] }
 0x5e0   :  { %v2452_v62 = vadd.f32 %v6284_v8, %v2451_v54  ;;  %2657 = vadd.xlane.f32.xlu0 %v2633_v53 }
 0x5e1   :  { %v2636_v18 = vmul.f32 %v7238_v23, %v2457_v4 }
 0x5e2   :  { %v4147_v16 = vpop.f32.mrb[76].mxu1  ;;  %4198 = vmatprep.mubr.f32.mxu1 %v2452_v62  ;;  %v2635_v28 = vmul.f32 %v2452_v62, %v7239_v9  ;;  %v7242_v62 = vld [vmem:[#allocation41_spill] sm:$0xff] }
 0x5e3   :  { %v2467_v52 = vadd.f32 %v4147_v16, %v6284_v8  ;;  %2663 = vadd.xlane.f32.xlu1 %v2636_v18  ;;  %v2461_v38 = vpop.f32.mrb[77].mxu1  ;;  %4199 = vmatmul.mubr.f32.gmra.mrb[82].mxu1 %v2457_v4  ;;  %v7243_v4 = vld [vmem:[#allocation42_spill] sm:$0xff] }
 0x5e4   :  { %v2462_v31 = vadd.f32 %v6284_v8, %v2461_v38  ;;  %2661 = vadd.xlane.f32.xlu0 %v2635_v28 }
 0x5e5   :  { %v2638_v30 = vmul.f32 %v7240_v19, %v2467_v52 }
 0x5e6   :  { %v4150_v47 = vpop.f32.mrb[78].mxu1  ;;  %4201 = vmatprep.mubr.f32.mxu1 %v2462_v31  ;;  %v2637_v25 = vmul.f32 %v2462_v31, %v7241_v1  ;;  %v7244_v31 = vld [vmem:[#allocation56_spill] sm:$0xff] }
 0x5e7   :  { %v2477_v37 = vadd.f32 %v4150_v47, %v6284_v8  ;;  %2667 = vadd.xlane.f32.xlu1 %v2638_v30  ;;  %v2471_v53 = vpop.f32.mrb[79].mxu1  ;;  %4202 = vmatmul.mubr.f32.gmra.mrb[84].mxu1 %v2467_v52  ;;  %v7245_v47 = vld [vmem:[#allocation58_spill] sm:$0xff] }
 0x5e8   :  { %v2472_v54 = vadd.f32 %v6284_v8, %v2471_v53  ;;  %2665 = vadd.xlane.f32.xlu0 %v2637_v25  ;;  %v7246_v8 = vld [vmem:[#allocation88_spill] sm:$0xff]  ;;  %v7247_v25 = vld [vmem:[#allocation74_spill] sm:$0xff] }
 0x5e9   :  { %v2640_v23 = vmul.f32 %v7242_v62, %v2477_v37  ;;  %v1272_v53 = vadd.f32 %v7247_v25, %v7246_v8  ;;  %v7248_v62 = vld [vmem:[#allocation89_spill] sm:$0xff] }
 0x5ea   :  { %4204 = vmatprep.mubr.f32.mxu1 %v2472_v54  ;;  %v2639_v18 = vmul.f32 %v2472_v54, %v7243_v4  ;;  %v1271_v42 = vadd.f32 %v7249_v33, %v7248_v62  ;;  %v7250_v54 = vld [vmem:[#allocation79_spill] sm:$0xff]  ;;  %v7255_v8 = vld [vmem:[#allocation85_spill] sm:$0xff]  ;;  %v7256_v33 = vld [vmem:[#allocation86_spill] sm:$0xff] }
 0x5eb   :  { %2671 = vadd.xlane.f32.xlu1 %v2640_v23  ;;  %4205 = vmatmul.mubr.f32.gmra.mrb[86].mxu1 %v2477_v37  ;;  %v1274_v37 = vadd.f32 %v7250_v54, %v5804_v50  ;;  %v7251_v23 = vld [vmem:[#allocation81_spill] sm:$0xff]  ;;  %v1278_v25 = vadd.f32 %v7255_v8, %v5821_v56  ;;  %v1277_v62 = vadd.f32 %v7256_v33, %v5825_v13  ;;  %v7258_v50 = vld [vmem:[#allocation87_spill] sm:$0xff] }
 0x5ec   :  { %2669 = vadd.xlane.f32.xlu0 %v2639_v18  ;;  %v1273_v4 = vadd.f32 %v7251_v23, %v5806_v51  ;;  %v7252_v18 = vld [vmem:[#allocation82_spill] sm:$0xff]  ;;  %v1280_v54 = vadd.f32 %v7258_v50, %v7257_v0  ;;  %v7264_v56 = vld [vmem:[#allocation95_spill] sm:$0xff]  ;;  %v2044_v0 = vmul.f32 %v7266_v40, %v1271_v42  ;;  %v7267_v50 = vld [vmem:[#allocation104_spill] sm:$0xff]  ;;  %v6371_v40 = vadd.f32 %v5899_v57, %v6241_v60 }
 0x5ed   :  { %v1276_v3 = vadd.f32 %v7252_v18, %v5813_v11  ;;  %v7260_v51 = vld [vmem:[#allocation90_spill] sm:$0xff]  ;;  %v7261_v11 = vld [vmem:[#allocation43_spill] sm:$0xff]  ;;  %v7262_v18 = vld [vmem:[#allocation57_spill] sm:$0xff]  ;;  %v2047_v45 = vmul.f32 %v7267_v50, %v1274_v37 }
 0x5ee   :  { %v6341_v23 = vadd.f32 %v7260_v51, %v7259_v15  ;;  %v7265_v13 = vld [vmem:[#allocation71_spill] sm:$0xff]  ;;  %v7268_v15 = vld [vmem:[#allocation45_spill] sm:$0xff] }
 0x5ef   :  { %v2045_v33 = vmul.f32 %v7265_v13, %v1272_v53  ;;  %v6357_v51 = vadd.f32 %v7268_v15, %v5856_v12  ;;  %v6367_v53 = vadd.f32 %v5882_v20, %v7218_v55  ;;  %v2046_v12 = vmul.f32 %v6030_v27, %v1273_v4  ;;  %v7274_v13 = vld [vmem:[#allocation101_spill] sm:$0xff] }
 0x5f0   :  { %v2049_v42 = vmul.f32 %v6046_v26, %v1276_v3  ;;  %v7276_v20 = vld [vmem:[#allocation105_spill] sm:$0xff]  ;;  %v2051_v27 = vmul.f32 %v6078_v63, %v1278_v25  ;;  %v7277_v3 = vld [vmem:[#allocation47_spill] sm:$0xff]  ;;  %v7280_v63 = vld [vmem:[#allocation48_spill] sm:$0xff] }
 0x5f1   :  { %v6384_v55 = vadd.f32 %v7276_v20, %v2047_v45  ;;  %v7281_v20 = vld [vmem:[#allocation62_spill] sm:$0xff] }
 0x5f2   :  { %v6396_v45 = vadd.f32 %v6057_v58, %v2049_v42 }
 0x65c   :  { %v2644_v16 = vpop.xlane.xlu1 %2643 }
 0x65d   :  { %v2642_v9 = vpop.xlane.xlu0 %2641  ;;  %v2674_v19 = vadd.f32 %v2644_v16, %v7244_v31  ;;  %v7253_v31 = vld [vmem:[#allocation55_spill] sm:$0xff] }
 0x65e   :  { %v2673_v52 = vadd.f32 %v2642_v9, %v7245_v47  ;;  %v7254_v9 = vld [vmem:[#allocation83_spill] sm:$0xff] }
 0x65f   :  { %v2690_v16 = vmul.f32 0.17677669, %v2674_v19  ;;  %v1275_v47 = vadd.f32 %v7254_v9, %v5815_v35  ;;  %v6345_v19 = vadd.f32 %v7261_v11, %v7191_v6  ;;  %v7263_v9 = vld [vmem:[#allocation94_spill] sm:$0xff]  ;;  %v7269_v6 = vld [vmem:[#allocation44_spill] sm:$0xff] }
 0x660   :  { %v2648_v28 = vpop.xlane.xlu1 %2647  ;;  %v6350_v8 = vadd.f32 %v7264_v56, %v7263_v9  ;;  %v6363_v9 = vadd.f32 %v7271_v32, %v5858_v17  ;;  %v6378_v17 = vadd.f32 %v7274_v13, %v2045_v33  ;;  %v7275_v32 = vld [vmem:[#allocation103_spill] sm:$0xff]  ;;  %v2050_v33 = vmul.f32 %v6097_v10, %v1277_v62 }
 0x661   :  { %v2646_v38 = vpop.xlane.xlu0 %2645  ;;  %v2676_v34 = vadd.f32 %v2648_v28, %v7253_v31  ;;  %v2689_v28 = vmul.f32 0.17677669, %v2673_v52  ;;  %v2706_v11 = vmax.f32 %v7269_v6, %v2690_v16  ;;  %v6381_v50 = vadd.f32 %v7275_v32, %v2044_v0 }
 0x662   :  { %v2675_v35 = vadd.f32 %v2646_v38, %v7262_v18  ;;  %v2048_v57 = vmul.f32 %v6064_v41, %v1275_v47  ;;  %v6411_v42 = vadd.f32 %v6106_v7, %v2050_v33 }
 0x663   :  { %v2692_v52 = vmul.f32 0.17677669, %v2676_v34  ;;  %v7272_v34 = vld [vmem:[#allocation96_spill] sm:$0xff]  ;;  %v2722_v26 = vsub.f32 %v7269_v6, %v2706_v11  ;;  %v2770_v0 = vsub.f32 %v2690_v16, %v2706_v11  ;;  %v6406_v16 = vadd.f32 %v6087_v48, %v2051_v27 }
 0x664   :  { %v2652_v30 = vpop.xlane.xlu1 %2651  ;;  %v2705_v37 = vmax.f32 %v7272_v34, %v2689_v28 }
 0x665   :  { %v2650_v1 = vpop.xlane.xlu0 %2649  ;;  %v2678_v38 = vadd.f32 %v2652_v30, %v7270_v2  ;;  %v2691_v2 = vmul.f32 0.17677669, %v2675_v35  ;;  %v7273_v30 = vld [vmem:[#allocation60_spill] sm:$0xff]  ;;  %v2708_v60 = vmax.f32 %v7277_v3, %v2692_v52  ;;  %v2739_v62 = vmul.f32 1.442695, %v2722_v26 }
 0x666   :  { %v2677_v56 = vadd.f32 %v2650_v1, %v7273_v30  ;;  %v7278_v1 = vld [vmem:[#allocation51_spill] sm:$0xff]  ;;  %v7279_v30 = vld [vmem:[#allocation61_spill] sm:$0xff]  ;;  %v2721_v41 = vsub.f32 %v7272_v34, %v2705_v37  ;;  %v2769_v32 = vsub.f32 %v2689_v28, %v2705_v37  ;;  %v2787_v34 = vmul.f32 1.442695, %v2770_v0 }
 0x667   :  { %v2694_v4 = vmul.f32 0.17677669, %v2678_v38  ;;  %v6391_v15 = vadd.f32 %v7278_v1, %v2046_v12  ;;  %v2707_v47 = vmax.f32 %v7280_v63, %v2691_v2  ;;  %v6401_v38 = vadd.f32 %v6073_v39, %v2048_v57 }
 0x668   :  { %v2656_v31 = vpop.xlane.xlu1 %2655  ;;  %v2693_v25 = vmul.f32 0.17677669, %v2677_v56  ;;  %v2053_v12 = vmul.f32 %v6111_v59, %v1280_v54  ;;  %v2724_v58 = vsub.f32 %v7277_v3, %v2708_v60  ;;  %v2772_v56 = vsub.f32 %v2692_v52, %v2708_v60  ;;  %v7283_v54 = vld [vmem:[#allocation99_spill] sm:$0xff]  ;;  %v7285_v52 = vld [vmem:[#allocation64_spill] sm:$0xff] }
 0x669   :  { %v2654_v18 = vpop.xlane.xlu0 %2653  ;;  %v2680_v13 = vadd.f32 %v2656_v31, %v7279_v30  ;;  %v7282_v31 = vld [vmem:[#allocation98_spill] sm:$0xff]  ;;  %v2737_v57 = vmul.f32 1.442695, %v2721_v41  ;;  %v2723_v59 = vsub.f32 %v7280_v63, %v2707_v47  ;;  %v2785_v26 = vmul.f32 1.442695, %v2769_v32  ;;  %v7286_v41 = vld [vmem:[#allocation49_spill] sm:$0xff] }
 0x66a   :  { %v2679_v10 = vadd.f32 %v2654_v18, %v7281_v20  ;;  %v2710_v11 = vmax.f32 %v7282_v31, %v2694_v4  ;;  %v2709_v28 = vmax.f32 %v7283_v54, %v2693_v25  ;;  %v7284_v18 = vld [vmem:[#allocation63_spill] sm:$0xff]  ;;  %v6417_v27 = vadd.f32 %v6121_v43, %v2053_v12  ;;  %v7288_v20 = vld [vmem:[#allocation65_spill] sm:$0xff] }
 0x66b   :  { %v2696_v39 = vmul.f32 0.17677669, %v2680_v13  ;;  %v2771_v3 = vsub.f32 %v2691_v2, %v2707_v47  ;;  %4712 = vpow2.f32 %v2739_v62  ;;  %v2743_v7 = vmul.f32 1.442695, %v2724_v58  ;;  %v7287_v47 = vld [vmem:[#allocation100_spill] sm:$0xff] }
 0x66c   :  { %v2660_v35 = vpop.xlane.xlu1 %2659  ;;  %v2695_v1 = vmul.f32 0.17677669, %v2679_v10  ;;  %v2726_v33 = vsub.f32 %v7282_v31, %v2710_v11  ;;  %4714 = vpow2.f32 %v2787_v34  ;;  %v2791_v30 = vmul.f32 1.442695, %v2772_v56  ;;  %v7289_v34 = vld [vmem:[#allocation66_spill] sm:$0xff] }
 0x66d   :  { %v2658_v6 = vpop.xlane.xlu0 %2657  ;;  %v2682_v37 = vadd.f32 %v2660_v35, %v7284_v18  ;;  %v2774_v13 = vsub.f32 %v2694_v4, %v2710_v11  ;;  %v2712_v63 = vmax.f32 %v7286_v41, %v2696_v39  ;;  %4716 = vpow2.f32 %v2737_v57 }
 0x66e   :  { %v2681_v60 = vadd.f32 %v2658_v6, %v7285_v52  ;;  %v2741_v35 = vmul.f32 1.442695, %v2723_v59  ;;  %v2725_v43 = vsub.f32 %v7283_v54, %v2709_v28  ;;  %4718 = vpow2.f32 %v2785_v26  ;;  %v7290_v54 = vld [vmem:[#allocation50_spill] sm:$0xff] }
 0x66f   :  { %v2698_v12 = vmul.f32 0.17677669, %v2682_v37  ;;  %v2789_v2 = vmul.f32 1.442695, %v2771_v3  ;;  %v2711_v32 = vmax.f32 %v7287_v47, %v2695_v1  ;;  %4720 = vpow2.f32 %v2743_v7 }
 0x670   :  { %v2664_v48 = vpop.xlane.xlu1 %2663  ;;  %v2747_v62 = vmul.f32 1.442695, %v2726_v33  ;;  %v2773_v6 = vsub.f32 %v2693_v25, %v2709_v28  ;;  %v6425_v58 = vmul.f32 0.17677669, %v2681_v60  ;;  %4722 = vpow2.f32 %v2791_v30  ;;  %v7291_v25 = vld [vmem:[#allocation67_spill] sm:$0xff]  ;;  %v7292_v33 = vld [vmem:[#allocation72_spill] sm:$0xff] }
 0x671   :  { %v2662_v0 = vpop.xlane.xlu0 %2661  ;;  %v2684_v10 = vadd.f32 %v2664_v48, %v7288_v20  ;;  %v2795_v4 = vmul.f32 1.442695, %v2774_v13  ;;  %v2728_v11 = vsub.f32 %v7286_v41, %v2712_v63  ;;  %4724 = vpow2.f32 %v2741_v35 }
 0x672   :  { %v2683_v56 = vadd.f32 %v2662_v0, %v7289_v34  ;;  %v2745_v57 = vmul.f32 1.442695, %v2725_v43  ;;  %v2776_v59 = vsub.f32 %v2696_v39, %v2712_v63  ;;  %v2714_v18 = vmax.f32 %v7290_v54, %v2698_v12  ;;  %v7293_v39 = vld [vmem:[#allocation68_spill] sm:$0xff]  ;;  %v7296_v34 = vld [vmem:[#allocation69_spill] sm:$0xff] }
 0x673   :  { %4726 = vpow2.f32 %v2789_v2  ;;  %v2727_v48 = vsub.f32 %v7287_v47, %v2711_v32  ;;  %v6431_v26 = vmul.f32 0.17677669, %v2684_v10  ;;  %v2793_v3 = vmul.f32 1.442695, %v2773_v6 }
 0x674   :  { %v2668_v31 = vpop.xlane.xlu1 %2667  ;;  %4728 = vpow2.f32 %v2747_v62  ;;  %v2775_v7 = vsub.f32 %v2695_v1, %v2711_v32  ;;  %v2713_v52 = vmax.f32 %v7292_v33, %v6425_v58  ;;  %v2751_v60 = vmul.f32 1.442695, %v2728_v11  ;;  %v7294_v32 = vld [vmem:[#allocation73_spill] sm:$0xff] }
 0x675   :  { %v2666_v37 = vpop.xlane.xlu0 %2665  ;;  %v2686_v28 = vadd.f32 %v2668_v31, %v7291_v25  ;;  %4730 = vpow2.f32 %v2795_v4  ;;  %v6436_v0 = vmul.f32 0.17677669, %v2683_v56  ;;  %v6439_v13 = vpop.eup %4712  ;;  %v2052_v41 = vmul.f32 %v6127_v49, %v6341_v23  ;;  %v7295_v4 = vld [vmem:[#allocation75_spill] sm:$0xff]  ;;  %v7297_v25 = vld [vmem:[#allocation77_spill] sm:$0xff] }
 0x676   :  { %v2685_v30 = vadd.f32 %v2666_v37, %v7293_v39  ;;  %4732 = vpow2.f32 %v2745_v57  ;;  %v2799_v63 = vmul.f32 1.442695, %v2776_v59  ;;  %v2730_v35 = vsub.f32 %v7290_v54, %v2714_v18  ;;  %v6444_v1 = vpop.eup %4714 }
 0x677   :  { %v2749_v2 = vmul.f32 1.442695, %v2727_v48  ;;  %v2778_v47 = vsub.f32 %v2698_v12, %v2714_v18  ;;  %v2716_v20 = vmax.f32 %v7294_v32, %v6431_v26  ;;  %v6448_v10 = vmul.f32 0.17677669, %v2686_v28  ;;  %v6450_v62 = vpop.eup %4716 }
 0x678   :  { %v2672_v43 = vpop.xlane.xlu1 %2671  ;;  %v2055_v6 = vmul.f32 %v6141_v22, %v6345_v19  ;;  %4734 = vpow2.f32 %v2793_v3  ;;  %v2797_v49 = vmul.f32 1.442695, %v2775_v7  ;;  %v2729_v23 = vsub.f32 %v7292_v33, %v2713_v52  ;;  %v6455_v31 = vpop.eup %4718 }
 0x679   :  { %4736 = vpow2.f32 %v2751_v60  ;;  %v2715_v12 = vmax.f32 %v7295_v4, %v6436_v0  ;;  %v6459_v11 = vmul.f32 0.17677669, %v2685_v30  ;;  %v2688_v56 = vadd.f32 %v2672_v43, %v7296_v34  ;;  %v6462_v57 = vpop.eup %4720  ;;  %v2670_v54 = vpop.xlane.xlu0 %2669  ;;  %v7299_v30 = vld [vmem:[#allocation70_spill] sm:$0xff] }
 0x67a   :  { %v2054_v59 = vmul.f32 %v6155_v29, %v6350_v8  ;;  %4738 = vpow2.f32 %v2799_v63  ;;  %v2755_v22 = vmul.f32 1.442695, %v2730_v35  ;;  %v2777_v19 = vsub.f32 %v6425_v58, %v2713_v52  ;;  %v6467_v18 = vpop.eup %4722  ;;  %v7298_v52 = vld [vmem:[#allocation52_spill] sm:$0xff] }
 0x67b   :  { %4740 = vpow2.f32 %v2749_v2  ;;  %v2803_v37 = vmul.f32 1.442695, %v2778_v47  ;;  %v2732_v48 = vsub.f32 %v7294_v32, %v2716_v20  ;;  %v2718_v28 = vmax.f32 %v7297_v25, %v6448_v10  ;;  %v6472_v3 = vpop.eup %4724 }
 0x67c   :  { %v6475_v7 = vadd.f32 %v6136_v14, %v2052_v41  ;;  %4742 = vpow2.f32 %v2797_v49  ;;  %v2753_v29 = vmul.f32 1.442695, %v2729_v23  ;;  %v2780_v8 = vsub.f32 %v6431_v26, %v2716_v20 }
 0x67d   :  { %v6478_v58 = vpop.eup %4726  ;;  %v2731_v33 = vsub.f32 %v7295_v4, %v2715_v12  ;;  %v2717_v60 = vmax.f32 %v7298_v52, %v6459_v11  ;;  %v6483_v39 = vmul.f32 0.17677669, %v2688_v56  ;;  %v2687_v63 = vadd.f32 %v2670_v54, %v7299_v30  ;;  %v7300_v4 = vld [vmem:[#allocation78_spill] sm:$0xff] }
 0x67e   :  { %v6486_v35 = vpop.eup %4728  ;;  %v6489_v14 = vadd.f32 %v6147_v61, %v2055_v6  ;;  %4744 = vpow2.f32 %v2755_v22  ;;  %v2801_v41 = vmul.f32 1.442695, %v2777_v19  ;;  %v2779_v26 = vsub.f32 %v6436_v0, %v2715_v12 }
 0x67f   :  { %v6492_v43 = vpop.eup %4730  ;;  %v6495_v2 = vadd.f32 %v6162_v5, %v2054_v59  ;;  %4746 = vpow2.f32 %v2803_v37  ;;  %v2759_v47 = vmul.f32 1.442695, %v2732_v48  ;;  %v2734_v32 = vsub.f32 %v7297_v25, %v2718_v28 }
 0x680   :  { %v6498_v20 = vpop.eup %4732  ;;  %v2057_v49 = vmul.f32 %v6173_v36, %v6357_v51  ;;  %4748 = vpow2.f32 %v2753_v29  ;;  %v2807_v61 = vmul.f32 1.442695, %v2780_v8  ;;  %v2782_v6 = vsub.f32 %v6448_v10, %v2718_v28 }
 0x681   :  { %v2757_v23 = vmul.f32 1.442695, %v2731_v33  ;;  %v2733_v0 = vsub.f32 %v7298_v52, %v2717_v60  ;;  %v2720_v5 = vmax.f32 %v7300_v4, %v6483_v39  ;;  %v6506_v12 = vmul.f32 0.17677669, %v2687_v63 }
 0x682   :  { %v6508_v34 = vpop.eup %4734  ;;  %v2056_v56 = vmul.f32 %v6193_v46, %v6363_v9  ;;  %4750 = vpow2.f32 %v2801_v41  ;;  %v2805_v59 = vmul.f32 1.442695, %v2779_v26  ;;  %v2818_v36 = vmul.f32 %v6439_v13, %v6378_v17 }
 0x683   :  { %v6514_v51 = vpop.eup %4736  ;;  %v2059_v10 = vmul.f32 %v6238_v21, %v6367_v53  ;;  %4752 = vpow2.f32 %v2759_v47  ;;  %v2763_v22 = vmul.f32 1.442695, %v2734_v32  ;;  %v2817_v19 = vmul.f32 %v6450_v62, %v6381_v50  ;;  %v7301_v53 = vld [vmem:[#allocation53_spill] sm:$0xff] }
 0x684   :  { %v6520_v54 = vpop.eup %4738  ;;  %v2058_v46 = vmul.f32 %v6249_v24, %v6371_v40  ;;  %4754 = vpow2.f32 %v2807_v61  ;;  %v2811_v9 = vmul.f32 1.442695, %v2782_v6  ;;  %v2781_v37 = vsub.f32 %v6459_v11, %v2717_v60  ;;  %v7302_v11 = vld [vmem:[#allocation54_spill] sm:$0xff] }
 0x685   :  { %v6525_v17 = vpop.eup %4740  ;;  %4756 = vpow2.f32 %v2757_v23  ;;  %v2761_v48 = vmul.f32 1.442695, %v2733_v0  ;;  %v2736_v21 = vsub.f32 %v7300_v4, %v2720_v5  ;;  %v2719_v25 = vmax.f32 %v7301_v53, %v6506_v12  ;;  %v7303_v60 = vld [vmem:[#allocation46_spill] sm:$0xff]  ;;  %v7306_v23 = vld [vmem:[#allocation80_spill] sm:$0xff] }
 0x686   :  { %v6530_v28 = vpop.eup %4742  ;;  %v6533_v50 = vadd.f32 %v6182_v44, %v2057_v49  ;;  %4758 = vpow2.f32 %v2805_v59  ;;  %v2834_v24 = vadd.f32 %v6444_v1, %v2818_v36  ;;  %v2820_v40 = vmul.f32 %v6462_v57, %v6384_v55  ;;  %v7304_v55 = vld [vmem:[#allocation24_spill] sm:$0xff] }
 0x687   :  { %v6539_v29 = vadd.f32 %v7302_v11, %v2056_v56  ;;  %4760 = vpow2.f32 %v2763_v22  ;;  %v2833_v8 = vadd.f32 %v6455_v31, %v2817_v19  ;;  %v2819_v33 = vmul.f32 %v6472_v3, %v6391_v15  ;;  %v7305_v15 = vld [vmem:[#allocation93_spill] sm:$0xff]  ;;  %v7307_v36 = vld [vmem:[#allocation84_spill] sm:$0xff] }
 0x688   :  { %v6544_v52 = vpop.eup %4744  ;;  %v6547_v44 = vadd.f32 %v7303_v60, %v2059_v10  ;;  %4762 = vpow2.f32 %v2811_v9  ;;  %v2809_v30 = vmul.f32 1.442695, %v2781_v37  ;;  %v2784_v63 = vsub.f32 %v6483_v39, %v2720_v5 }
 0x689   :  { %v6550_v41 = vpop.eup %4746  ;;  %v6553_v26 = vadd.f32 %v7304_v55, %v2058_v46  ;;  %4764 = vpow2.f32 %v2761_v48  ;;  %v2767_v47 = vmul.f32 1.442695, %v2736_v21  ;;  %v2735_v32 = vsub.f32 %v7301_v53, %v2719_v25  ;;  %v7309_v46 = vld [vmem:[#allocation107_spill] sm:$0xff] }
 0x68a   :  { %v6556_v49 = vpop.eup %4748  ;;  %v2850_v61 = vmul.f32 %v6439_v13, %v7305_v15  ;;  %4766 = vrcp.f32 %v2834_v24  ;;  %v2836_v6 = vadd.f32 %v6467_v18, %v2820_v40  ;;  %v2822_v39 = vmul.f32 %v6486_v35, %v6396_v45  ;;  %v7310_v48 = vld [vmem:[#allocation19_spill] sm:$0xff]  ;;  %v7312_v15 = vld [vmem:[#allocation108_spill] sm:$0xff] }
 0x68b   :  { %v2849_v0 = vmul.f32 %v6450_v62, %v7306_v23  ;;  %4768 = vrcp.f32 %v2833_v8  ;;  %v2835_v4 = vadd.f32 %v6478_v58, %v2819_v33  ;;  %v2821_v5 = vmul.f32 %v6498_v20, %v6401_v38  ;;  %v7308_v62 = vld [vmem:[#allocation106_spill] sm:$0xff]  ;;  %v7311_v8 = vld [vmem:[#allocation20_spill] sm:$0xff] }
 0x68c   :  { %v6568_v56 = vpop.eup %4750  ;;  %4770 = vpow2.f32 %v2809_v30  ;;  %v2815_v59 = vmul.f32 1.442695, %v2784_v63  ;;  %v2783_v13 = vsub.f32 %v6506_v12, %v2719_v25  ;;  %v2852_v10 = vmul.f32 %v6462_v57, %v7307_v36 }
 0x68d   :  { %v6573_v22 = vpop.eup %4752  ;;  %4772 = vpow2.f32 %v2767_v47  ;;  %v2765_v45 = vmul.f32 1.442695, %v2735_v32  ;;  %v2851_v19 = vmul.f32 %v6472_v3, %v7308_v62  ;;  %v6579_v9 = vmul.f32 %v6486_v35, %v7309_v46  ;;  %v6595_v3 = vld [vmem:[%s6934_s10] ss:$0 sm:$0xff] }
 0x68e   :  { %v6581_v38 = vpop.eup %4754  ;;  %v6585_v12 = vmul.f32 %v6498_v20, %v7310_v48  ;;  %4774 = vrcp.f32 %v2836_v6  ;;  %v2838_v57 = vadd.f32 %v6492_v43, %v2822_v39  ;;  %v2824_v21 = vmul.f32 %v6514_v51, %v6406_v16 }
 0x68f   :  { %v6590_v53 = vpop.eup %4756  ;;  %4776 = vrcp.f32 %v2835_v4  ;;  %v2837_v20 = vadd.f32 %v6508_v34, %v2821_v5  ;;  %v2823_v24 = vmul.f32 %v6525_v17, %v6411_v42  ;;  %v2813_v16 = vmul.f32 1.442695, %v2783_v13 }
 0x690   :  { %v6601_v40 = vpop.eup %4758  ;;  %4778 = vpow2.f32 %v2815_v59  ;;  %v6606_v33 = vmul.f32 %v6514_v51, %v7311_v8  ;;  %v2826_v63 = vmul.f32 %v6544_v52, %v6417_v27  ;;  %v2825_v42 = vmul.f32 %v6556_v49, %v6475_v7 }
 0x691   :  { %v6608_v60 = vpop.eup %4760  ;;  %4780 = vpow2.f32 %v2765_v45  ;;  %v6620_v51 = vmul.f32 %v6525_v17, %v7312_v15  ;;  %v2840_v6 = vadd.f32 %v6520_v54, %v2824_v21  ;;  %v2839_v7 = vadd.f32 %v6530_v28, %v2823_v24 }
 0x692   :  { %v6615_v55 = vpop.eup %4762  ;;  %4782 = vrcp.f32 %v2838_v57  ;;  %v2828_v17 = vmul.f32 %v6573_v22, %v6489_v14  ;;  %v2841_v45 = vadd.f32 %v6568_v56, %v2825_v42 }
 0x693   :  { %v6623_v39 = vpop.eup %4764  ;;  %4784 = vrcp.f32 %v2837_v20 }
 0x694   :  { %v4767_v4 = vpop.eup %4766  ;;  %4786 = vpow2.f32 %v2813_v16  ;;  %v4842_v16 = vld [vmem:[#allocation2] sm:$0xff]  ;;  %v2829_v42 = vmul.f32 %v6623_v39, %v6539_v29 }
 0x695   :  { %v4769_v59 = vpop.eup %4768  ;;  %4788 = vrcp.f32 %v2840_v6 }
 0x696   :  { %v6633_v62 = vpop.eup %4770  ;;  %4790 = vrcp.f32 %v2839_v7 }
 0x697   :  { %v6638_v57 = vpop.eup %4772 }
 0x698   :  { %v4775_v20 = vpop.eup %4774 }
 0x699   :  { %v4777_v8 = vpop.eup %4776 }
 0x6a2   :  { %v4185_v37 = vpop.f32.mrb[80].mxu0 }
 0x6a3   :  { %v2552_v35 = vadd.f32 %v6595_v3, %v4185_v37  ;;  %v2546_v25 = vpop.f32.mrb[81].mxu0 }
 0x6a4   :  { %v2547_v11 = vadd.f32 %v6595_v3, %v2546_v25 }
 0x6a5   :  { %v2866_v30 = vmul.f32 %v6444_v1, %v2552_v35  ;;  %v4841_v35 = vld [vmem:[#allocation2 + $0x8] sm:$0xff] }
 0x6a6   :  { %v2865_v47 = vmul.f32 %v6455_v31, %v2547_v11  ;;  %v4188_v32 = vpop.f32.mrb[82].mxu0 }
 0x6a7   :  { %v2882_v1 = vadd.f32 %v2866_v30, %v2850_v61  ;;  %v2562_v27 = vadd.f32 %v6595_v3, %v4188_v32  ;;  %v2556_v23 = vpop.f32.mrb[83].mxu0  ;;  %v2842_v61 = vadd.f32 %v6550_v41, %v2826_v63  ;;  %v2844_v63 = vadd.f32 %v6581_v38, %v2828_v17 }
 0x6a8   :  { %v2881_v31 = vadd.f32 %v2865_v47, %v2849_v0  ;;  %v2557_v5 = vadd.f32 %v6595_v3, %v2556_v23  ;;  %v2827_v0 = vmul.f32 %v6590_v53, %v6495_v2  ;;  %v2830_v2 = vmul.f32 %v6608_v60, %v6533_v50  ;;  %v4843_v23 = vld [vmem:[#allocation2 + $0x18] sm:$0xff] }
 0x6a9   :  { %v2868_v13 = vmul.f32 %v6467_v18, %v2562_v27  ;;  %v2900_v36 = vmul.f32 %v4767_v4, %v2882_v1  ;;  %4792 = vrcp.f32 %v2842_v61  ;;  %v2832_v61 = vmul.f32 %v6638_v57, %v6547_v44 }
 0x6aa   :  { %v2867_v46 = vmul.f32 %v6478_v58, %v2557_v5  ;;  %v4191_v37 = vpop.f32.mrb[84].mxu0  ;;  %v2898_v48 = vmul.f32 %v4769_v59, %v2881_v31  ;;  %v2843_v50 = vadd.f32 %v6601_v40, %v2827_v0  ;;  %4794 = vrcp.f32 %v2841_v45  ;;  %v4844_v31 = vld [vmem:[#allocation2 + $0x10] sm:$0xff] }
 0x6ab   :  { %v2884_v14 = vadd.f32 %v2868_v13, %v2852_v10  ;;  %v2572_v18 = vadd.f32 %v6595_v3, %v4191_v37  ;;  %v2566_v21 = vpop.f32.mrb[85].mxu0  ;;  %v6641_v25 = vadd.f32 %v4841_v35, %v2900_v36  ;;  %v2846_v17 = vadd.f32 %v6615_v55, %v2830_v2  ;;  %v7313_v35 = vld [vmem:[#allocation21_spill] sm:$0xff] }
 0x6ac   :  { %v2883_v24 = vadd.f32 %v2867_v46, %v2851_v19  ;;  %v2567_v58 = vadd.f32 %v6595_v3, %v2566_v21  ;;  %v6644_v11 = vadd.f32 %v4842_v16, %v2898_v48  ;;  %v6653_v19 = vpop.eup %4778  ;;  %v2845_v36 = vadd.f32 %v6633_v62, %v2829_v42  ;;  %v7314_v2 = vld [vmem:[#allocation109_spill] sm:$0xff] }
 0x6ad   :  { %v2870_v10 = vmul.f32 %v6492_v43, %v2572_v18  ;;  %2947 = vadd.xlane.f32.xlu1 %v6641_v25  ;;  %v2904_v30 = vmul.f32 %v4775_v20, %v2884_v14  ;;  %v6658_v43 = vpop.eup %4780  ;;  %4796 = vrcp.f32 %v2844_v63  ;;  %v4845_v18 = vld [vmem:[#allocation2 + $0x28] sm:$0xff]  ;;  %v2858_v20 = vmul.f32 %v6544_v52, %v7313_v35  ;;  %v7318_v35 = vld [vmem:[#allocation111_spill] sm:$0xff] }
 0x6ae   :  { %v2869_v47 = vmul.f32 %v6508_v34, %v2567_v58  ;;  %v4194_v32 = vpop.f32.mrb[86].mxu0  ;;  %2945 = vadd.xlane.f32.xlu0 %v6644_v11  ;;  %v2902_v15 = vmul.f32 %v4777_v8, %v2883_v24  ;;  %v4783_v7 = vpop.eup %4782  ;;  %4798 = vrcp.f32 %v2843_v50  ;;  %v4846_v58 = vld [vmem:[#allocation2 + $0x20] sm:$0xff]  ;;  %v2857_v8 = vmul.f32 %v6556_v49, %v7314_v2 }
 0x6af   :  { %v2886_v6 = vadd.f32 %v2870_v10, %v6579_v9  ;;  %v2582_v1 = vadd.f32 %v6595_v3, %v4194_v32  ;;  %v2576_v27 = vpop.f32.mrb[87].mxu0  ;;  %v6662_v29 = vadd.f32 %v4843_v23, %v2904_v30  ;;  %v4785_v59 = vpop.eup %4784  ;;  %v2848_v30 = vadd.f32 %v6653_v19, %v2832_v61 }
 0x6b0   :  { %v2885_v34 = vadd.f32 %v2869_v47, %v6585_v12  ;;  %v2577_v4 = vadd.f32 %v6595_v3, %v2576_v27  ;;  %v6666_v5 = vadd.f32 %v4844_v31, %v2902_v15  ;;  %v6674_v45 = vpop.eup %4786  ;;  %4800 = vrcp.f32 %v2846_v17  ;;  %v4847_v15 = vld [vmem:[#allocation2 + $0x38] sm:$0xff] }
 0x6b1   :  { %v2872_v9 = vmul.f32 %v6520_v54, %v2582_v1  ;;  %2951 = vadd.xlane.f32.xlu1 %v6662_v29  ;;  %v2908_v13 = vmul.f32 %v4783_v7, %v2886_v6  ;;  %v2831_v54 = vmul.f32 %v6658_v43, %v6553_v26  ;;  %v4789_v44 = vpop.eup %4788  ;;  %4802 = vrcp.f32 %v2845_v36  ;;  %v7315_v7 = vld [vmem:[#allocation22_spill] sm:$0xff] }
 0x6b2   :  { %v2871_v12 = vmul.f32 %v6530_v28, %v2577_v4  ;;  %v4197_v46 = vpop.f32.mrb[80].mxu1  ;;  %2949 = vadd.xlane.f32.xlu0 %v6666_v5  ;;  %v2906_v37 = vmul.f32 %v4785_v59, %v2885_v34  ;;  %v4791_v26 = vpop.eup %4790  ;;  %v2860_v34 = vmul.f32 %v6573_v22, %v7315_v7  ;;  %v7316_v17 = vld [vmem:[#allocation110_spill] sm:$0xff]  ;;  %4804 = vrcp.f32 %v2848_v30  ;;  %v4849_v22 = vld [vmem:[#allocation2 + $0x48] sm:$0xff] }
 0x6b3   :  { %v2888_v48 = vadd.f32 %v2872_v9, %v6606_v33  ;;  %v2592_v0 = vadd.f32 %v6595_v3, %v4197_v46  ;;  %v2586_v14 = vpop.f32.mrb[81].mxu1  ;;  %v6682_v21 = vadd.f32 %v4845_v18, %v2908_v13  ;;  %v2847_v42 = vadd.f32 %v6674_v45, %v2831_v54  ;;  %v4793_v50 = vpop.eup %4792 }
 0x6b4   :  { %v2887_v28 = vadd.f32 %v2871_v12, %v6620_v51  ;;  %v2587_v24 = vadd.f32 %v6595_v3, %v2586_v14  ;;  %v6688_v16 = vadd.f32 %v4846_v58, %v2906_v37  ;;  %v4795_v23 = vpop.eup %4794  ;;  %v2859_v59 = vmul.f32 %v6590_v53, %v7316_v17  ;;  %v4850_v53 = vld [vmem:[#allocation2 + $0x40] sm:$0xff]  ;;  %v4856_v17 = vld [vmem:[#allocation2 + $0x70] sm:$0xff] }
 0x6b5   :  { %v2874_v33 = vmul.f32 %v6550_v41, %v2592_v0  ;;  %2955 = vadd.xlane.f32.xlu1 %v6682_v21  ;;  %v2912_v10 = vmul.f32 %v4789_v44, %v2888_v48  ;;  %4806 = vrcp.f32 %v2847_v42  ;;  %v7317_v14 = vld [vmem:[#allocation23_spill] sm:$0xff] }
 0x6b6   :  { %v2873_v51 = vmul.f32 %v6568_v56, %v2587_v24  ;;  %v4200_v63 = vpop.f32.mrb[82].mxu1  ;;  %2953 = vadd.xlane.f32.xlu0 %v6688_v16  ;;  %v2910_v52 = vmul.f32 %v4791_v26, %v2887_v28  ;;  %v4848_v56 = vld [vmem:[#allocation2 + $0x30] sm:$0xff]  ;;  %v2862_v18 = vmul.f32 %v6608_v60, %v7317_v14 }
 0x6b7   :  { %v2890_v47 = vadd.f32 %v2874_v33, %v2858_v20  ;;  %v2602_v41 = vadd.f32 %v6595_v3, %v4200_v63  ;;  %v2596_v32 = vpop.f32.mrb[83].mxu1  ;;  %v6699_v49 = vadd.f32 %v4847_v15, %v2912_v10  ;;  %v2861_v20 = vmul.f32 %v6623_v39, %v7318_v35  ;;  %v4851_v10 = vld [vmem:[#allocation2 + $0x58] sm:$0xff]  ;;  %v4852_v63 = vld [vmem:[#allocation2 + $0x50] sm:$0xff] }
 0x6b8   :  { %v2889_v6 = vadd.f32 %v2873_v51, %v2857_v8  ;;  %v2597_v1 = vadd.f32 %v6595_v3, %v2596_v32  ;;  %v6702_v27 = vadd.f32 %v4848_v56, %v2910_v52  ;;  %v7320_v32 = vld [vmem:[#allocation113_spill] sm:$0xff] }
 0x6b9   :  { %v2876_v4 = vmul.f32 %v6581_v38, %v2602_v41  ;;  %2959 = vadd.xlane.f32.xlu1 %v6699_v49  ;;  %v2916_v31 = vmul.f32 %v4793_v50, %v2890_v47  ;;  %v4797_v38 = vpop.eup %4796  ;;  %v2863_v15 = vmul.f32 %v6658_v43, %v7320_v32 }
 0x6ba   :  { %v2875_v9 = vmul.f32 %v6601_v40, %v2597_v1  ;;  %v4203_v13 = vpop.f32.mrb[84].mxu1  ;;  %2957 = vadd.xlane.f32.xlu0 %v6702_v27  ;;  %v2914_v36 = vmul.f32 %v4795_v23, %v2889_v6  ;;  %v4799_v40 = vpop.eup %4798  ;;  %v4853_v1 = vld [vmem:[#allocation2 + $0x68] sm:$0xff] }
 0x6bb   :  { %v2892_v61 = vadd.f32 %v2876_v4, %v2860_v34  ;;  %v2612_v12 = vadd.f32 %v6595_v3, %v4203_v13  ;;  %v2606_v46 = vpop.f32.mrb[85].mxu1  ;;  %v6713_v37 = vadd.f32 %v4849_v22, %v2916_v31 }
 0x6bc   :  { %v2891_v54 = vadd.f32 %v2875_v9, %v2859_v59  ;;  %v2607_v48 = vadd.f32 %v6595_v3, %v2606_v46  ;;  %v6716_v0 = vadd.f32 %v4850_v53, %v2914_v36  ;;  %v3009_v9 = vlaneseq }
 0x6bd   :  { %v2878_v44 = vmul.f32 %v6615_v55, %v2612_v12  ;;  %2963 = vadd.xlane.f32.xlu1 %v6713_v37  ;;  %v2920_v28 = vmul.f32 %v4797_v38, %v2892_v61  ;;  %v4801_v55 = vpop.eup %4800 }
 0x6be   :  { %v2877_v24 = vmul.f32 %v6633_v62, %v2607_v48  ;;  %v4206_v58 = vpop.f32.mrb[86].mxu1  ;;  %2961 = vadd.xlane.f32.xlu0 %v6716_v0  ;;  %v2918_v26 = vmul.f32 %v4799_v40, %v2891_v54  ;;  %v4803_v39 = vpop.eup %4802  ;;  %v7319_v62 = vld [vmem:[#allocation112_spill] sm:$0xff]  ;;  %v6752_v13 = vand.u32 127, %v3009_v9 }
 0x6bf   :  { %v2894_v33 = vadd.f32 %v2878_v44, %v2862_v18  ;;  %v2622_v2 = vadd.f32 %v6595_v3, %v4206_v58  ;;  %v2616_v8 = vpop.f32.mrb[87].mxu1  ;;  %v6727_v60 = vadd.f32 %v4851_v10, %v2920_v28  ;;  %v2864_v42 = vmul.f32 %v6638_v57, %v7319_v62  ;;  %v4805_v23 = vpop.eup %4804  ;;  %v4854_v57 = vld [vmem:[#allocation2 + $0x60] sm:$0xff] }
 0x6c0   :  { %v2893_v30 = vadd.f32 %v2877_v24, %v2861_v20  ;;  %v2617_v51 = vadd.f32 %v6595_v3, %v2616_v8  ;;  %v6730_v52 = vadd.f32 %v4852_v63, %v2918_v26  ;;  %vm3011_vm0 = vcmp.lt.s32.totalorder %v6752_v13, 32 }
 0x6c1   :  { %v2880_v47 = vmul.f32 %v6653_v19, %v2622_v2  ;;  %2967 = vadd.xlane.f32.xlu1 %v6727_v60  ;;  %v2924_v41 = vmul.f32 %v4801_v55, %v2894_v33  ;;  %v4807_v19 = vpop.eup %4806 }
 0x6c2   :  { %v2879_v50 = vmul.f32 %v6674_v45, %v2617_v51  ;;  %2965 = vadd.xlane.f32.xlu0 %v6730_v52  ;;  %v2922_v3 = vmul.f32 %v4803_v39, %v2893_v30  ;;  %v4855_v45 = vld [vmem:[#allocation2 + $0x78] sm:$0xff] }
 0x6c3   :  { %v2896_v6 = vadd.f32 %v2880_v47, %v2864_v42  ;;  %v6740_v56 = vadd.f32 %v4853_v1, %v2924_v41 }
 0x6c4   :  { %v2895_v7 = vadd.f32 %v2879_v50, %v2863_v15  ;;  %v6742_v34 = vadd.f32 %v4854_v57, %v2922_v3 }
 0x6c5   :  { %2971 = vadd.xlane.f32.xlu1 %v6740_v56  ;;  %v2928_v4 = vmul.f32 %v4805_v23, %v2896_v6 }
 0x6c6   :  { %2969 = vadd.xlane.f32.xlu0 %v6742_v34  ;;  %v2926_v43 = vmul.f32 %v4807_v19, %v2895_v7 }
 0x6c7   :  { %v6746_v31 = vadd.f32 %v4855_v45, %v2928_v4 }
 0x6c8   :  { %v6748_v59 = vadd.f32 %v4856_v17, %v2926_v43 }
 0x6c9   :  { %2975 = vadd.xlane.f32.xlu1 %v6746_v31 }
 0x6ca   :  { %2973 = vadd.xlane.f32.xlu0 %v6748_v59 }
 0x73a   :  { %v2948_v36 = vpop.xlane.xlu1 %2947 }
 0x73b   :  { %v2978_v61 = vmul.f32 0.03125, %v2948_v36  ;;  %v2946_v12 = vpop.xlane.xlu0 %2945 }
 0x73c   :  { %v2977_v46 = vmul.f32 0.03125, %v2946_v12 }
 0x73d   :  { %v6756_v22 = vsub.f32 %v6641_v25, %v2978_v61 }
 0x73e   :  { %v6759_v38 = vsub.f32 %v6644_v11, %v2977_v46  ;;  %v2952_v54 = vpop.xlane.xlu1 %2951 }
 0x73f   :  { %v2980_v48 = vmul.f32 0.03125, %v2952_v54  ;;  %v2950_v53 = vpop.xlane.xlu0 %2949  ;;  %v3015_v40 = vsel %vm3011_vm0, %v6756_v22, 0.0 }
 0x740   :  { %v2979_v14 = vmul.f32 0.03125, %v2950_v53  ;;  %v3031_v18 = vmul.f32 %v3015_v40, %v3015_v40  ;;  %v3014_v44 = vsel %vm3011_vm0, %v6759_v38, 0.0 }
 0x741   :  { %v6768_v28 = vsub.f32 %v6662_v29, %v2980_v48  ;;  %v3030_v25 = vmul.f32 %v3014_v44, %v3014_v44 }
 0x742   :  { %v6771_v11 = vsub.f32 %v6666_v5, %v2979_v14  ;;  %v2956_v35 = vpop.xlane.xlu1 %2955  ;;  %3048 = vadd.xlane.f32.xlu1 %v3031_v18 }
 0x743   :  { %v2982_v20 = vmul.f32 0.03125, %v2956_v35  ;;  %3046 = vadd.xlane.f32.xlu0 %v3030_v25  ;;  %v2954_v24 = vpop.xlane.xlu0 %2953  ;;  %v3017_v58 = vsel %vm3011_vm0, %v6768_v28, 0.0 }
 0x744   :  { %v2981_v26 = vmul.f32 0.03125, %v2954_v24  ;;  %v3033_v33 = vmul.f32 %v3017_v58, %v3017_v58  ;;  %v3016_v29 = vsel %vm3011_vm0, %v6771_v11, 0.0 }
 0x745   :  { %v6780_v2 = vsub.f32 %v6682_v21, %v2982_v20  ;;  %v3032_v5 = vmul.f32 %v3016_v29, %v3016_v29 }
 0x746   :  { %v6783_v8 = vsub.f32 %v6688_v16, %v2981_v26  ;;  %3052 = vadd.xlane.f32.xlu1 %v3033_v33  ;;  %v2960_v10 = vpop.xlane.xlu1 %2959 }
 0x747   :  { %v2984_v55 = vmul.f32 0.03125, %v2960_v10  ;;  %3050 = vadd.xlane.f32.xlu0 %v3032_v5  ;;  %v2958_v30 = vpop.xlane.xlu0 %2957  ;;  %v3019_v51 = vsel %vm3011_vm0, %v6780_v2, 0.0 }
 0x748   :  { %v2983_v63 = vmul.f32 0.03125, %v2958_v30  ;;  %v3035_v39 = vmul.f32 %v3019_v51, %v3019_v51  ;;  %v3018_v21 = vsel %vm3011_vm0, %v6783_v8, 0.0 }
 0x749   :  { %v6792_v62 = vsub.f32 %v6699_v49, %v2984_v55  ;;  %v3034_v16 = vmul.f32 %v3018_v21, %v3018_v21 }
 0x74a   :  { %v6795_v42 = vsub.f32 %v6702_v27, %v2983_v63  ;;  %3056 = vadd.xlane.f32.xlu1 %v3035_v39  ;;  %v2964_v47 = vpop.xlane.xlu1 %2963 }
 0x74b   :  { %v2986_v41 = vmul.f32 0.03125, %v2964_v47  ;;  %3054 = vadd.xlane.f32.xlu0 %v3034_v16  ;;  %v2962_v32 = vpop.xlane.xlu0 %2961  ;;  %v3021_v15 = vsel %vm3011_vm0, %v6792_v62, 0.0 }
 0x74c   :  { %v2985_v50 = vmul.f32 0.03125, %v2962_v32  ;;  %v3037_v3 = vmul.f32 %v3021_v15, %v3021_v15  ;;  %v3020_v49 = vsel %vm3011_vm0, %v6795_v42, 0.0 }
 0x74d   :  { %v6804_v6 = vsub.f32 %v6713_v37, %v2986_v41  ;;  %v3036_v27 = vmul.f32 %v3020_v49, %v3020_v49 }
 0x74e   :  { %v6807_v1 = vsub.f32 %v6716_v0, %v2985_v50  ;;  %3060 = vadd.xlane.f32.xlu1 %v3037_v3  ;;  %v2968_v23 = vpop.xlane.xlu1 %2967 }
 0x74f   :  { %v2988_v7 = vmul.f32 0.03125, %v2968_v23  ;;  %3058 = vadd.xlane.f32.xlu0 %v3036_v27  ;;  %v2966_v57 = vpop.xlane.xlu0 %2965  ;;  %v3023_v19 = vsel %vm3011_vm0, %v6804_v6, 0.0 }
 0x750   :  { %v2987_v4 = vmul.f32 0.03125, %v2966_v57  ;;  %v3039_v43 = vmul.f32 %v3023_v19, %v3023_v19  ;;  %v3022_v37 = vsel %vm3011_vm0, %v6807_v1, 0.0  ;;  %v6854_v19 = vld [vmem:[%s6935_s11] ss:$0 sm:$0xff]  ;;  %s5029_s11 = smov [#allocation13]  }
 0x751   :  { %v6816_v45 = vsub.f32 %v6727_v60, %v2988_v7  ;;  %v3038_v0 = vmul.f32 %v3022_v37, %v3022_v37 }
 0x752   :  { %v6819_v17 = vsub.f32 %v6730_v52, %v2987_v4  ;;  %3064 = vadd.xlane.f32.xlu1 %v3039_v43  ;;  %v2972_v9 = vpop.xlane.xlu1 %2971 }
 0x753   :  { %v2990_v36 = vmul.f32 0.03125, %v2972_v9  ;;  %3062 = vadd.xlane.f32.xlu0 %v3038_v0  ;;  %v2970_v61 = vpop.xlane.xlu0 %2969  ;;  %v3025_v12 = vsel %vm3011_vm0, %v6816_v45, 0.0 }
 0x754   :  { %v2989_v46 = vmul.f32 0.03125, %v2970_v61  ;;  %v3041_v54 = vmul.f32 %v3025_v12, %v3025_v12  ;;  %v3024_v60 = vsel %vm3011_vm0, %v6819_v17, 0.0 }
 0x755   :  { %v6828_v48 = vsub.f32 %v6740_v56, %v2990_v36  ;;  %v3040_v52 = vmul.f32 %v3024_v60, %v3024_v60  ;;  %v6860_v36 = vld [vmem:[%s6936_s12] ss:$0 sm:$0xff]  ;;  %s3209_s12 = sshll.u32 %s5029_s11, 4  ;;  %s3210_s12 = int_to_ptr.vmem [resolvable:$true] %s3209_s12 }
 0x756   :  { %v6831_v53 = vsub.f32 %v6742_v34, %v2989_v46  ;;  %3068 = vadd.xlane.f32.xlu1 %v3041_v54  ;;  %v2976_v40 = vpop.xlane.xlu1 %2975  ;;  %s4989_s7 = scalar_lea.vmem %s3210_s12, 2048  ;;  %p4994_p7 = scmp.lt.s32.totalorder %s3210_s12, %s3210_s12 }
 0x757   :  { %v2992_v14 = vmul.f32 0.03125, %v2976_v40  ;;  %3066 = vadd.xlane.f32.xlu0 %v3040_v52  ;;  %v2974_v18 = vpop.xlane.xlu0 %2973  ;;  %v3027_v44 = vsel %vm3011_vm0, %v6828_v48, 0.0  ;;  %p4990_p6 = scmp.ne.s32.totalorder %s3210_s12, %s4989_s7  ;;  %p4995_p8 = scmp.lt.s32.totalorder %s4989_s7, %s4989_s7 }
 0x758   :  { %v2991_v25 = vmul.f32 0.03125, %v2974_v18  ;;  %v3043_v35 = vmul.f32 %v3027_v44, %v3027_v44  ;;  %v3026_v56 = vsel %vm3011_vm0, %v6831_v53, 0.0 }
 0x759   :  { %v6840_v20 = vsub.f32 %v6746_v31, %v2992_v14  ;;  %v3042_v34 = vmul.f32 %v3026_v56, %v3026_v56  ;;  %p4996_p9 = por %p4995_p8, %p4994_p7 }
 0x75a   :  { %v6843_v24 = vsub.f32 %v6748_v59, %v2991_v25  ;;  %3072 = vadd.xlane.f32.xlu1 %v3043_v35 }
 0x75b   :  { %3070 = vadd.xlane.f32.xlu0 %v3042_v34  ;;  %v3029_v58 = vsel %vm3011_vm0, %v6840_v20, 0.0  ;;  %p4997_p10 = pnand %p4996_p9, %p4990_p6 }
 0x75c   :  { %v3045_v26 = vmul.f32 %v3029_v58, %v3029_v58  ;;  %v3028_v33 = vsel %vm3011_vm0, %v6843_v24, 0.0 }
 0x75d   :  { %v3044_v29 = vmul.f32 %v3028_v33, %v3028_v33 }
 0x75e   :  { %3076 = vadd.xlane.f32.xlu1 %v3045_v26 }
 0x75f   :  { %3074 = vadd.xlane.f32.xlu0 %v3044_v29 }
 0x7cf   :  { %v3049_v31 = vpop.xlane.xlu1 %3048 }
 0x7d0   :  { %v3079_v5 = vmul.f32 0.03125, %v3049_v31  ;;  %v3047_v10 = vpop.xlane.xlu0 %3046 }
 0x7d1   :  { %v3078_v55 = vmul.f32 0.03125, %v3047_v10 }
 0x7d2   :  { %v3095_v59 = vadd.f32 1e-05, %v3079_v5 }
 0x7d3   :  { %v3094_v30 = vadd.f32 1e-05, %v3078_v55  ;;  %v3053_v51 = vpop.xlane.xlu1 %3052 }
 0x7d4   :  { %4808 = vrsqrt.f32 %v3095_v59  ;;  %v3081_v63 = vmul.f32 0.03125, %v3053_v51  ;;  %v3051_v39 = vpop.xlane.xlu0 %3050 }
 0x7d5   :  { %4810 = vrsqrt.f32 %v3094_v30  ;;  %v3080_v21 = vmul.f32 0.03125, %v3051_v39 }
 0x7d6   :  { %v3097_v16 = vadd.f32 1e-05, %v3081_v63 }
 0x7d7   :  { %v3096_v47 = vadd.f32 1e-05, %v3080_v21  ;;  %v3057_v41 = vpop.xlane.xlu1 %3056 }
 0x7d8   :  { %4812 = vrsqrt.f32 %v3097_v16  ;;  %v3083_v13 = vmul.f32 0.03125, %v3057_v41  ;;  %v3055_v32 = vpop.xlane.xlu0 %3054 }
 0x7d9   :  { %4814 = vrsqrt.f32 %v3096_v47  ;;  %v3082_v15 = vmul.f32 0.03125, %v3055_v32 }
 0x7da   :  { %v3099_v50 = vadd.f32 1e-05, %v3083_v13 }
 0x7db   :  { %v3098_v3 = vadd.f32 1e-05, %v3082_v15  ;;  %v3061_v49 = vpop.xlane.xlu1 %3060 }
 0x7dc   :  { %4816 = vrsqrt.f32 %v3099_v50  ;;  %v3085_v27 = vmul.f32 0.03125, %v3061_v49  ;;  %v3059_v23 = vpop.xlane.xlu0 %3058 }
 0x7dd   :  { %4818 = vrsqrt.f32 %v3098_v3  ;;  %v3084_v7 = vmul.f32 0.03125, %v3059_v23 }
 0x7de   :  { %v4809_v57 = vpop.eup %4808  ;;  %v3101_v4 = vadd.f32 1e-05, %v3085_v27 }
 0x7df   :  { %v4811_v43 = vpop.eup %4810  ;;  %v3127_v37 = vmul.f32 %v4809_v57, %v6756_v22  ;;  %v3100_v0 = vadd.f32 1e-05, %v3084_v7  ;;  %v3065_v9 = vpop.xlane.xlu1 %3064 }
 0x7e0   :  { %v3126_v61 = vmul.f32 %v4811_v43, %v6759_v38  ;;  %4820 = vrsqrt.f32 %v3101_v4  ;;  %v3087_v12 = vmul.f32 0.03125, %v3065_v9  ;;  %v3063_v46 = vpop.xlane.xlu0 %3062 }
 0x7e1   :  { %v3150_v54 = vmul.f32 %v6854_v19, %v3127_v37  ;;  %4822 = vrsqrt.f32 %v3100_v0  ;;  %v3086_v60 = vmul.f32 0.03125, %v3063_v46 }
 0x7e2   :  { %v4813_v52 = vpop.eup %4812  ;;  %v3149_v40 = vmul.f32 %v6854_v19, %v3126_v61  ;;  %v3103_v22 = vadd.f32 1e-05, %v3087_v12 }
 0x7e3   :  { %v4815_v14 = vpop.eup %4814  ;;  %v3173_v18 = vadd.f32 %v6860_v36, %v3150_v54  ;;  %v3129_v44 = vmul.f32 %v4813_v52, %v6768_v28  ;;  %v3102_v25 = vadd.f32 1e-05, %v3086_v60  ;;  %v3069_v35 = vpop.xlane.xlu1 %3068 }
 0x7e4   :  { %v3172_v38 = vadd.f32 %v6860_v36, %v3149_v40  ;;  %v3128_v56 = vmul.f32 %v4815_v14, %v6771_v11  ;;  %4824 = vrsqrt.f32 %v3103_v22  ;;  %v3089_v34 = vmul.f32 0.03125, %v3069_v35  ;;  %v3067_v58 = vpop.xlane.xlu0 %3066 }
 0x7e5   :  { %3189 = vst [vmem:[#allocation13 + $0x8] sm:$0xff] %v3173_v18  ;;  %v3152_v26 = vmul.f32 %v6854_v19, %v3129_v44  ;;  %4826 = vrsqrt.f32 %v3102_v25  ;;  %v3088_v33 = vmul.f32 0.03125, %v3067_v58 }
 0x7e6   :  { %v4817_v29 = vpop.eup %4816  ;;  %3188 = vst [vmem:[#allocation13] sm:$0xff] %v3172_v38  ;;  %v3151_v31 = vmul.f32 %v6854_v19, %v3128_v56  ;;  %v3105_v5 = vadd.f32 1e-05, %v3089_v34 }
 0x7e7   :  { %v4819_v28 = vpop.eup %4818  ;;  %v3175_v10 = vadd.f32 %v6860_v36, %v3152_v26  ;;  %v3131_v55 = vmul.f32 %v4817_v29, %v6780_v2  ;;  %v3104_v59 = vadd.f32 1e-05, %v3088_v33  ;;  %v3073_v11 = vpop.xlane.xlu1 %3072 }
 0x7e8   :  { %v3174_v30 = vadd.f32 %v6860_v36, %v3151_v31  ;;  %v3130_v51 = vmul.f32 %v4819_v28, %v6783_v8  ;;  %4828 = vrsqrt.f32 %v3105_v5  ;;  %v3091_v63 = vmul.f32 0.03125, %v3073_v11  ;;  %v3071_v39 = vpop.xlane.xlu0 %3070 }
 0x7e9   :  { %3191 = vst [vmem:[#allocation13 + $0x18] sm:$0xff] %v3175_v10  ;;  %v3154_v21 = vmul.f32 %v6854_v19, %v3131_v55  ;;  %4830 = vrsqrt.f32 %v3104_v59  ;;  %v3090_v16 = vmul.f32 0.03125, %v3071_v39 }
 0x7ea   :  { %v4821_v47 = vpop.eup %4820  ;;  %3190 = vst [vmem:[#allocation13 + $0x10] sm:$0xff] %v3174_v30  ;;  %v3153_v41 = vmul.f32 %v6854_v19, %v3130_v51  ;;  %v3107_v13 = vadd.f32 1e-05, %v3091_v63 }
 0x7eb   :  { %v4823_v2 = vpop.eup %4822  ;;  %v3177_v32 = vadd.f32 %v6860_v36, %v3154_v21  ;;  %v3133_v15 = vmul.f32 %v4821_v47, %v6792_v62  ;;  %v3106_v50 = vadd.f32 1e-05, %v3090_v16  ;;  %v3077_v8 = vpop.xlane.xlu1 %3076 }
 0x7ec   :  { %v3176_v3 = vadd.f32 %v6860_v36, %v3153_v41  ;;  %v3132_v49 = vmul.f32 %v4823_v2, %v6795_v42  ;;  %4832 = vrsqrt.f32 %v3107_v13  ;;  %v3093_v27 = vmul.f32 0.03125, %v3077_v8  ;;  %v3075_v23 = vpop.xlane.xlu0 %3074 }
 0x7ed   :  { %3193 = vst [vmem:[#allocation13 + $0x28] sm:$0xff] %v3177_v32  ;;  %v3156_v7 = vmul.f32 %v6854_v19, %v3133_v15  ;;  %4834 = vrsqrt.f32 %v3106_v50  ;;  %v3092_v57 = vmul.f32 0.03125, %v3075_v23 }
 0x7ee   :  { %v4825_v4 = vpop.eup %4824  ;;  %3192 = vst [vmem:[#allocation13 + $0x20] sm:$0xff] %v3176_v3  ;;  %v3155_v43 = vmul.f32 %v6854_v19, %v3132_v49  ;;  %v3109_v37 = vadd.f32 1e-05, %v3093_v27 }
 0x7ef   :  { %v4827_v62 = vpop.eup %4826  ;;  %v3179_v0 = vadd.f32 %v6860_v36, %v3156_v7  ;;  %v3135_v9 = vmul.f32 %v4825_v4, %v6804_v6  ;;  %v3108_v61 = vadd.f32 1e-05, %v3092_v57 }
 0x7f0   :  { %v3178_v42 = vadd.f32 %v6860_v36, %v3155_v43  ;;  %v3134_v12 = vmul.f32 %v4827_v62, %v6807_v1  ;;  %4836 = vrsqrt.f32 %v3109_v37 }
 0x7f1   :  { %3195 = vst [vmem:[#allocation13 + $0x38] sm:$0xff] %v3179_v0  ;;  %v3158_v46 = vmul.f32 %v6854_v19, %v3135_v9  ;;  %4838 = vrsqrt.f32 %v3108_v61 }
 0x7f2   :  { %v4829_v54 = vpop.eup %4828  ;;  %3194 = vst [vmem:[#allocation13 + $0x30] sm:$0xff] %v3178_v42  ;;  %v3157_v60 = vmul.f32 %v6854_v19, %v3134_v12 }
 0x7f3   :  { %v4831_v52 = vpop.eup %4830  ;;  %v3181_v40 = vadd.f32 %v6860_v36, %v3158_v46  ;;  %v3137_v22 = vmul.f32 %v4829_v54, %v6816_v45 }
 0x7f4   :  { %v3180_v6 = vadd.f32 %v6860_v36, %v3157_v60  ;;  %v3136_v14 = vmul.f32 %v4831_v52, %v6819_v17 }
 0x7f5   :  { %3197 = vst [vmem:[#allocation13 + $0x48] sm:$0xff] %v3181_v40  ;;  %v3160_v1 = vmul.f32 %v6854_v19, %v3137_v22 }
 0x7f6   :  { %v4833_v18 = vpop.eup %4832  ;;  %3196 = vst [vmem:[#allocation13 + $0x40] sm:$0xff] %v3180_v6  ;;  %v3159_v44 = vmul.f32 %v6854_v19, %v3136_v14 }
 0x7f7   :  { %v4835_v25 = vpop.eup %4834  ;;  %v3183_v35 = vadd.f32 %v6860_v36, %v3160_v1  ;;  %v3139_v38 = vmul.f32 %v4833_v18, %v6828_v48 }
 0x7f8   :  { %v3182_v56 = vadd.f32 %v6860_v36, %v3159_v44  ;;  %v3138_v45 = vmul.f32 %v4835_v25, %v6831_v53 }
 0x7f9   :  { %3199 = vst [vmem:[#allocation13 + $0x58] sm:$0xff] %v3183_v35  ;;  %v3162_v34 = vmul.f32 %v6854_v19, %v3139_v38 }
 0x7fa   :  { %v4837_v17 = vpop.eup %4836  ;;  %3198 = vst [vmem:[#allocation13 + $0x50] sm:$0xff] %v3182_v56  ;;  %v3161_v58 = vmul.f32 %v6854_v19, %v3138_v45 }
 0x7fb   :  { %v4839_v26 = vpop.eup %4838  ;;  %v3185_v33 = vadd.f32 %v6860_v36, %v3162_v34  ;;  %v3141_v29 = vmul.f32 %v4837_v17, %v6840_v20 }
 0x7fc   :  { %v3184_v31 = vadd.f32 %v6860_v36, %v3161_v58  ;;  %v3140_v48 = vmul.f32 %v4839_v26, %v6843_v24 }
 0x7fd   :  { %3201 = vst [vmem:[#allocation13 + $0x68] sm:$0xff] %v3185_v33  ;;  %v3164_v5 = vmul.f32 %v6854_v19, %v3141_v29 }
 0x7fe   :  { %3200 = vst [vmem:[#allocation13 + $0x60] sm:$0xff] %v3184_v31  ;;  %v3163_v53 = vmul.f32 %v6854_v19, %v3140_v48 }
 0x7ff   :  { %v3187_v28 = vadd.f32 %v6860_v36, %v3164_v5 }
 0x800   :  { %v3186_v10 = vadd.f32 %v6860_v36, %v3163_v53 }
 0x801   :  { %3203 = vst [vmem:[#allocation13 + $0x78] sm:$0xff] %v3187_v28 }
 0x802   :  { %3202 = vst [vmem:[#allocation13 + $0x70] sm:$0xff] %v3186_v10 }
 0x803   :  { %5000 = shalt.err (!%p4997_p10)
}
 0x804   :  { %s5001_s14 = scalar_lea.hbm %s6937_s13, 2048 }
 0x805   :  { %p5002_p11 = scmp.ne.s32.totalorder %s6937_s13, %s5001_s14  ;;  %p5005_p12 = scmp.lt.u32.totalorder %s5001_s14, %s6937_s13 }
 0x807   :  { %p5007_p13 = pnand %p5005_p12, %p5002_p11 }
 0x809   :  { %5010 = shalt.err (!%p5007_p13)
}
 0x80a   :  { %3215 = dma.vmem_to_hbm [thread:$0]  %s3210_s12, 2048, %s6937_s13, [#allocation4], %s5023_s20, %s5023_s20, %s5024_s21  }
 0x80b   :  { %5019 = dma.done.wait [#allocation4], 2048  }
 0x80c   :  { %5020 = vsyncadd [#allocation4], 4294965248 }
 0x80d   :  { %3219 = vsyncpa [#allocation3], 1 }
 0x80e   :  { %3220 = vsyncpa [#allocation6], 1 }
 0x80f   :  { %3221 = vsyncpa [#allocation9], 1 }
 0x810   :  { %3222 = vsyncpa [#allocation12], 1 }
 0x811   :  { %3223 = vsyncpa [#allocation4], 1 }

</bundles_post_ra>
